<compile_context>
chip_gen: v7x
topology: tpu7x:2x2x1
jax: 0.10.0
libtpu: 0.0.40
codegen_flags: <defaults>
</compile_context>

<pallas_src>
import functools
import math

import jax
import jax.numpy as jnp
from jax.experimental import pallas as pl
from jax.experimental.pallas import tpu as pltpu

# ----------------------------------------------------------------------------
# Small, TPU-friendly configuration consistent with the module's __init__
# (same structure as the defaults, just scaled down).
# ----------------------------------------------------------------------------
CODEBOOK_LEN_T = 4
CODEBOOK_LEN_B = 8
CODEBOOK_SIZE_T = 32
CODEBOOK_SIZE_B = 32
MODEL_DIM = 128
LAYERS = 2
HEADS = 4
NUM_CLASSES = 10

TOTAL_CODEBOOK = CODEBOOK_SIZE_T + CODEBOOK_SIZE_B        # 64
START_TOKEN = TOTAL_CODEBOOK                               # 64
STOP_TOKEN = TOTAL_CODEBOOK + 1                            # 65
EMB_VOCAB = CODEBOOK_SIZE_T + 514                          # embedding table rows (546)
HEAD_VOCAB = CODEBOOK_SIZE_T + 514                         # head output size (546)
HEAD_VOCAB_PAD = 640                                       # 5 * 128 lane-dense pad
WPE_LEN = CODEBOOK_LEN_T + CODEBOOK_LEN_B + 50             # learned pos-emb rows
LN_EPS = 1e-5


def _layernorm(v, w, b, eps=LN_EPS):
    """Row-wise LayerNorm over the last dim. w/b are (1, D)."""
    mu = jnp.mean(v, axis=-1, keepdims=True)
    var = jnp.mean(jnp.square(v - mu), axis=-1, keepdims=True)
    return (v - mu) * jax.lax.rsqrt(var + eps) * w + b


def _gelu_new(f):
    # gelu_new (tanh approximation), as used by GPT2. Works in f's dtype (bf16
    # in the kernel's MLP path).
    return 0.5 * f * (1.0 + jnp.tanh(0.7978845608028654 * (f + 0.044715 * f * f * f)))


# ----------------------------------------------------------------------------
# Fused Pallas kernel: all GPT2 blocks + ln_f + model.final_norm + head.
# One grid step processes `B` sequences (batch slice); all weights are VMEM
# resident across grid steps via constant index maps.
# ----------------------------------------------------------------------------
def fused_gpt_kernel(x_ref,
                     ln1w_ref, ln1b_ref, qkvw_ref, qkvb_ref,
                     projw_ref, projb_ref, ln2w_ref, ln2b_ref,
                     fcw_ref, fcb_ref, fc2w_ref, fc2b_ref,
                     lnfw_ref, lnfb_ref, fnw_ref, fnb_ref,
                     headw_ref, headb_ref,
                     o_ref, *, B, T, D, H, L):
    hd = D // H
    bf16 = jnp.bfloat16
    N = B * T

    # Residual stream, batch folded into the matmul row dim.
    x = x_ref[...].reshape(N, D)                            # (N, D) f32

    # Causal mask shared by all (batch, head) pairs.
    row = jax.lax.broadcasted_iota(jnp.int32, (T, T), 0)
    col = jax.lax.broadcasted_iota(jnp.int32, (T, T), 1)
    causal = (col <= row)[None, :, :]                       # (1, T, T)

    def to_heads(z):
        """(N, D) f32 -> (B*H, T, hd) bf16, head-major single batch dim."""
        z = z.reshape(B, T, H, hd)
        z = jnp.transpose(z, (0, 2, 1, 3))                  # (B, H, T, hd)
        return z.reshape(B * H, T, hd).astype(bf16)

    for l in range(L):                                      # static layer loop
        # --- attention sub-block ------------------------------------------
        h1 = _layernorm(x, ln1w_ref[l], ln1b_ref[l])        # (N, D)
        qkv = jnp.dot(h1.astype(bf16), qkvw_ref[l],
                      preferred_element_type=jnp.float32) + qkvb_ref[l]   # (N, 3D)

        # 1/sqrt(hd) is pre-folded into the q columns of qkv_w / qkv_b.
        qh = to_heads(qkv[:, 0:D])                          # 128-aligned slices
        kh = to_heads(qkv[:, D:2 * D])
        vh = to_heads(qkv[:, 2 * D:3 * D])

        # All heads in two batched einsums (single leading batch dim B*H).
        s = jnp.einsum('bqd,bkd->bqk', qh, kh,
                       preferred_element_type=jnp.float32)  # (B*H, T, T)
        s = jnp.where(causal, s, jnp.float32(-1e30))
        s = s - jnp.max(s, axis=-1, keepdims=True)
        p = jnp.exp(s)
        p = p * pl.reciprocal(jnp.sum(p, axis=-1, keepdims=True), approx=True)

        ctx = jnp.einsum('bqk,bkd->bqd', p.astype(bf16), vh,
                         preferred_element_type=jnp.float32)        # (B*H, T, hd)
        ctx = jnp.transpose(ctx.reshape(B, H, T, hd), (0, 2, 1, 3)).reshape(N, D)

        # Single K=128 output projection for all heads.
        attn = jnp.dot(ctx.astype(bf16), projw_ref[l],
                       preferred_element_type=jnp.float32) + projb_ref[l]
        x = x + attn

        # --- MLP sub-block --------------------------------------------------
        h2 = _layernorm(x, ln2w_ref[l], ln2b_ref[l])
        f = (jnp.dot(h2.astype(bf16), fcw_ref[l],
                     preferred_element_type=jnp.float32) + fcb_ref[l]).astype(bf16)
        g = _gelu_new(f)                                    # bf16 GELU (feeds bf16 matmul)
        m = jnp.dot(g, fc2w_ref[l],
                    preferred_element_type=jnp.float32) + fc2b_ref[l]     # (N, D)
        x = x + m

    # --- GPT2 ln_f + model.final_norm + head --------------------------------
    # Both layernorms are row-wise, so applying them to the full sequence and
    # slicing [:, 1:-1] afterwards matches the PyTorch order exactly.
    hfin = _layernorm(x, lnfw_ref[...], lnfb_ref[...])
    enc = _layernorm(hfin, fnw_ref[...], fnb_ref[...])
    logits = jnp.dot(enc.astype(bf16), headw_ref[...],
                     preferred_element_type=jnp.float32) + headb_ref[...]  # (N, Vpad)
    o_ref[...] = logits.reshape(B, T, -1)


def _resident_spec(arr):
    """Full-array VMEM block whose index is constant across the grid."""
    zeros = (0,) * arr.ndim

    def idx(b):
        return zeros

    return pl.BlockSpec(arr.shape, idx)


def run_fused_gpt(x, p, *, batch_blocks=2):
    B, T, D = x.shape
    nb = batch_blocks if (batch_blocks > 0 and B % batch_blocks == 0) else 1
    bp = B // nb

    weights = [p["ln1_w"], p["ln1_b"], p["qkv_w"], p["qkv_b"],
               p["proj_w"], p["proj_b"], p["ln2_w"], p["ln2_b"],
               p["fc_w"], p["fc_b"], p["fc2_w"], p["fc2_b"],
               p["lnf_w"], p["lnf_b"], p["final_norm_w"], p["final_norm_b"],
               p["head_w"], p["head_b"]]

    in_specs = ([pl.BlockSpec((bp, T, D), lambda b: (b, 0, 0))]
                + [_resident_spec(w) for w in weights])
    out_spec = pl.BlockSpec((bp, T, HEAD_VOCAB_PAD), lambda b: (b, 0, 0))

    kernel = functools.partial(fused_gpt_kernel, B=bp, T=T, D=D, H=HEADS, L=LAYERS)
    return pl.pallas_call(
        kernel,
        grid=(nb,),
        in_specs=in_specs,
        out_specs=out_spec,
        out_shape=jax.ShapeDtypeStruct((B, T, HEAD_VOCAB_PAD), jnp.float32),
        compiler_params=pltpu.CompilerParams(
            dimension_semantics=("parallel",)),   # 2 TCs on v7x; sequential on v5e/v6e
    )(x, *weights)


# ----------------------------------------------------------------------------
# Parameter construction (deterministic, synthetic). Per-layer weights are
# stacked on a leading LAYERS axis so the fused kernel can index them.
# ----------------------------------------------------------------------------
def init_params(key):
    D = MODEL_DIM
    hd = D // HEADS
    q_scale = 1.0 / math.sqrt(hd)
    counter = [0]

    def nrm(shape, std=0.02):
        counter[0] += 1
        k = jax.random.fold_in(key, counter[0])
        return (std * jax.random.normal(k, shape)).astype(jnp.float32)

    bf = jnp.bfloat16

    # Fold the attention 1/sqrt(head_dim) scale into the q columns (weights AND
    # bias) so the kernel never multiplies by it.
    qkv_w = nrm((LAYERS, D, 3 * D))
    qkv_b = nrm((LAYERS, 1, 3 * D))
    qkv_w = qkv_w.at[:, :, :D].multiply(q_scale)
    qkv_b = qkv_b.at[:, :, :D].multiply(q_scale)

    params = {
        "wte": nrm((EMB_VOCAB, D)),                 # self.embedding
        "class_emb": nrm((NUM_CLASSES, D)),         # self.class_embedding
        "wpe": nrm((WPE_LEN, D)),                   # LearnedPositionEmbeddings
        # stacked transformer-block weights (matmul weights stored bf16)
        "ln1_w": jnp.ones((LAYERS, 1, D), jnp.float32),
        "ln1_b": jnp.zeros((LAYERS, 1, D), jnp.float32),
        "qkv_w": qkv_w.astype(bf),
        "qkv_b": qkv_b,
        "proj_w": nrm((LAYERS, D, D)).astype(bf),
        "proj_b": nrm((LAYERS, 1, D)),
        "ln2_w": jnp.ones((LAYERS, 1, D), jnp.float32),
        "ln2_b": jnp.zeros((LAYERS, 1, D), jnp.float32),
        "fc_w": nrm((LAYERS, D, 4 * D)).astype(bf),
        "fc_b": nrm((LAYERS, 1, 4 * D)),
        "fc2_w": nrm((LAYERS, 4 * D, D)).astype(bf),
        "fc2_b": nrm((LAYERS, 1, D)),
        # final norms + head
        "lnf_w": (jnp.ones((1, D), jnp.float32) + nrm((1, D))),
        "lnf_b": nrm((1, D)),
        "final_norm_w": (jnp.ones((1, D), jnp.float32) + nrm((1, D))),
        "final_norm_b": nrm((1, D)),
    }
    head_w = nrm((D, HEAD_VOCAB))
    head_b = nrm((1, HEAD_VOCAB))
    pad = HEAD_VOCAB_PAD - HEAD_VOCAB
    params["head_w"] = jnp.pad(head_w, ((0, 0), (0, pad))).astype(bf)   # lane-dense
    params["head_b"] = jnp.pad(head_b, ((0, 0), (0, pad)))
    return params


# ----------------------------------------------------------------------------
# Full forward pass (matches GPTModelCIFAR.forward).
# ----------------------------------------------------------------------------
@jax.jit
def gpt_model_cifar_forward(img_class, emb_tokens, params):
    B, _ = emb_tokens.shape
    # F.pad(emb, (1,0), value=start) ; F.pad(emb, (0,1), value=stop)
    start_col = jnp.full((B, 1), START_TOKEN, dtype=emb_tokens.dtype)
    stop_col = jnp.full((B, 1), STOP_TOKEN, dtype=emb_tokens.dtype)
    tokens = jnp.concatenate([start_col, emb_tokens, stop_col], axis=1)   # (B, L+2)
    targets = tokens[:, 1:]                                               # (B, L+1)

    sl = tokens.shape[1]
    tok_emb = jnp.take(params["wte"], tokens, axis=0)                     # (B, sl, D)
    pos_emb = params["wpe"][:sl]                                          # (sl, D)
    x_tok = tok_emb + pos_emb[None, :, :]
    class_emb = jnp.take(params["class_emb"], img_class, axis=0)          # (B, 1, D)
    x = jnp.concatenate([class_emb, x_tok], axis=1)                       # (B, sl+1, D)
    # TODO(synk): GPT2 embedding/residual/attention dropout omitted (inference
    # semantics; stochastic training-mode dropout has no deterministic kernel).

    T = sl + 1
    T_pad = ((T + 7) // 8) * 8                                            # 15 -> 16
    x = jnp.pad(x, ((0, 0), (0, T_pad - T), (0, 0)))                      # pad rows are
    # causally isolated (no real row attends a padded key) and sliced away below.

    logits_full = run_fused_gpt(x, params)                                # (B, T_pad, Vpad)
    logits = logits_full[:, 1:T - 1, :HEAD_VOCAB]                         # (B, sl-1, V)
    logits = jnp.transpose(logits, (0, 2, 1))                             # (B, V, sl-1)
    return logits, targets


# ----------------------------------------------------------------------------
if __name__ == "__main__":
    key = jax.random.PRNGKey(0)
    k_params, k_tokens, k_class = jax.random.split(key, 3)

    params = init_params(k_params)

    B = 2
    L = CODEBOOK_LEN_T + CODEBOOK_LEN_B                      # 12
    emb_tokens = jax.random.randint(k_tokens, (B, L), 0, TOTAL_CODEBOOK,
                                    dtype=jnp.int32)
    img_class = jax.random.randint(k_class, (B, 1), 0, NUM_CLASSES,
                                   dtype=jnp.int32)

    logits, targets = gpt_model_cifar_forward(img_class, emb_tokens, params)
    logits = jax.block_until_ready(logits)
    targets = jax.block_until_ready(targets)

    assert logits.shape == (B, HEAD_VOCAB, L + 1), logits.shape
    assert targets.shape == (B, L + 1), targets.shape
    assert bool(jnp.all(jnp.isfinite(logits)))

    print("KERNEL_OK")
</pallas_src>

<mosaic_0001>
module attributes {stable_mosaic.version = 11 : i64} {
  func.func @fused_gpt_kernel(%arg0: i32, %arg1: memref<1x16x128xf32, #tpu.memory_space<vmem>>, %arg2: memref<2x1x128xf32, #tpu.memory_space<vmem>>, %arg3: memref<2x1x128xf32, #tpu.memory_space<vmem>>, %arg4: memref<2x128x384xbf16, #tpu.memory_space<vmem>>, %arg5: memref<2x1x384xf32, #tpu.memory_space<vmem>>, %arg6: memref<2x128x128xbf16, #tpu.memory_space<vmem>>, %arg7: memref<2x1x128xf32, #tpu.memory_space<vmem>>, %arg8: memref<2x1x128xf32, #tpu.memory_space<vmem>>, %arg9: memref<2x1x128xf32, #tpu.memory_space<vmem>>, %arg10: memref<2x128x512xbf16, #tpu.memory_space<vmem>>, %arg11: memref<2x1x512xf32, #tpu.memory_space<vmem>>, %arg12: memref<2x512x128xbf16, #tpu.memory_space<vmem>>, %arg13: memref<2x1x128xf32, #tpu.memory_space<vmem>>, %arg14: memref<1x128xf32, #tpu.memory_space<vmem>>, %arg15: memref<1x128xf32, #tpu.memory_space<vmem>>, %arg16: memref<1x128xf32, #tpu.memory_space<vmem>>, %arg17: memref<1x128xf32, #tpu.memory_space<vmem>>, %arg18: memref<128x640xbf16, #tpu.memory_space<vmem>>, %arg19: memref<1x640xf32, #tpu.memory_space<vmem>>, %arg20: memref<1x16x640xf32, #tpu.memory_space<vmem>>) attributes {dimension_semantics = [#tpu.dimension_semantics<parallel>], iteration_bounds = array<i64: 2>, scalar_prefetch = 0 : i64, scratch_operands = 0 : i64, tpu.core_type = #tpu.core_type<tc>, window_params = [{transform_indices = @transform_0, window_bounds = array<i64: 1, 16, 128>}, {pipeline_mode = #tpu.pipeline_mode<synchronous>, transform_indices = @transform_1, window_bounds = array<i64: 2, 1, 128>}, {pipeline_mode = #tpu.pipeline_mode<synchronous>, transform_indices = @transform_2, window_bounds = array<i64: 2, 1, 128>}, {pipeline_mode = #tpu.pipeline_mode<synchronous>, transform_indices = @transform_3, window_bounds = array<i64: 2, 128, 384>}, {pipeline_mode = #tpu.pipeline_mode<synchronous>, transform_indices = @transform_4, window_bounds = array<i64: 2, 1, 384>}, {pipeline_mode = #tpu.pipeline_mode<synchronous>, transform_indices = @transform_5, window_bounds = array<i64: 2, 128, 128>}, {pipeline_mode = #tpu.pipeline_mode<synchronous>, transform_indices = @transform_6, window_bounds = array<i64: 2, 1, 128>}, {pipeline_mode = #tpu.pipeline_mode<synchronous>, transform_indices = @transform_7, window_bounds = array<i64: 2, 1, 128>}, {pipeline_mode = #tpu.pipeline_mode<synchronous>, transform_indices = @transform_8, window_bounds = array<i64: 2, 1, 128>}, {pipeline_mode = #tpu.pipeline_mode<synchronous>, transform_indices = @transform_9, window_bounds = array<i64: 2, 128, 512>}, {pipeline_mode = #tpu.pipeline_mode<synchronous>, transform_indices = @transform_10, window_bounds = array<i64: 2, 1, 512>}, {pipeline_mode = #tpu.pipeline_mode<synchronous>, transform_indices = @transform_11, window_bounds = array<i64: 2, 512, 128>}, {pipeline_mode = #tpu.pipeline_mode<synchronous>, transform_indices = @transform_12, window_bounds = array<i64: 2, 1, 128>}, {pipeline_mode = #tpu.pipeline_mode<synchronous>, transform_indices = @transform_13, window_bounds = array<i64: 1, 128>}, {pipeline_mode = #tpu.pipeline_mode<synchronous>, transform_indices = @transform_14, window_bounds = array<i64: 1, 128>}, {pipeline_mode = #tpu.pipeline_mode<synchronous>, transform_indices = @transform_15, window_bounds = array<i64: 1, 128>}, {pipeline_mode = #tpu.pipeline_mode<synchronous>, transform_indices = @transform_16, window_bounds = array<i64: 1, 128>}, {pipeline_mode = #tpu.pipeline_mode<synchronous>, transform_indices = @transform_17, window_bounds = array<i64: 128, 640>}, {pipeline_mode = #tpu.pipeline_mode<synchronous>, transform_indices = @transform_18, window_bounds = array<i64: 1, 640>}, {transform_indices = @transform_19, window_bounds = array<i64: 1, 16, 640>}]} {
    %c0 = arith.constant 0 : index
    %c0_0 = arith.constant 0 : index
    %c0_1 = arith.constant 0 : index
    %0 = vector.load %arg1[%c0, %c0_0, %c0_1] : memref<1x16x128xf32, #tpu.memory_space<vmem>>, vector<1x16x128xf32>
    %1 = vector.shape_cast %0 : vector<1x16x128xf32> to vector<16x128xf32>
    %2 = tpu.iota {dimensions = array<i32: 0>} : vector<16x16xi32>
    %3 = tpu.iota {dimensions = array<i32: 1>} : vector<16x16xi32>
    %4 = arith.cmpi sle, %3, %2 : vector<16x16xi32>
    %5 = vector.shape_cast %4 : vector<16x16xi1> to vector<1x16x16xi1>
    %c0_2 = arith.constant 0 : index
    %c0_3 = arith.constant 0 : index
    %c0_4 = arith.constant 0 : index
    %6 = vector.load %arg2[%c0_2, %c0_3, %c0_4] : memref<2x1x128xf32, #tpu.memory_space<vmem>>, vector<1x1x128xf32>
    %7 = vector.shape_cast %6 : vector<1x1x128xf32> to vector<1x128xf32>
    %c0_5 = arith.constant 0 : index
    %c0_6 = arith.constant 0 : index
    %c0_7 = arith.constant 0 : index
    %8 = vector.load %arg3[%c0_5, %c0_6, %c0_7] : memref<2x1x128xf32, #tpu.memory_space<vmem>>, vector<1x1x128xf32>
    %9 = vector.shape_cast %8 : vector<1x1x128xf32> to vector<1x128xf32>
    %cst = arith.constant dense<0.000000e+00> : vector<16xf32>
    %10 = vector.multi_reduction <add>, %1, %cst [1] : vector<16x128xf32> to vector<16xf32>
    %11 = vector.shape_cast %10 : vector<16xf32> to vector<16x1xf32>
    %cst_8 = arith.constant 1.280000e+02 : f32
    %12 = vector.broadcast %cst_8 : f32 to vector<16x1xf32>
    %13 = arith.divf %11, %12 : vector<16x1xf32>
    %14 = vector.broadcast %13 : vector<16x1xf32> to vector<16x128xf32>
    %15 = arith.subf %1, %14 : vector<16x128xf32>
    %16 = arith.mulf %15, %15 : vector<16x128xf32>
    %cst_9 = arith.constant dense<0.000000e+00> : vector<16xf32>
    %17 = vector.multi_reduction <add>, %16, %cst_9 [1] : vector<16x128xf32> to vector<16xf32>
    %18 = vector.shape_cast %17 : vector<16xf32> to vector<16x1xf32>
    %cst_10 = arith.constant 1.280000e+02 : f32
    %19 = vector.broadcast %cst_10 : f32 to vector<16x1xf32>
    %20 = arith.divf %18, %19 : vector<16x1xf32>
    %21 = vector.broadcast %13 : vector<16x1xf32> to vector<16x128xf32>
    %22 = arith.subf %1, %21 : vector<16x128xf32>
    %cst_11 = arith.constant 9.99999974E-6 : f32
    %23 = vector.broadcast %cst_11 : f32 to vector<16x1xf32>
    %24 = arith.addf %20, %23 : vector<16x1xf32>
    %25 = math.rsqrt %24 : vector<16x1xf32>
    %26 = vector.broadcast %25 : vector<16x1xf32> to vector<16x128xf32>
    %27 = arith.mulf %22, %26 : vector<16x128xf32>
    %28 = vector.broadcast %7 : vector<1x128xf32> to vector<16x128xf32>
    %29 = arith.mulf %27, %28 : vector<16x128xf32>
    %30 = vector.broadcast %9 : vector<1x128xf32> to vector<16x128xf32>
    %31 = arith.addf %29, %30 : vector<16x128xf32>
    %32 = arith.truncf %31 : vector<16x128xf32> to vector<16x128xbf16>
    %c0_12 = arith.constant 0 : index
    %c0_13 = arith.constant 0 : index
    %c0_14 = arith.constant 0 : index
    %33 = vector.load %arg4[%c0_12, %c0_13, %c0_14] : memref<2x128x384xbf16, #tpu.memory_space<vmem>>, vector<1x128x384xbf16>
    %34 = vector.shape_cast %33 : vector<1x128x384xbf16> to vector<128x384xbf16>
    %cst_15 = arith.constant dense<0.000000e+00> : vector<16x384xf32>
    %35 = tpu.matmul %32, %34, %cst_15 {dimension_numbers = #tpu.dot_dimension_numbers<[1], [0], [0], [1], [0, 0, 1, 1], [], []>} : vector<16x128xbf16>, vector<128x384xbf16>, vector<16x384xf32> -> vector<16x384xf32>
    %c0_16 = arith.constant 0 : index
    %c0_17 = arith.constant 0 : index
    %c0_18 = arith.constant 0 : index
    %36 = vector.load %arg5[%c0_16, %c0_17, %c0_18] : memref<2x1x384xf32, #tpu.memory_space<vmem>>, vector<1x1x384xf32>
    %37 = vector.shape_cast %36 : vector<1x1x384xf32> to vector<1x384xf32>
    %38 = vector.broadcast %37 : vector<1x384xf32> to vector<16x384xf32>
    %39 = arith.addf %35, %38 : vector<16x384xf32>
    %40 = vector.extract_strided_slice %39 {offsets = [0, 0], sizes = [16, 128], strides = [1, 1]} : vector<16x384xf32> to vector<16x128xf32>
    %41 = vector.shape_cast %40 : vector<16x128xf32> to vector<1x16x4x32xf32>
    %42 = tpu.transpose %41, [0, 2, 1, 3] : vector<1x16x4x32xf32> -> vector<1x4x16x32xf32>
    %43 = vector.shape_cast %42 : vector<1x4x16x32xf32> to vector<4x16x32xf32>
    %44 = arith.truncf %43 : vector<4x16x32xf32> to vector<4x16x32xbf16>
    %45 = vector.extract_strided_slice %39 {offsets = [0, 128], sizes = [16, 128], strides = [1, 1]} : vector<16x384xf32> to vector<16x128xf32>
    %46 = vector.shape_cast %45 : vector<16x128xf32> to vector<1x16x4x32xf32>
    %47 = tpu.transpose %46, [0, 2, 1, 3] : vector<1x16x4x32xf32> -> vector<1x4x16x32xf32>
    %48 = vector.shape_cast %47 : vector<1x4x16x32xf32> to vector<4x16x32xf32>
    %49 = arith.truncf %48 : vector<4x16x32xf32> to vector<4x16x32xbf16>
    %50 = vector.extract_strided_slice %39 {offsets = [0, 256], sizes = [16, 128], strides = [1, 1]} : vector<16x384xf32> to vector<16x128xf32>
    %51 = vector.shape_cast %50 : vector<16x128xf32> to vector<1x16x4x32xf32>
    %52 = tpu.transpose %51, [0, 2, 1, 3] : vector<1x16x4x32xf32> -> vector<1x4x16x32xf32>
    %53 = vector.shape_cast %52 : vector<1x4x16x32xf32> to vector<4x16x32xf32>
    %54 = arith.truncf %53 : vector<4x16x32xf32> to vector<4x16x32xbf16>
    "tpu.trace_start"() <{level = 10 : i32, message = "bqd,bkd->bqk"}> : () -> ()
    %cst_19 = arith.constant dense<0.000000e+00> : vector<4x16x16xf32>
    %55 = tpu.matmul %44, %49, %cst_19 {dimension_numbers = #tpu.dot_dimension_numbers<[2], [2], [1], [1], [0, 0, 0, 1, 1, 1], [0], [0]>} : vector<4x16x32xbf16>, vector<4x16x32xbf16>, vector<4x16x16xf32> -> vector<4x16x16xf32>
    %cst_20 = arith.constant -1.000000e+30 : f32
    "tpu.trace_stop"() : () -> ()
    %56 = vector.shape_cast %5 : vector<1x16x16xi1> to vector<1x16x16xi1>
    %57 = vector.broadcast %56 : vector<1x16x16xi1> to vector<4x16x16xi1>
    %58 = vector.broadcast %cst_20 : f32 to vector<4x16x16xf32>
    %59 = arith.select %57, %55, %58 : vector<4x16x16xi1>, vector<4x16x16xf32>
    %cst_21 = arith.constant dense<0xFF800000> : vector<4x16xf32>
    %60 = vector.multi_reduction <maximumf>, %59, %cst_21 [2] : vector<4x16x16xf32> to vector<4x16xf32>
    %61 = vector.shape_cast %60 : vector<4x16xf32> to vector<4x16x1xf32>
    %62 = vector.broadcast %61 : vector<4x16x1xf32> to vector<4x16x16xf32>
    %63 = arith.subf %59, %62 : vector<4x16x16xf32>
    %64 = math.exp %63 : vector<4x16x16xf32>
    %cst_22 = arith.constant dense<0.000000e+00> : vector<4x16xf32>
    %65 = vector.multi_reduction <add>, %64, %cst_22 [2] : vector<4x16x16xf32> to vector<4x16xf32>
    %66 = vector.shape_cast %65 : vector<4x16xf32> to vector<4x16x1xf32>
    %67 = tpu.reciprocal %66 {approx = true} : vector<4x16x1xf32> -> vector<4x16x1xf32>
    %68 = vector.broadcast %67 : vector<4x16x1xf32> to vector<4x16x16xf32>
    %69 = arith.mulf %64, %68 : vector<4x16x16xf32>
    %70 = arith.truncf %69 : vector<4x16x16xf32> to vector<4x16x16xbf16>
    "tpu.trace_start"() <{level = 10 : i32, message = "bqk,bkd->bqd"}> : () -> ()
    %cst_23 = arith.constant dense<0.000000e+00> : vector<4x16x32xf32>
    %71 = tpu.matmul %70, %54, %cst_23 {dimension_numbers = #tpu.dot_dimension_numbers<[2], [1], [1], [2], [0, 0, 0, 1, 1, 2], [0], [0]>} : vector<4x16x16xbf16>, vector<4x16x32xbf16>, vector<4x16x32xf32> -> vector<4x16x32xf32>
    "tpu.trace_stop"() : () -> ()
    %72 = vector.shape_cast %71 : vector<4x16x32xf32> to vector<1x4x16x32xf32>
    %73 = tpu.transpose %72, [0, 2, 1, 3] : vector<1x4x16x32xf32> -> vector<1x16x4x32xf32>
    %74 = vector.shape_cast %73 : vector<1x16x4x32xf32> to vector<16x128xf32>
    %75 = arith.truncf %74 : vector<16x128xf32> to vector<16x128xbf16>
    %c0_24 = arith.constant 0 : index
    %c0_25 = arith.constant 0 : index
    %c0_26 = arith.constant 0 : index
    %76 = vector.load %arg6[%c0_24, %c0_25, %c0_26] : memref<2x128x128xbf16, #tpu.memory_space<vmem>>, vector<1x128x128xbf16>
    %77 = vector.shape_cast %76 : vector<1x128x128xbf16> to vector<128x128xbf16>
    %cst_27 = arith.constant dense<0.000000e+00> : vector<16x128xf32>
    %78 = tpu.matmul %75, %77, %cst_27 {dimension_numbers = #tpu.dot_dimension_numbers<[1], [0], [0], [1], [0, 0, 1, 1], [], []>} : vector<16x128xbf16>, vector<128x128xbf16>, vector<16x128xf32> -> vector<16x128xf32>
    %c0_28 = arith.constant 0 : index
    %c0_29 = arith.constant 0 : index
    %c0_30 = arith.constant 0 : index
    %79 = vector.load %arg7[%c0_28, %c0_29, %c0_30] : memref<2x1x128xf32, #tpu.memory_space<vmem>>, vector<1x1x128xf32>
    %80 = vector.shape_cast %79 : vector<1x1x128xf32> to vector<1x128xf32>
    %81 = vector.broadcast %80 : vector<1x128xf32> to vector<16x128xf32>
    %82 = arith.addf %78, %81 : vector<16x128xf32>
    %83 = arith.addf %1, %82 : vector<16x128xf32>
    %c0_31 = arith.constant 0 : index
    %c0_32 = arith.constant 0 : index
    %c0_33 = arith.constant 0 : index
    %84 = vector.load %arg8[%c0_31, %c0_32, %c0_33] : memref<2x1x128xf32, #tpu.memory_space<vmem>>, vector<1x1x128xf32>
    %85 = vector.shape_cast %84 : vector<1x1x128xf32> to vector<1x128xf32>
    %c0_34 = arith.constant 0 : index
    %c0_35 = arith.constant 0 : index
    %c0_36 = arith.constant 0 : index
    %86 = vector.load %arg9[%c0_34, %c0_35, %c0_36] : memref<2x1x128xf32, #tpu.memory_space<vmem>>, vector<1x1x128xf32>
    %87 = vector.shape_cast %86 : vector<1x1x128xf32> to vector<1x128xf32>
    %cst_37 = arith.constant dense<0.000000e+00> : vector<16xf32>
    %88 = vector.multi_reduction <add>, %83, %cst_37 [1] : vector<16x128xf32> to vector<16xf32>
    %89 = vector.shape_cast %88 : vector<16xf32> to vector<16x1xf32>
    %cst_38 = arith.constant 1.280000e+02 : f32
    %90 = vector.broadcast %cst_38 : f32 to vector<16x1xf32>
    %91 = arith.divf %89, %90 : vector<16x1xf32>
    %92 = vector.broadcast %91 : vector<16x1xf32> to vector<16x128xf32>
    %93 = arith.subf %83, %92 : vector<16x128xf32>
    %94 = arith.mulf %93, %93 : vector<16x128xf32>
    %cst_39 = arith.constant dense<0.000000e+00> : vector<16xf32>
    %95 = vector.multi_reduction <add>, %94, %cst_39 [1] : vector<16x128xf32> to vector<16xf32>
    %96 = vector.shape_cast %95 : vector<16xf32> to vector<16x1xf32>
    %cst_40 = arith.constant 1.280000e+02 : f32
    %97 = vector.broadcast %cst_40 : f32 to vector<16x1xf32>
    %98 = arith.divf %96, %97 : vector<16x1xf32>
    %99 = vector.broadcast %91 : vector<16x1xf32> to vector<16x128xf32>
    %100 = arith.subf %83, %99 : vector<16x128xf32>
    %cst_41 = arith.constant 9.99999974E-6 : f32
    %101 = vector.broadcast %cst_41 : f32 to vector<16x1xf32>
    %102 = arith.addf %98, %101 : vector<16x1xf32>
    %103 = math.rsqrt %102 : vector<16x1xf32>
    %104 = vector.broadcast %103 : vector<16x1xf32> to vector<16x128xf32>
    %105 = arith.mulf %100, %104 : vector<16x128xf32>
    %106 = vector.broadcast %85 : vector<1x128xf32> to vector<16x128xf32>
    %107 = arith.mulf %105, %106 : vector<16x128xf32>
    %108 = vector.broadcast %87 : vector<1x128xf32> to vector<16x128xf32>
    %109 = arith.addf %107, %108 : vector<16x128xf32>
    %110 = arith.truncf %109 : vector<16x128xf32> to vector<16x128xbf16>
    %c0_42 = arith.constant 0 : index
    %c0_43 = arith.constant 0 : index
    %c0_44 = arith.constant 0 : index
    %111 = vector.load %arg10[%c0_42, %c0_43, %c0_44] : memref<2x128x512xbf16, #tpu.memory_space<vmem>>, vector<1x128x512xbf16>
    %112 = vector.shape_cast %111 : vector<1x128x512xbf16> to vector<128x512xbf16>
    %cst_45 = arith.constant dense<0.000000e+00> : vector<16x512xf32>
    %113 = tpu.matmul %110, %112, %cst_45 {dimension_numbers = #tpu.dot_dimension_numbers<[1], [0], [0], [1], [0, 0, 1, 1], [], []>} : vector<16x128xbf16>, vector<128x512xbf16>, vector<16x512xf32> -> vector<16x512xf32>
    %c0_46 = arith.constant 0 : index
    %c0_47 = arith.constant 0 : index
    %c0_48 = arith.constant 0 : index
    %114 = vector.load %arg11[%c0_46, %c0_47, %c0_48] : memref<2x1x512xf32, #tpu.memory_space<vmem>>, vector<1x1x512xf32>
    %115 = vector.shape_cast %114 : vector<1x1x512xf32> to vector<1x512xf32>
    %116 = vector.broadcast %115 : vector<1x512xf32> to vector<16x512xf32>
    %117 = arith.addf %113, %116 : vector<16x512xf32>
    %118 = arith.truncf %117 : vector<16x512xf32> to vector<16x512xbf16>
    %cst_49 = arith.constant 5.000000e-01 : bf16
    %119 = vector.broadcast %cst_49 : bf16 to vector<16x512xbf16>
    %120 = arith.mulf %119, %118 : vector<16x512xbf16>
    %cst_50 = arith.constant 4.467770e-02 : bf16
    %121 = vector.broadcast %cst_50 : bf16 to vector<16x512xbf16>
    %122 = arith.mulf %121, %118 : vector<16x512xbf16>
    %123 = arith.mulf %122, %118 : vector<16x512xbf16>
    %124 = arith.mulf %123, %118 : vector<16x512xbf16>
    %125 = arith.addf %118, %124 : vector<16x512xbf16>
    %cst_51 = arith.constant 7.968750e-01 : bf16
    %126 = vector.broadcast %cst_51 : bf16 to vector<16x512xbf16>
    %127 = arith.mulf %126, %125 : vector<16x512xbf16>
    %128 = math.tanh %127 : vector<16x512xbf16>
    %cst_52 = arith.constant 1.000000e+00 : bf16
    %129 = vector.broadcast %cst_52 : bf16 to vector<16x512xbf16>
    %130 = arith.addf %129, %128 : vector<16x512xbf16>
    %131 = arith.mulf %120, %130 : vector<16x512xbf16>
    %c0_53 = arith.constant 0 : index
    %c0_54 = arith.constant 0 : index
    %c0_55 = arith.constant 0 : index
    %132 = vector.load %arg12[%c0_53, %c0_54, %c0_55] : memref<2x512x128xbf16, #tpu.memory_space<vmem>>, vector<1x512x128xbf16>
    %133 = vector.shape_cast %132 : vector<1x512x128xbf16> to vector<512x128xbf16>
    %cst_56 = arith.constant dense<0.000000e+00> : vector<16x128xf32>
    %134 = tpu.matmul %131, %133, %cst_56 {dimension_numbers = #tpu.dot_dimension_numbers<[1], [0], [0], [1], [0, 0, 1, 1], [], []>} : vector<16x512xbf16>, vector<512x128xbf16>, vector<16x128xf32> -> vector<16x128xf32>
    %c0_57 = arith.constant 0 : index
    %c0_58 = arith.constant 0 : index
    %c0_59 = arith.constant 0 : index
    %135 = vector.load %arg13[%c0_57, %c0_58, %c0_59] : memref<2x1x128xf32, #tpu.memory_space<vmem>>, vector<1x1x128xf32>
    %136 = vector.shape_cast %135 : vector<1x1x128xf32> to vector<1x128xf32>
    %137 = vector.broadcast %136 : vector<1x128xf32> to vector<16x128xf32>
    %138 = arith.addf %134, %137 : vector<16x128xf32>
    %139 = arith.addf %83, %138 : vector<16x128xf32>
    %c1 = arith.constant 1 : index
    %c0_60 = arith.constant 0 : index
    %c0_61 = arith.constant 0 : index
    %140 = vector.load %arg2[%c1, %c0_60, %c0_61] : memref<2x1x128xf32, #tpu.memory_space<vmem>>, vector<1x1x128xf32>
    %141 = vector.shape_cast %140 : vector<1x1x128xf32> to vector<1x128xf32>
    %c1_62 = arith.constant 1 : index
    %c0_63 = arith.constant 0 : index
    %c0_64 = arith.constant 0 : index
    %142 = vector.load %arg3[%c1_62, %c0_63, %c0_64] : memref<2x1x128xf32, #tpu.memory_space<vmem>>, vector<1x1x128xf32>
    %143 = vector.shape_cast %142 : vector<1x1x128xf32> to vector<1x128xf32>
    %cst_65 = arith.constant dense<0.000000e+00> : vector<16xf32>
    %144 = vector.multi_reduction <add>, %139, %cst_65 [1] : vector<16x128xf32> to vector<16xf32>
    %145 = vector.shape_cast %144 : vector<16xf32> to vector<16x1xf32>
    %cst_66 = arith.constant 1.280000e+02 : f32
    %146 = vector.broadcast %cst_66 : f32 to vector<16x1xf32>
    %147 = arith.divf %145, %146 : vector<16x1xf32>
    %148 = vector.broadcast %147 : vector<16x1xf32> to vector<16x128xf32>
    %149 = arith.subf %139, %148 : vector<16x128xf32>
    %150 = arith.mulf %149, %149 : vector<16x128xf32>
    %cst_67 = arith.constant dense<0.000000e+00> : vector<16xf32>
    %151 = vector.multi_reduction <add>, %150, %cst_67 [1] : vector<16x128xf32> to vector<16xf32>
    %152 = vector.shape_cast %151 : vector<16xf32> to vector<16x1xf32>
    %cst_68 = arith.constant 1.280000e+02 : f32
    %153 = vector.broadcast %cst_68 : f32 to vector<16x1xf32>
    %154 = arith.divf %152, %153 : vector<16x1xf32>
    %155 = vector.broadcast %147 : vector<16x1xf32> to vector<16x128xf32>
    %156 = arith.subf %139, %155 : vector<16x128xf32>
    %cst_69 = arith.constant 9.99999974E-6 : f32
    %157 = vector.broadcast %cst_69 : f32 to vector<16x1xf32>
    %158 = arith.addf %154, %157 : vector<16x1xf32>
    %159 = math.rsqrt %158 : vector<16x1xf32>
    %160 = vector.broadcast %159 : vector<16x1xf32> to vector<16x128xf32>
    %161 = arith.mulf %156, %160 : vector<16x128xf32>
    %162 = vector.broadcast %141 : vector<1x128xf32> to vector<16x128xf32>
    %163 = arith.mulf %161, %162 : vector<16x128xf32>
    %164 = vector.broadcast %143 : vector<1x128xf32> to vector<16x128xf32>
    %165 = arith.addf %163, %164 : vector<16x128xf32>
    %166 = arith.truncf %165 : vector<16x128xf32> to vector<16x128xbf16>
    %c1_70 = arith.constant 1 : index
    %c0_71 = arith.constant 0 : index
    %c0_72 = arith.constant 0 : index
    %167 = vector.load %arg4[%c1_70, %c0_71, %c0_72] : memref<2x128x384xbf16, #tpu.memory_space<vmem>>, vector<1x128x384xbf16>
    %168 = vector.shape_cast %167 : vector<1x128x384xbf16> to vector<128x384xbf16>
    %cst_73 = arith.constant dense<0.000000e+00> : vector<16x384xf32>
    %169 = tpu.matmul %166, %168, %cst_73 {dimension_numbers = #tpu.dot_dimension_numbers<[1], [0], [0], [1], [0, 0, 1, 1], [], []>} : vector<16x128xbf16>, vector<128x384xbf16>, vector<16x384xf32> -> vector<16x384xf32>
    %c1_74 = arith.constant 1 : index
    %c0_75 = arith.constant 0 : index
    %c0_76 = arith.constant 0 : index
    %170 = vector.load %arg5[%c1_74, %c0_75, %c0_76] : memref<2x1x384xf32, #tpu.memory_space<vmem>>, vector<1x1x384xf32>
    %171 = vector.shape_cast %170 : vector<1x1x384xf32> to vector<1x384xf32>
    %172 = vector.broadcast %171 : vector<1x384xf32> to vector<16x384xf32>
    %173 = arith.addf %169, %172 : vector<16x384xf32>
    %174 = vector.extract_strided_slice %173 {offsets = [0, 0], sizes = [16, 128], strides = [1, 1]} : vector<16x384xf32> to vector<16x128xf32>
    %175 = vector.shape_cast %174 : vector<16x128xf32> to vector<1x16x4x32xf32>
    %176 = tpu.transpose %175, [0, 2, 1, 3] : vector<1x16x4x32xf32> -> vector<1x4x16x32xf32>
    %177 = vector.shape_cast %176 : vector<1x4x16x32xf32> to vector<4x16x32xf32>
    %178 = arith.truncf %177 : vector<4x16x32xf32> to vector<4x16x32xbf16>
    %179 = vector.extract_strided_slice %173 {offsets = [0, 128], sizes = [16, 128], strides = [1, 1]} : vector<16x384xf32> to vector<16x128xf32>
    %180 = vector.shape_cast %179 : vector<16x128xf32> to vector<1x16x4x32xf32>
    %181 = tpu.transpose %180, [0, 2, 1, 3] : vector<1x16x4x32xf32> -> vector<1x4x16x32xf32>
    %182 = vector.shape_cast %181 : vector<1x4x16x32xf32> to vector<4x16x32xf32>
    %183 = arith.truncf %182 : vector<4x16x32xf32> to vector<4x16x32xbf16>
    %184 = vector.extract_strided_slice %173 {offsets = [0, 256], sizes = [16, 128], strides = [1, 1]} : vector<16x384xf32> to vector<16x128xf32>
    %185 = vector.shape_cast %184 : vector<16x128xf32> to vector<1x16x4x32xf32>
    %186 = tpu.transpose %185, [0, 2, 1, 3] : vector<1x16x4x32xf32> -> vector<1x4x16x32xf32>
    %187 = vector.shape_cast %186 : vector<1x4x16x32xf32> to vector<4x16x32xf32>
    %188 = arith.truncf %187 : vector<4x16x32xf32> to vector<4x16x32xbf16>
    "tpu.trace_start"() <{level = 10 : i32, message = "bqd,bkd->bqk"}> : () -> ()
    %cst_77 = arith.constant dense<0.000000e+00> : vector<4x16x16xf32>
    %189 = tpu.matmul %178, %183, %cst_77 {dimension_numbers = #tpu.dot_dimension_numbers<[2], [2], [1], [1], [0, 0, 0, 1, 1, 1], [0], [0]>} : vector<4x16x32xbf16>, vector<4x16x32xbf16>, vector<4x16x16xf32> -> vector<4x16x16xf32>
    %cst_78 = arith.constant -1.000000e+30 : f32
    "tpu.trace_stop"() : () -> ()
    %190 = vector.shape_cast %5 : vector<1x16x16xi1> to vector<1x16x16xi1>
    %191 = vector.broadcast %190 : vector<1x16x16xi1> to vector<4x16x16xi1>
    %192 = vector.broadcast %cst_78 : f32 to vector<4x16x16xf32>
    %193 = arith.select %191, %189, %192 : vector<4x16x16xi1>, vector<4x16x16xf32>
    %cst_79 = arith.constant dense<0xFF800000> : vector<4x16xf32>
    %194 = vector.multi_reduction <maximumf>, %193, %cst_79 [2] : vector<4x16x16xf32> to vector<4x16xf32>
    %195 = vector.shape_cast %194 : vector<4x16xf32> to vector<4x16x1xf32>
    %196 = vector.broadcast %195 : vector<4x16x1xf32> to vector<4x16x16xf32>
    %197 = arith.subf %193, %196 : vector<4x16x16xf32>
    %198 = math.exp %197 : vector<4x16x16xf32>
    %cst_80 = arith.constant dense<0.000000e+00> : vector<4x16xf32>
    %199 = vector.multi_reduction <add>, %198, %cst_80 [2] : vector<4x16x16xf32> to vector<4x16xf32>
    %200 = vector.shape_cast %199 : vector<4x16xf32> to vector<4x16x1xf32>
    %201 = tpu.reciprocal %200 {approx = true} : vector<4x16x1xf32> -> vector<4x16x1xf32>
    %202 = vector.broadcast %201 : vector<4x16x1xf32> to vector<4x16x16xf32>
    %203 = arith.mulf %198, %202 : vector<4x16x16xf32>
    %204 = arith.truncf %203 : vector<4x16x16xf32> to vector<4x16x16xbf16>
    "tpu.trace_start"() <{level = 10 : i32, message = "bqk,bkd->bqd"}> : () -> ()
    %cst_81 = arith.constant dense<0.000000e+00> : vector<4x16x32xf32>
    %205 = tpu.matmul %204, %188, %cst_81 {dimension_numbers = #tpu.dot_dimension_numbers<[2], [1], [1], [2], [0, 0, 0, 1, 1, 2], [0], [0]>} : vector<4x16x16xbf16>, vector<4x16x32xbf16>, vector<4x16x32xf32> -> vector<4x16x32xf32>
    "tpu.trace_stop"() : () -> ()
    %206 = vector.shape_cast %205 : vector<4x16x32xf32> to vector<1x4x16x32xf32>
    %207 = tpu.transpose %206, [0, 2, 1, 3] : vector<1x4x16x32xf32> -> vector<1x16x4x32xf32>
    %208 = vector.shape_cast %207 : vector<1x16x4x32xf32> to vector<16x128xf32>
    %209 = arith.truncf %208 : vector<16x128xf32> to vector<16x128xbf16>
    %c1_82 = arith.constant 1 : index
    %c0_83 = arith.constant 0 : index
    %c0_84 = arith.constant 0 : index
    %210 = vector.load %arg6[%c1_82, %c0_83, %c0_84] : memref<2x128x128xbf16, #tpu.memory_space<vmem>>, vector<1x128x128xbf16>
    %211 = vector.shape_cast %210 : vector<1x128x128xbf16> to vector<128x128xbf16>
    %cst_85 = arith.constant dense<0.000000e+00> : vector<16x128xf32>
    %212 = tpu.matmul %209, %211, %cst_85 {dimension_numbers = #tpu.dot_dimension_numbers<[1], [0], [0], [1], [0, 0, 1, 1], [], []>} : vector<16x128xbf16>, vector<128x128xbf16>, vector<16x128xf32> -> vector<16x128xf32>
    %c1_86 = arith.constant 1 : index
    %c0_87 = arith.constant 0 : index
    %c0_88 = arith.constant 0 : index
    %213 = vector.load %arg7[%c1_86, %c0_87, %c0_88] : memref<2x1x128xf32, #tpu.memory_space<vmem>>, vector<1x1x128xf32>
    %214 = vector.shape_cast %213 : vector<1x1x128xf32> to vector<1x128xf32>
    %215 = vector.broadcast %214 : vector<1x128xf32> to vector<16x128xf32>
    %216 = arith.addf %212, %215 : vector<16x128xf32>
    %217 = arith.addf %139, %216 : vector<16x128xf32>
    %c1_89 = arith.constant 1 : index
    %c0_90 = arith.constant 0 : index
    %c0_91 = arith.constant 0 : index
    %218 = vector.load %arg8[%c1_89, %c0_90, %c0_91] : memref<2x1x128xf32, #tpu.memory_space<vmem>>, vector<1x1x128xf32>
    %219 = vector.shape_cast %218 : vector<1x1x128xf32> to vector<1x128xf32>
    %c1_92 = arith.constant 1 : index
    %c0_93 = arith.constant 0 : index
    %c0_94 = arith.constant 0 : index
    %220 = vector.load %arg9[%c1_92, %c0_93, %c0_94] : memref<2x1x128xf32, #tpu.memory_space<vmem>>, vector<1x1x128xf32>
    %221 = vector.shape_cast %220 : vector<1x1x128xf32> to vector<1x128xf32>
    %cst_95 = arith.constant dense<0.000000e+00> : vector<16xf32>
    %222 = vector.multi_reduction <add>, %217, %cst_95 [1] : vector<16x128xf32> to vector<16xf32>
    %223 = vector.shape_cast %222 : vector<16xf32> to vector<16x1xf32>
    %cst_96 = arith.constant 1.280000e+02 : f32
    %224 = vector.broadcast %cst_96 : f32 to vector<16x1xf32>
    %225 = arith.divf %223, %224 : vector<16x1xf32>
    %226 = vector.broadcast %225 : vector<16x1xf32> to vector<16x128xf32>
    %227 = arith.subf %217, %226 : vector<16x128xf32>
    %228 = arith.mulf %227, %227 : vector<16x128xf32>
    %cst_97 = arith.constant dense<0.000000e+00> : vector<16xf32>
    %229 = vector.multi_reduction <add>, %228, %cst_97 [1] : vector<16x128xf32> to vector<16xf32>
    %230 = vector.shape_cast %229 : vector<16xf32> to vector<16x1xf32>
    %cst_98 = arith.constant 1.280000e+02 : f32
    %231 = vector.broadcast %cst_98 : f32 to vector<16x1xf32>
    %232 = arith.divf %230, %231 : vector<16x1xf32>
    %233 = vector.broadcast %225 : vector<16x1xf32> to vector<16x128xf32>
    %234 = arith.subf %217, %233 : vector<16x128xf32>
    %cst_99 = arith.constant 9.99999974E-6 : f32
    %235 = vector.broadcast %cst_99 : f32 to vector<16x1xf32>
    %236 = arith.addf %232, %235 : vector<16x1xf32>
    %237 = math.rsqrt %236 : vector<16x1xf32>
    %238 = vector.broadcast %237 : vector<16x1xf32> to vector<16x128xf32>
    %239 = arith.mulf %234, %238 : vector<16x128xf32>
    %240 = vector.broadcast %219 : vector<1x128xf32> to vector<16x128xf32>
    %241 = arith.mulf %239, %240 : vector<16x128xf32>
    %242 = vector.broadcast %221 : vector<1x128xf32> to vector<16x128xf32>
    %243 = arith.addf %241, %242 : vector<16x128xf32>
    %244 = arith.truncf %243 : vector<16x128xf32> to vector<16x128xbf16>
    %c1_100 = arith.constant 1 : index
    %c0_101 = arith.constant 0 : index
    %c0_102 = arith.constant 0 : index
    %245 = vector.load %arg10[%c1_100, %c0_101, %c0_102] : memref<2x128x512xbf16, #tpu.memory_space<vmem>>, vector<1x128x512xbf16>
    %246 = vector.shape_cast %245 : vector<1x128x512xbf16> to vector<128x512xbf16>
    %cst_103 = arith.constant dense<0.000000e+00> : vector<16x512xf32>
    %247 = tpu.matmul %244, %246, %cst_103 {dimension_numbers = #tpu.dot_dimension_numbers<[1], [0], [0], [1], [0, 0, 1, 1], [], []>} : vector<16x128xbf16>, vector<128x512xbf16>, vector<16x512xf32> -> vector<16x512xf32>
    %c1_104 = arith.constant 1 : index
    %c0_105 = arith.constant 0 : index
    %c0_106 = arith.constant 0 : index
    %248 = vector.load %arg11[%c1_104, %c0_105, %c0_106] : memref<2x1x512xf32, #tpu.memory_space<vmem>>, vector<1x1x512xf32>
    %249 = vector.shape_cast %248 : vector<1x1x512xf32> to vector<1x512xf32>
    %250 = vector.broadcast %249 : vector<1x512xf32> to vector<16x512xf32>
    %251 = arith.addf %247, %250 : vector<16x512xf32>
    %252 = arith.truncf %251 : vector<16x512xf32> to vector<16x512xbf16>
    %cst_107 = arith.constant 5.000000e-01 : bf16
    %253 = vector.broadcast %cst_107 : bf16 to vector<16x512xbf16>
    %254 = arith.mulf %253, %252 : vector<16x512xbf16>
    %cst_108 = arith.constant 4.467770e-02 : bf16
    %255 = vector.broadcast %cst_108 : bf16 to vector<16x512xbf16>
    %256 = arith.mulf %255, %252 : vector<16x512xbf16>
    %257 = arith.mulf %256, %252 : vector<16x512xbf16>
    %258 = arith.mulf %257, %252 : vector<16x512xbf16>
    %259 = arith.addf %252, %258 : vector<16x512xbf16>
    %cst_109 = arith.constant 7.968750e-01 : bf16
    %260 = vector.broadcast %cst_109 : bf16 to vector<16x512xbf16>
    %261 = arith.mulf %260, %259 : vector<16x512xbf16>
    %262 = math.tanh %261 : vector<16x512xbf16>
    %cst_110 = arith.constant 1.000000e+00 : bf16
    %263 = vector.broadcast %cst_110 : bf16 to vector<16x512xbf16>
    %264 = arith.addf %263, %262 : vector<16x512xbf16>
    %265 = arith.mulf %254, %264 : vector<16x512xbf16>
    %c1_111 = arith.constant 1 : index
    %c0_112 = arith.constant 0 : index
    %c0_113 = arith.constant 0 : index
    %266 = vector.load %arg12[%c1_111, %c0_112, %c0_113] : memref<2x512x128xbf16, #tpu.memory_space<vmem>>, vector<1x512x128xbf16>
    %267 = vector.shape_cast %266 : vector<1x512x128xbf16> to vector<512x128xbf16>
    %cst_114 = arith.constant dense<0.000000e+00> : vector<16x128xf32>
    %268 = tpu.matmul %265, %267, %cst_114 {dimension_numbers = #tpu.dot_dimension_numbers<[1], [0], [0], [1], [0, 0, 1, 1], [], []>} : vector<16x512xbf16>, vector<512x128xbf16>, vector<16x128xf32> -> vector<16x128xf32>
    %c1_115 = arith.constant 1 : index
    %c0_116 = arith.constant 0 : index
    %c0_117 = arith.constant 0 : index
    %269 = vector.load %arg13[%c1_115, %c0_116, %c0_117] : memref<2x1x128xf32, #tpu.memory_space<vmem>>, vector<1x1x128xf32>
    %270 = vector.shape_cast %269 : vector<1x1x128xf32> to vector<1x128xf32>
    %271 = vector.broadcast %270 : vector<1x128xf32> to vector<16x128xf32>
    %272 = arith.addf %268, %271 : vector<16x128xf32>
    %273 = arith.addf %217, %272 : vector<16x128xf32>
    %c0_118 = arith.constant 0 : index
    %c0_119 = arith.constant 0 : index
    %274 = vector.load %arg14[%c0_118, %c0_119] : memref<1x128xf32, #tpu.memory_space<vmem>>, vector<1x128xf32>
    %c0_120 = arith.constant 0 : index
    %c0_121 = arith.constant 0 : index
    %275 = vector.load %arg15[%c0_120, %c0_121] : memref<1x128xf32, #tpu.memory_space<vmem>>, vector<1x128xf32>
    %cst_122 = arith.constant dense<0.000000e+00> : vector<16xf32>
    %276 = vector.multi_reduction <add>, %273, %cst_122 [1] : vector<16x128xf32> to vector<16xf32>
    %277 = vector.shape_cast %276 : vector<16xf32> to vector<16x1xf32>
    %cst_123 = arith.constant 1.280000e+02 : f32
    %278 = vector.broadcast %cst_123 : f32 to vector<16x1xf32>
    %279 = arith.divf %277, %278 : vector<16x1xf32>
    %280 = vector.broadcast %279 : vector<16x1xf32> to vector<16x128xf32>
    %281 = arith.subf %273, %280 : vector<16x128xf32>
    %282 = arith.mulf %281, %281 : vector<16x128xf32>
    %cst_124 = arith.constant dense<0.000000e+00> : vector<16xf32>
    %283 = vector.multi_reduction <add>, %282, %cst_124 [1] : vector<16x128xf32> to vector<16xf32>
    %284 = vector.shape_cast %283 : vector<16xf32> to vector<16x1xf32>
    %cst_125 = arith.constant 1.280000e+02 : f32
    %285 = vector.broadcast %cst_125 : f32 to vector<16x1xf32>
    %286 = arith.divf %284, %285 : vector<16x1xf32>
    %287 = vector.broadcast %279 : vector<16x1xf32> to vector<16x128xf32>
    %288 = arith.subf %273, %287 : vector<16x128xf32>
    %cst_126 = arith.constant 9.99999974E-6 : f32
    %289 = vector.broadcast %cst_126 : f32 to vector<16x1xf32>
    %290 = arith.addf %286, %289 : vector<16x1xf32>
    %291 = math.rsqrt %290 : vector<16x1xf32>
    %292 = vector.broadcast %291 : vector<16x1xf32> to vector<16x128xf32>
    %293 = arith.mulf %288, %292 : vector<16x128xf32>
    %294 = vector.broadcast %274 : vector<1x128xf32> to vector<16x128xf32>
    %295 = arith.mulf %293, %294 : vector<16x128xf32>
    %296 = vector.broadcast %275 : vector<1x128xf32> to vector<16x128xf32>
    %297 = arith.addf %295, %296 : vector<16x128xf32>
    %c0_127 = arith.constant 0 : index
    %c0_128 = arith.constant 0 : index
    %298 = vector.load %arg16[%c0_127, %c0_128] : memref<1x128xf32, #tpu.memory_space<vmem>>, vector<1x128xf32>
    %c0_129 = arith.constant 0 : index
    %c0_130 = arith.constant 0 : index
    %299 = vector.load %arg17[%c0_129, %c0_130] : memref<1x128xf32, #tpu.memory_space<vmem>>, vector<1x128xf32>
    %cst_131 = arith.constant dense<0.000000e+00> : vector<16xf32>
    %300 = vector.multi_reduction <add>, %297, %cst_131 [1] : vector<16x128xf32> to vector<16xf32>
    %301 = vector.shape_cast %300 : vector<16xf32> to vector<16x1xf32>
    %cst_132 = arith.constant 1.280000e+02 : f32
    %302 = vector.broadcast %cst_132 : f32 to vector<16x1xf32>
    %303 = arith.divf %301, %302 : vector<16x1xf32>
    %304 = vector.broadcast %303 : vector<16x1xf32> to vector<16x128xf32>
    %305 = arith.subf %297, %304 : vector<16x128xf32>
    %306 = arith.mulf %305, %305 : vector<16x128xf32>
    %cst_133 = arith.constant dense<0.000000e+00> : vector<16xf32>
    %307 = vector.multi_reduction <add>, %306, %cst_133 [1] : vector<16x128xf32> to vector<16xf32>
    %308 = vector.shape_cast %307 : vector<16xf32> to vector<16x1xf32>
    %cst_134 = arith.constant 1.280000e+02 : f32
    %309 = vector.broadcast %cst_134 : f32 to vector<16x1xf32>
    %310 = arith.divf %308, %309 : vector<16x1xf32>
    %311 = vector.broadcast %303 : vector<16x1xf32> to vector<16x128xf32>
    %312 = arith.subf %297, %311 : vector<16x128xf32>
    %cst_135 = arith.constant 9.99999974E-6 : f32
    %313 = vector.broadcast %cst_135 : f32 to vector<16x1xf32>
    %314 = arith.addf %310, %313 : vector<16x1xf32>
    %315 = math.rsqrt %314 : vector<16x1xf32>
    %316 = vector.broadcast %315 : vector<16x1xf32> to vector<16x128xf32>
    %317 = arith.mulf %312, %316 : vector<16x128xf32>
    %318 = vector.broadcast %298 : vector<1x128xf32> to vector<16x128xf32>
    %319 = arith.mulf %317, %318 : vector<16x128xf32>
    %320 = vector.broadcast %299 : vector<1x128xf32> to vector<16x128xf32>
    %321 = arith.addf %319, %320 : vector<16x128xf32>
    %322 = arith.truncf %321 : vector<16x128xf32> to vector<16x128xbf16>
    %c0_136 = arith.constant 0 : index
    %c0_137 = arith.constant 0 : index
    %323 = vector.load %arg18[%c0_136, %c0_137] : memref<128x640xbf16, #tpu.memory_space<vmem>>, vector<128x640xbf16>
    %cst_138 = arith.constant dense<0.000000e+00> : vector<16x640xf32>
    %324 = tpu.matmul %322, %323, %cst_138 {dimension_numbers = #tpu.dot_dimension_numbers<[1], [0], [0], [1], [0, 0, 1, 1], [], []>} : vector<16x128xbf16>, vector<128x640xbf16>, vector<16x640xf32> -> vector<16x640xf32>
    %c0_139 = arith.constant 0 : index
    %c0_140 = arith.constant 0 : index
    %325 = vector.load %arg19[%c0_139, %c0_140] : memref<1x640xf32, #tpu.memory_space<vmem>>, vector<1x640xf32>
    %326 = vector.broadcast %325 : vector<1x640xf32> to vector<16x640xf32>
    %327 = arith.addf %324, %326 : vector<16x640xf32>
    %328 = vector.shape_cast %327 : vector<16x640xf32> to vector<1x16x640xf32>
    %c0_141 = arith.constant 0 : index
    %c0_142 = arith.constant 0 : index
    %c0_143 = arith.constant 0 : index
    %329 = vector.load %arg20[%c0_141, %c0_142, %c0_143] : memref<1x16x640xf32, #tpu.memory_space<vmem>>, vector<1x16x640xf32>
    tpu.vector_store %arg20[%c0_141, %c0_142, %c0_143], %328 {strides = array<i32>} : memref<1x16x640xf32, #tpu.memory_space<vmem>>, vector<1x16x640xf32>,
    return
  }
  func.func @transform_0(%arg0: i32) -> (i32, i32, i32) {
    %c0_i32 = arith.constant 0 : i32
    %c0_i32_0 = arith.constant 0 : i32
    %c0_i32_1 = arith.constant 0 : i32
    return %arg0, %c0_i32, %c0_i32_0 : i32, i32, i32
  }
  func.func @transform_1(%arg0: i32) -> (i32, i32, i32) {
    %c0_i32 = arith.constant 0 : i32
    %c0_i32_0 = arith.constant 0 : i32
    %c0_i32_1 = arith.constant 0 : i32
    %c0_i32_2 = arith.constant 0 : i32
    return %c0_i32, %c0_i32_0, %c0_i32_1 : i32, i32, i32
  }
  func.func @transform_2(%arg0: i32) -> (i32, i32, i32) {
    %c0_i32 = arith.constant 0 : i32
    %c0_i32_0 = arith.constant 0 : i32
    %c0_i32_1 = arith.constant 0 : i32
    %c0_i32_2 = arith.constant 0 : i32
    return %c0_i32, %c0_i32_0, %c0_i32_1 : i32, i32, i32
  }
  func.func @transform_3(%arg0: i32) -> (i32, i32, i32) {
    %c0_i32 = arith.constant 0 : i32
    %c0_i32_0 = arith.constant 0 : i32
    %c0_i32_1 = arith.constant 0 : i32
    %c0_i32_2 = arith.constant 0 : i32
    return %c0_i32, %c0_i32_0, %c0_i32_1 : i32, i32, i32
  }
  func.func @transform_4(%arg0: i32) -> (i32, i32, i32) {
    %c0_i32 = arith.constant 0 : i32
    %c0_i32_0 = arith.constant 0 : i32
    %c0_i32_1 = arith.constant 0 : i32
    %c0_i32_2 = arith.constant 0 : i32
    return %c0_i32, %c0_i32_0, %c0_i32_1 : i32, i32, i32
  }
  func.func @transform_5(%arg0: i32) -> (i32, i32, i32) {
    %c0_i32 = arith.constant 0 : i32
    %c0_i32_0 = arith.constant 0 : i32
    %c0_i32_1 = arith.constant 0 : i32
    %c0_i32_2 = arith.constant 0 : i32
    return %c0_i32, %c0_i32_0, %c0_i32_1 : i32, i32, i32
  }
  func.func @transform_6(%arg0: i32) -> (i32, i32, i32) {
    %c0_i32 = arith.constant 0 : i32
    %c0_i32_0 = arith.constant 0 : i32
    %c0_i32_1 = arith.constant 0 : i32
    %c0_i32_2 = arith.constant 0 : i32
    return %c0_i32, %c0_i32_0, %c0_i32_1 : i32, i32, i32
  }
  func.func @transform_7(%arg0: i32) -> (i32, i32, i32) {
    %c0_i32 = arith.constant 0 : i32
    %c0_i32_0 = arith.constant 0 : i32
    %c0_i32_1 = arith.constant 0 : i32
    %c0_i32_2 = arith.constant 0 : i32
    return %c0_i32, %c0_i32_0, %c0_i32_1 : i32, i32, i32
  }
  func.func @transform_8(%arg0: i32) -> (i32, i32, i32) {
    %c0_i32 = arith.constant 0 : i32
    %c0_i32_0 = arith.constant 0 : i32
    %c0_i32_1 = arith.constant 0 : i32
    %c0_i32_2 = arith.constant 0 : i32
    return %c0_i32, %c0_i32_0, %c0_i32_1 : i32, i32, i32
  }
  func.func @transform_9(%arg0: i32) -> (i32, i32, i32) {
    %c0_i32 = arith.constant 0 : i32
    %c0_i32_0 = arith.constant 0 : i32
    %c0_i32_1 = arith.constant 0 : i32
    %c0_i32_2 = arith.constant 0 : i32
    return %c0_i32, %c0_i32_0, %c0_i32_1 : i32, i32, i32
  }
  func.func @transform_10(%arg0: i32) -> (i32, i32, i32) {
    %c0_i32 = arith.constant 0 : i32
    %c0_i32_0 = arith.constant 0 : i32
    %c0_i32_1 = arith.constant 0 : i32
    %c0_i32_2 = arith.constant 0 : i32
    return %c0_i32, %c0_i32_0, %c0_i32_1 : i32, i32, i32
  }
  func.func @transform_11(%arg0: i32) -> (i32, i32, i32) {
    %c0_i32 = arith.constant 0 : i32
    %c0_i32_0 = arith.constant 0 : i32
    %c0_i32_1 = arith.constant 0 : i32
    %c0_i32_2 = arith.constant 0 : i32
    return %c0_i32, %c0_i32_0, %c0_i32_1 : i32, i32, i32
  }
  func.func @transform_12(%arg0: i32) -> (i32, i32, i32) {
    %c0_i32 = arith.constant 0 : i32
    %c0_i32_0 = arith.constant 0 : i32
    %c0_i32_1 = arith.constant 0 : i32
    %c0_i32_2 = arith.constant 0 : i32
    return %c0_i32, %c0_i32_0, %c0_i32_1 : i32, i32, i32
  }
  func.func @transform_13(%arg0: i32) -> (i32, i32) {
    %c0_i32 = arith.constant 0 : i32
    %c0_i32_0 = arith.constant 0 : i32
    %c0_i32_1 = arith.constant 0 : i32
    return %c0_i32, %c0_i32_0 : i32, i32
  }
  func.func @transform_14(%arg0: i32) -> (i32, i32) {
    %c0_i32 = arith.constant 0 : i32
    %c0_i32_0 = arith.constant 0 : i32
    %c0_i32_1 = arith.constant 0 : i32
    return %c0_i32, %c0_i32_0 : i32, i32
  }
  func.func @transform_15(%arg0: i32) -> (i32, i32) {
    %c0_i32 = arith.constant 0 : i32
    %c0_i32_0 = arith.constant 0 : i32
    %c0_i32_1 = arith.constant 0 : i32
    return %c0_i32, %c0_i32_0 : i32, i32
  }
  func.func @transform_16(%arg0: i32) -> (i32, i32) {
    %c0_i32 = arith.constant 0 : i32
    %c0_i32_0 = arith.constant 0 : i32
    %c0_i32_1 = arith.constant 0 : i32
    return %c0_i32, %c0_i32_0 : i32, i32
  }
  func.func @transform_17(%arg0: i32) -> (i32, i32) {
    %c0_i32 = arith.constant 0 : i32
    %c0_i32_0 = arith.constant 0 : i32
    %c0_i32_1 = arith.constant 0 : i32
    return %c0_i32, %c0_i32_0 : i32, i32
  }
  func.func @transform_18(%arg0: i32) -> (i32, i32) {
    %c0_i32 = arith.constant 0 : i32
    %c0_i32_0 = arith.constant 0 : i32
    %c0_i32_1 = arith.constant 0 : i32
    return %c0_i32, %c0_i32_0 : i32, i32
  }
  func.func @transform_19(%arg0: i32) -> (i32, i32, i32) {
    %c0_i32 = arith.constant 0 : i32
    %c0_i32_0 = arith.constant 0 : i32
    %c0_i32_1 = arith.constant 0 : i32
    return %arg0, %c0_i32, %c0_i32_0 : i32, i32, i32
  }
}

</mosaic_0001>

<bundles_post_ra>
// kernel: gpt_model_cifar_forward.1
= control target key start
LH: loop header
LB: loop body
LE: loop exit
PB: predicated region body
PF: predicated region fallthrough
CT: control target
= control target key end

     0   :  { %s10533_s0 = inlined_call_operand.vmem [shape: f32[2,16,128], index: 0, kind: input, shape index: {}]   ;;  %s10534_s1 = inlined_call_operand.vmem [shape: f32[2,1,128], index: 1, kind: input, shape index: {}]   ;;  %s10535_s2 = inlined_call_operand.hbm [shape: f32[2,1,128], index: 2, kind: input, shape index: {}]   ;;  %s10536_s3 = inlined_call_operand.hbm [shape: bf16[2,128,384], index: 3, kind: input, shape index: {}]   ;;  %s10537_s4 = inlined_call_operand.hbm [shape: f32[2,1,384], index: 4, kind: input, shape index: {}]   ;;  %s10538_s5 = inlined_call_operand.vmem [shape: bf16[2,128,128], index: 5, kind: input, shape index: {}]   ;;  %s10539_s6 = inlined_call_operand.hbm [shape: f32[2,1,128], index: 6, kind: input, shape index: {}]   ;;  %s10540_s7 = inlined_call_operand.hbm [shape: f32[2,1,128], index: 7, kind: input, shape index: {}]   ;;  %s10541_s8 = inlined_call_operand.hbm [shape: f32[2,1,128], index: 8, kind: input, shape index: {}]   ;;  %s10542_s9 = inlined_call_operand.vmem [shape: bf16[2,128,512], index: 9, kind: input, shape index: {}]   ;;  %s10543_s10 = inlined_call_operand.hbm [shape: f32[2,1,512], index: 10, kind: input, shape index: {}]   ;;  %s10544_s11 = inlined_call_operand.hbm [shape: bf16[2,512,128], index: 11, kind: input, shape index: {}]   ;;  %s10545_s12 = inlined_call_operand.vmem [shape: f32[2,1,128], index: 12, kind: input, shape index: {}]   ;;  %s10546_s13 = inlined_call_operand.hbm [shape: f32[1,128], index: 13, kind: input, shape index: {}]   ;;  %s10547_s14 = inlined_call_operand.hbm [shape: f32[1,128], index: 14, kind: input, shape index: {}]   ;;  %s10548_s15 = inlined_call_operand.hbm [shape: f32[1,128], index: 15, kind: input, shape index: {}]   ;;  %s10549_s16 = inlined_call_operand.hbm [shape: f32[1,128], index: 16, kind: input, shape index: {}]   ;;  %s10550_s17 = inlined_call_operand.hbm [shape: bf16[128,640], index: 17, kind: input, shape index: {}]   ;;  %s10551_s18 = inlined_call_operand.hbm [shape: f32[1,640], index: 18, kind: input, shape index: {}]   ;;  %s10552_s19 = inlined_call_operand.vmem [shape: f32[2,16,640], index: 19, kind: output, shape index: {}]  }
   0x1   :  { %10567 = sst [smem:[#allocation33_spill]] %s10533_s0 }
   0x2   :  { %10568 = sst [smem:[#allocation34_spill]] %s10534_s1 }
   0x3   :  { %10569 = sst [smem:[#allocation35_spill]] %s10535_s2 }
   0x4   :  { %10570 = sst [smem:[#allocation36_spill]] %s10536_s3 }
   0x5   :  { %10571 = sst [smem:[#allocation37_spill]] %s10538_s5 }
   0x6   :  { %10572 = sst [smem:[#allocation38_spill]] %s10539_s6 }
   0x7   :  { %10573 = sst [smem:[#allocation39_spill]] %s10541_s8 }
   0x8   :  { %10574 = sst [smem:[#allocation40_spill]] %s10542_s9 }
   0x9   :  { %10575 = sst [smem:[#allocation41_spill]] %s10544_s11 }
   0xa   :  { %10576 = sst [smem:[#allocation42_spill]] %s10545_s12 }
   0xb   :  { %10577 = sst [smem:[#allocation43_spill]] %s10547_s14 }
   0xc   :  { %10578 = sst [smem:[#allocation44_spill]] %s10552_s19 }
   0xd   :  { %24 = vsyncpa [#allocation3], 0 }
   0xe   :  { %25 = vsyncpa [#allocation5], 0 }
   0xf   :  { %26 = vsyncpa [#allocation8], 0 }
  0x10   :  { %27 = vsyncpa [#allocation11], 0 }
  0x11   :  { %28 = vsyncpa [#allocation14], 0 }
  0x12   :  { %29 = vsyncpa [#allocation17], 0 }
  0x13   :  { %30 = vsyncpa [#allocation20], 0 }
  0x14   :  { %31 = vsyncpa [#allocation23], 0  ;;  %s9032_s0 = smov 0  }
  0x15 LB: > { %10579 = sst [smem:[#allocation32_spill]] %s8898_s0  ;;  %s8900_s30 = smov [#allocation4]   ;;  %s8898_s0 = sphi %s9032_s0, %s37_s0  }
  0x16   : > { %s500_s20 = sshll.u32 %s8900_s30, 4  ;;  %s9038_s21 = sadd.s32 4294967295, %s8898_s0   ;;  %s9043_s20 = int_to_ptr.vmem [resolvable:$true] %s500_s20 }
  0x17   : > { %p7124_p0 = scmp.ge.s32.totalorder %s8898_s0, 1  ;;  %p472_p1 = scmp.lt.s32.totalorder %s8898_s0, 3 }
  0x18   : > { %p10560_p2 = scmp.eq.s32.totalorder %s9038_s21, 0  ;;  %s8901_s2 = smov [#allocation7]  }
  0x19   : > { %p9045_p3 = pnand %p7124_p0, %p472_p1  ;;  %s529_s23 = sshll.u32 %s8901_s2, 4  ;;  %s9057_s23 = int_to_ptr.vmem [resolvable:$true] %s529_s23 }
  0x1a   : > { %s8902_s24 = smov [#allocation10]   ;;  %s10582_s27 = sld [smem:[#allocation36_spill]] }
  0x1b   : > { %s10580_s1 = scalar_select %p9045_p3, 1, 0 }
  0x1c   : > { %p7925_p4 = pneg %p9045_p3  ;;  %s555_s25 = sshll.u32 %s8902_s24, 4  ;;  %s9059_s25 = int_to_ptr.vmem [resolvable:$true] %s555_s25 }
  0x1e   : > { %p9053_p5 = pnand %p10560_p2, %p7925_p4 }
  0x20   : > { %s8468_s28 = scalar_lea.hbm %s10582_s27, 6144  ;;  %p9069_p7 = pneg %p9053_p5 }
  0x21   : > { %p8469_p6 = scmp.ne.s32.totalorder %s10582_s27, %s8468_s28  ;;  %p8475_p10 = scmp.lt.u32.totalorder %s8468_s28, %s10582_s27 }
  0x23   : > { %p8471_p8 = pnand %p9069_p7, %p8469_p6 }
  0x25   : > { %p8472_p9 = pneg %p8471_p8 }
  0x27   : > { %p8477_p11 = pnand %p8475_p10, %p8472_p9 }
  0x29   : > { %8480 = shalt.err (!%p8477_p11)
}
  0x2a   : > { %s8481_s3 = scalar_lea.vmem %s9043_s20, 6144  ;;  %p8489_p1 = scmp.lt.s32.totalorder %s9043_s20, %s9043_s20 }
  0x2b   : > { %p8482_p12 = scmp.ne.s32.totalorder %s9043_s20, %s8481_s3  ;;  %p8490_p4 = scmp.lt.s32.totalorder %s8481_s3, %s8481_s3 }
  0x2d   : > { %p8484_p13 = pnand %p8482_p12, %p9069_p7  ;;  %p8491_p6 = por %p8490_p4, %p8489_p1 }
  0x2f   : > { %p8485_p0 = pneg %p8484_p13 }
  0x31   : > { %p8492_p8 = pnand %p8491_p6, %p8485_p0 }
  0x33   : > { %8495 = shalt.err (!%p8492_p8)
}
  0x34   : > { %s8903_s26 = smov 192   ;;  %s8904_s28 = smov 12  }
  0x35   : > { %7931 = dma.hbm_to_vmem [thread:$0]  (!%p9053_p5), %s10582_s27, 6144, %s9043_s20, [#allocation5], %s8903_s26, %s8903_s26, %s8904_s28  }
  0x36   : > { %s10584_s6 = sld [smem:[#allocation38_spill]] }
  0x3c   : > { %s8496_s19 = scalar_lea.hbm %s10584_s6, 32 }
  0x3d   : > { %p8497_p9 = scmp.ne.s32.totalorder %s10584_s6, %s8496_s19  ;;  %p8503_p12 = scmp.lt.u32.totalorder %s8496_s19, %s10584_s6 }
  0x3f   : > { %p8499_p10 = pnand %p8497_p9, %p9069_p7 }
  0x41   : > { %p8500_p11 = pneg %p8499_p10 }
  0x43   : > { %p8505_p13 = pnand %p8503_p12, %p8500_p11 }
  0x45   : > { %8508 = shalt.err (!%p8505_p13)
}
  0x46   : > { %s8509_s20 = scalar_lea.vmem %s9057_s23, 32  ;;  %p8517_p6 = scmp.lt.s32.totalorder %s9057_s23, %s9057_s23 }
  0x47   : > { %p8510_p0 = scmp.ne.s32.totalorder %s9057_s23, %s8509_s20  ;;  %p8518_p8 = scmp.lt.s32.totalorder %s8509_s20, %s8509_s20 }
  0x49   : > { %p8512_p1 = pnand %p8510_p0, %p9069_p7  ;;  %p8519_p9 = por %p8518_p8, %p8517_p6 }
  0x4b   : > { %p8513_p4 = pneg %p8512_p1 }
  0x4d   : > { %p8520_p10 = pnand %p8519_p9, %p8513_p4 }
  0x4f   : > { %8523 = shalt.err (!%p8520_p10)
}
  0x50   : > { %s10562_s9 = smov 16   ;;  %s10566_s5 = smov 1  }
  0x51   : > { %7937 = dma.hbm_to_vmem [thread:$0]  (!%p9053_p5), %s10584_s6, 32, %s9057_s23, [#allocation8], %s10562_s9, %s10562_s9, %s10566_s5  }
  0x52   : > { %s10585_s8 = sld [smem:[#allocation39_spill]] }
  0x58   : > { %s8524_s29 = scalar_lea.hbm %s10585_s8, 32 }
  0x59   : > { %p8525_p11 = scmp.ne.s32.totalorder %s10585_s8, %s8524_s29  ;;  %p8531_p0 = scmp.lt.u32.totalorder %s8524_s29, %s10585_s8 }
  0x5b   : > { %p8527_p12 = pnand %p8525_p11, %p9069_p7 }
  0x5d   : > { %p8528_p13 = pneg %p8527_p12 }
  0x5f   : > { %p8533_p1 = pnand %p8531_p0, %p8528_p13 }
  0x61   : > { %8536 = shalt.err (!%p8533_p1)
}
  0x62   : > { %s8537_s23 = scalar_lea.vmem %s9059_s25, 32  ;;  %p8545_p9 = scmp.lt.s32.totalorder %s9059_s25, %s9059_s25 }
  0x63   : > { %p8538_p4 = scmp.ne.s32.totalorder %s9059_s25, %s8537_s23  ;;  %p8546_p10 = scmp.lt.s32.totalorder %s8537_s23, %s8537_s23 }
  0x65   : > { %p8540_p6 = pnand %p8538_p4, %p9069_p7  ;;  %p8547_p11 = por %p8546_p10, %p8545_p9 }
  0x67   : > { %p8541_p8 = pneg %p8540_p6 }
  0x69   : > { %p8548_p12 = pnand %p8547_p11, %p8541_p8 }
  0x6b   : > { %8551 = shalt.err (!%p8548_p12)
}
  0x6c   : > { %7943 = dma.hbm_to_vmem [thread:$0]  (!%p9053_p5), %s10585_s8, 32, %s9059_s25, [#allocation11], %s10562_s9, %s10562_s9, %s10566_s5  }
  0x6d   : > { %s8907_s19 = smov [#allocation13]   ;;  %s8908_s28 = smov [#allocation16]  }
  0x6e   : > { %s584_s26 = sshll.u32 %s8907_s19, 4  ;;  %s612_s29 = sshll.u32 %s8908_s28, 4  ;;  %s585_s26 = int_to_ptr.vmem [resolvable:$true] %s584_s26  ;;  %s9142_s29 = int_to_ptr.vmem [resolvable:$true] %s612_s29 }
  0x6f   : > { %s10586_s11 = sld [smem:[#allocation41_spill]] }
  0x75   : > { %s8552_s24 = scalar_lea.hbm %s10586_s11, 8192 }
  0x76   : > { %p8553_p13 = scmp.ne.s32.totalorder %s10586_s11, %s8552_s24  ;;  %p8559_p4 = scmp.lt.u32.totalorder %s8552_s24, %s10586_s11 }
  0x78   : > { %p8555_p0 = pnand %p8553_p13, %p9069_p7 }
  0x7a   : > { %p8556_p1 = pneg %p8555_p0 }
  0x7c   : > { %p8561_p6 = pnand %p8559_p4, %p8556_p1 }
  0x7e   : > { %8564 = shalt.err (!%p8561_p6)
}
  0x7f   : > { %s8565_s12 = scalar_lea.vmem %s585_s26, 8192  ;;  %p8573_p11 = scmp.lt.s32.totalorder %s585_s26, %s585_s26 }
  0x80   : > { %p8566_p8 = scmp.ne.s32.totalorder %s585_s26, %s8565_s12  ;;  %p8574_p12 = scmp.lt.s32.totalorder %s8565_s12, %s8565_s12 }
  0x82   : > { %p8568_p9 = pnand %p8566_p8, %p9069_p7  ;;  %p8575_p2 = por %p8574_p12, %p8573_p11 }
  0x84   : > { %p8569_p10 = pneg %p8568_p9 }
  0x86   : > { %p8576_p3 = pnand %p8575_p2, %p8569_p10 }
  0x88   : > { %8579 = shalt.err (!%p8576_p3)
}
  0x89   : > { %s10564_s19 = smov 64   ;;  %s10565_s28 = smov 4  }
  0x8a   : > { %7949 = dma.hbm_to_vmem [thread:$0]  (!%p9053_p5), %s10586_s11, 8192, %s585_s26, [#allocation14], %s10564_s19, %s10564_s19, %s10565_s28  }
  0x8b   : > { %s10587_s14 = sld [smem:[#allocation43_spill]] }
  0x91   : > { %s8580_s23 = scalar_lea.hbm %s10587_s14, 16 }
  0x92   : > { %p8581_p2 = scmp.ne.s32.totalorder %s10587_s14, %s8580_s23  ;;  %p8587_p0 = scmp.lt.u32.totalorder %s8580_s23, %s10587_s14 }
  0x94   : > { %p8583_p3 = pnand %p8581_p2, %p9069_p7 }
  0x96   : > { %p8584_p13 = pneg %p8583_p3 }
  0x98   : > { %p8589_p1 = pnand %p8587_p0, %p8584_p13 }
  0x9a   : > { %8592 = shalt.err (!%p8589_p1)
}
  0x9b   : > { %s8593_s26 = scalar_lea.vmem %s9142_s29, 16  ;;  %s8600_s30 = scalar_lea.vmem %s9142_s29, 32 }
  0x9c   : > { %p8594_p4 = scmp.ne.s32.totalorder %s9142_s29, %s8593_s26  ;;  %p8601_p9 = scmp.lt.s32.totalorder %s9142_s29, %s9142_s29 }
  0x9d   : > { %p8602_p10 = scmp.lt.s32.totalorder %s8600_s30, %s8593_s26 }
  0x9e   : > { %p8596_p6 = pnand %p8594_p4, %p9069_p7 }
  0x9f   : > { %p8603_p11 = por %p8602_p10, %p8601_p9 }
  0xa0   : > { %p8597_p8 = pneg %p8596_p6 }
  0xa2   : > { %p8604_p12 = pnand %p8603_p11, %p8597_p8 }
  0xa4   : > { %8607 = shalt.err (!%p8604_p12)
}
  0xa5   : > { %7955 = dma.hbm_to_vmem [thread:$0]  (!%p9053_p5), %s10587_s14, 16, %s9142_s29, [#allocation17]  }
  0xa6   : > { %s8911_s24 = smov [#allocation19]   ;;  %s8912_s23 = smov [#allocation2]  }
  0xa7   : > { %s634_s3 = sshll.u32 %s8911_s24, 4  ;;  %s487_s20 = sshll.u32 %s8912_s23, 4  ;;  %s635_s3 = int_to_ptr.vmem [resolvable:$true] %s634_s3  ;;  %s9189_s20 = int_to_ptr.vmem [resolvable:$true] %s487_s20 }
  0xa8   : > { %s8608_s26 = scalar_lea.hbm %s10549_s16, 16 }
  0xa9   : > { %p8609_p2 = scmp.ne.s32.totalorder %s10549_s16, %s8608_s26  ;;  %p8615_p0 = scmp.lt.u32.totalorder %s8608_s26, %s10549_s16 }
  0xab   : > { %p8611_p3 = pnand %p8609_p2, %p9069_p7 }
  0xad   : > { %p8612_p13 = pneg %p8611_p3 }
  0xaf   : > { %p8617_p1 = pnand %p8615_p0, %p8612_p13 }
  0xb1   : > { %8620 = shalt.err (!%p8617_p1)
}
  0xb2   : > { %s8621_s2 = scalar_lea.vmem %s635_s3, 16  ;;  %s8628_s24 = scalar_lea.vmem %s635_s3, 32 }
  0xb3   : > { %p8622_p4 = scmp.ne.s32.totalorder %s635_s3, %s8621_s2  ;;  %p8629_p9 = scmp.lt.s32.totalorder %s635_s3, %s635_s3 }
  0xb4   : > { %p8630_p10 = scmp.lt.s32.totalorder %s8628_s24, %s8621_s2 }
  0xb5   : > { %p8624_p6 = pnand %p8622_p4, %p9069_p7 }
  0xb6   : > { %p8631_p11 = por %p8630_p10, %p8629_p9 }
  0xb7   : > { %p8625_p8 = pneg %p8624_p6 }
  0xb9   : > { %p8632_p12 = pnand %p8631_p11, %p8625_p8 }
  0xbb   : > { %8635 = shalt.err (!%p8632_p12)
}
  0xbc   : > { %7961 = dma.hbm_to_vmem [thread:$0]  (!%p9053_p5), %s10549_s16, 16, %s635_s3, [#allocation20]  }
  0xbd   : > { %s10588_s26 = sld [smem:[#allocation35_spill]] }
  0xc3   : > { %s8636_s30 = scalar_lea.hbm %s10588_s26, 32 }
  0xc4   : > { %p8637_p2 = scmp.ne.s32.totalorder %s10588_s26, %s8636_s30  ;;  %p8643_p0 = scmp.lt.u32.totalorder %s8636_s30, %s10588_s26 }
  0xc6   : > { %p8639_p3 = pnand %p8637_p2, %p9069_p7 }
  0xc8   : > { %p8640_p13 = pneg %p8639_p3 }
  0xca   : > { %p8645_p1 = pnand %p8643_p0, %p8640_p13 }
  0xcc   : > { %8648 = shalt.err (!%p8645_p1)
}
  0xcd   : > { %s8649_s3 = scalar_lea.vmem %s9189_s20, 32  ;;  %p8657_p9 = scmp.lt.s32.totalorder %s9189_s20, %s9189_s20 }
  0xce   : > { %p8650_p4 = scmp.ne.s32.totalorder %s9189_s20, %s8649_s3  ;;  %p8658_p10 = scmp.lt.s32.totalorder %s8649_s3, %s8649_s3 }
  0xd0   : > { %p8652_p6 = pnand %p8650_p4, %p9069_p7  ;;  %p8659_p11 = por %p8658_p10, %p8657_p9 }
  0xd2   : > { %p8653_p8 = pneg %p8652_p6 }
  0xd4   : > { %p8660_p12 = pnand %p8659_p11, %p8653_p8 }
  0xd6   : > { %8663 = shalt.err (!%p8660_p12)
}
  0xd7   : > { %s10589_s19 = smov 16   ;;  %s8913_s12 = smov [#allocation6]  }
  0xd8   : > { %7928 = dma.hbm_to_vmem [thread:$0]  (!%p9053_p5), %s10588_s26, 32, %s9189_s20, [#allocation3], %s10589_s19, %s10589_s19, %s10566_s5  }
  0xd9   : > { %s513_s30 = sshll.u32 %s8913_s12, 4  ;;  %s8664_s2 = scalar_lea.hbm %s10537_s4, 96  ;;  %s514_s30 = int_to_ptr.vmem [resolvable:$true] %s513_s30 }
  0xda   : > { %p8665_p2 = scmp.ne.s32.totalorder %s10537_s4, %s8664_s2  ;;  %p8671_p0 = scmp.lt.u32.totalorder %s8664_s2, %s10537_s4 }
  0xdc   : > { %p8667_p3 = pnand %p8665_p2, %p9069_p7 }
  0xde   : > { %p8668_p13 = pneg %p8667_p3 }
  0xe0   : > { %p8673_p1 = pnand %p8671_p0, %p8668_p13 }
  0xe2   : > { %8676 = shalt.err (!%p8673_p1)
}
  0xe3   : > { %s8677_s20 = scalar_lea.vmem %s514_s30, 96  ;;  %p8685_p9 = scmp.lt.s32.totalorder %s514_s30, %s514_s30 }
  0xe4   : > { %p8678_p4 = scmp.ne.s32.totalorder %s514_s30, %s8677_s20  ;;  %p8686_p10 = scmp.lt.s32.totalorder %s8677_s20, %s8677_s20 }
  0xe6   : > { %p8680_p6 = pnand %p8678_p4, %p9069_p7  ;;  %p8687_p11 = por %p8686_p10, %p8685_p9 }
  0xe8   : > { %p8681_p8 = pneg %p8680_p6 }
  0xea   : > { %p8688_p12 = pnand %p8687_p11, %p8681_p8 }
  0xec   : > { %8691 = shalt.err (!%p8688_p12)
}
  0xed   : > { %s8914_s23 = smov 48   ;;  %s8915_s25 = smov 3  }
  0xee   : > { %7934 = dma.hbm_to_vmem [thread:$0]  (!%p9053_p5), %s10537_s4, 96, %s514_s30, [#allocation5], %s8914_s23, %s8914_s23, %s8915_s25  }
  0xef   : > { %s8916_s12 = smov [#allocation9]   ;;  %s8917_s29 = smov [#allocation12]  }
  0xf0   : > { %s542_s9 = sshll.u32 %s8916_s12, 4  ;;  %s571_s2 = sshll.u32 %s8917_s29, 4  ;;  %s543_s9 = int_to_ptr.vmem [resolvable:$true] %s542_s9  ;;  %s572_s2 = int_to_ptr.vmem [resolvable:$true] %s571_s2 }
  0xf1   : > { %s8692_s20 = scalar_lea.hbm %s10540_s7, 32 }
  0xf2   : > { %p8693_p2 = scmp.ne.s32.totalorder %s10540_s7, %s8692_s20  ;;  %p8699_p0 = scmp.lt.u32.totalorder %s8692_s20, %s10540_s7 }
  0xf4   : > { %p8695_p3 = pnand %p8693_p2, %p9069_p7 }
  0xf6   : > { %p8696_p13 = pneg %p8695_p3 }
  0xf8   : > { %p8701_p1 = pnand %p8699_p0, %p8696_p13 }
  0xfa   : > { %8704 = shalt.err (!%p8701_p1)
}
  0xfb   : > { %s8705_s30 = scalar_lea.vmem %s543_s9, 32  ;;  %p8713_p9 = scmp.lt.s32.totalorder %s543_s9, %s543_s9 }
  0xfc   : > { %p8706_p4 = scmp.ne.s32.totalorder %s543_s9, %s8705_s30  ;;  %p8714_p10 = scmp.lt.s32.totalorder %s8705_s30, %s8705_s30 }
  0xfe   : > { %p8708_p6 = pnand %p8706_p4, %p9069_p7  ;;  %p8715_p11 = por %p8714_p10, %p8713_p9 }
 0x100   : > { %p8709_p8 = pneg %p8708_p6 }
 0x102   : > { %p8716_p12 = pnand %p8715_p11, %p8709_p8 }
 0x104   : > { %8719 = shalt.err (!%p8716_p12)
}
 0x105   : > { %s10590_s8 = smov 1   ;;  %s8720_s25 = scalar_lea.hbm %s10543_s10, 128 }
 0x106   : > { %7940 = dma.hbm_to_vmem [thread:$0]  (!%p9053_p5), %s10540_s7, 32, %s543_s9, [#allocation8], %s10589_s19, %s10589_s19, %s10590_s8  }
 0x107   : > { %p8721_p2 = scmp.ne.s32.totalorder %s10543_s10, %s8720_s25  ;;  %p8727_p0 = scmp.lt.u32.totalorder %s8720_s25, %s10543_s10 }
 0x109   : > { %p8723_p3 = pnand %p8721_p2, %p9069_p7 }
 0x10b   : > { %p8724_p13 = pneg %p8723_p3 }
 0x10d   : > { %p8729_p1 = pnand %p8727_p0, %p8724_p13 }
 0x10f   : > { %8732 = shalt.err (!%p8729_p1)
}
 0x110   : > { %s8733_s24 = scalar_lea.vmem %s572_s2, 128  ;;  %p8741_p9 = scmp.lt.s32.totalorder %s572_s2, %s572_s2 }
 0x111   : > { %p8734_p4 = scmp.ne.s32.totalorder %s572_s2, %s8733_s24  ;;  %p8742_p10 = scmp.lt.s32.totalorder %s8733_s24, %s8733_s24 }
 0x113   : > { %p8736_p6 = pnand %p8734_p4, %p9069_p7  ;;  %p8743_p11 = por %p8742_p10, %p8741_p9 }
 0x115   : > { %p8737_p8 = pneg %p8736_p6 }
 0x117   : > { %p8744_p12 = pnand %p8743_p11, %p8737_p8 }
 0x119   : > { %8747 = shalt.err (!%p8744_p12)
}
 0x11a   : > { %s10591_s19 = smov 4   ;;  %s10592_s9 = smov 64  }
 0x11b   : > { %7946 = dma.hbm_to_vmem [thread:$0]  (!%p9053_p5), %s10543_s10, 128, %s572_s2, [#allocation11], %s10592_s9, %s10592_s9, %s10591_s19  }
 0x11c   : > { %s8918_s30 = smov [#allocation15]   ;;  %s8919_s11 = smov [#allocation18]  }
 0x11d   : > { %s601_s8 = sshll.u32 %s8918_s30, 4  ;;  %s623_s14 = sshll.u32 %s8919_s11, 4  ;;  %s602_s8 = int_to_ptr.vmem [resolvable:$true] %s601_s8  ;;  %s624_s14 = int_to_ptr.vmem [resolvable:$true] %s623_s14 }
 0x11e   : > { %s8748_s25 = scalar_lea.hbm %s10546_s13, 16 }
 0x11f   : > { %p8749_p2 = scmp.ne.s32.totalorder %s10546_s13, %s8748_s25  ;;  %p8755_p0 = scmp.lt.u32.totalorder %s8748_s25, %s10546_s13 }
 0x121   : > { %p8751_p3 = pnand %p8749_p2, %p9069_p7 }
 0x123   : > { %p8752_p13 = pneg %p8751_p3 }
 0x125   : > { %p8757_p1 = pnand %p8755_p0, %p8752_p13 }
 0x127   : > { %8760 = shalt.err (!%p8757_p1)
}
 0x128   : > { %s8761_s2 = scalar_lea.vmem %s602_s8, 16  ;;  %s8768_s24 = scalar_lea.vmem %s602_s8, 32 }
 0x129   : > { %p8762_p4 = scmp.ne.s32.totalorder %s602_s8, %s8761_s2  ;;  %p8769_p9 = scmp.lt.s32.totalorder %s602_s8, %s602_s8 }
 0x12a   : > { %p8770_p10 = scmp.lt.s32.totalorder %s8768_s24, %s8761_s2 }
 0x12b   : > { %p8764_p6 = pnand %p8762_p4, %p9069_p7 }
 0x12c   : > { %p8771_p11 = por %p8770_p10, %p8769_p9 }
 0x12d   : > { %p8765_p8 = pneg %p8764_p6 }
 0x12f   : > { %p8772_p12 = pnand %p8771_p11, %p8765_p8 }
 0x131   : > { %8775 = shalt.err (!%p8772_p12)
}
 0x132   : > { %7952 = dma.hbm_to_vmem [thread:$0]  (!%p9053_p5), %s10546_s13, 16, %s602_s8, [#allocation14]  }
 0x133   : > { %s8776_s30 = scalar_lea.hbm %s10548_s15, 16 }
 0x134   : > { %p8777_p2 = scmp.ne.s32.totalorder %s10548_s15, %s8776_s30  ;;  %p8783_p0 = scmp.lt.u32.totalorder %s8776_s30, %s10548_s15 }
 0x136   : > { %p8779_p3 = pnand %p8777_p2, %p9069_p7 }
 0x138   : > { %p8780_p13 = pneg %p8779_p3 }
 0x13a   : > { %p8785_p1 = pnand %p8783_p0, %p8780_p13 }
 0x13c   : > { %8788 = shalt.err (!%p8785_p1)
}
 0x13d   : > { %s8789_s6 = scalar_lea.vmem %s624_s14, 16  ;;  %s8796_s8 = scalar_lea.vmem %s624_s14, 32 }
 0x13e   : > { %p8790_p4 = scmp.ne.s32.totalorder %s624_s14, %s8789_s6  ;;  %p8797_p9 = scmp.lt.s32.totalorder %s624_s14, %s624_s14 }
 0x13f   : > { %p8798_p10 = scmp.lt.s32.totalorder %s8796_s8, %s8789_s6 }
 0x140   : > { %p8792_p6 = pnand %p8790_p4, %p9069_p7 }
 0x141   : > { %p8799_p11 = por %p8798_p10, %p8797_p9 }
 0x142   : > { %p8793_p8 = pneg %p8792_p6 }
 0x144   : > { %p8800_p12 = pnand %p8799_p11, %p8793_p8 }
 0x146   : > { %8803 = shalt.err (!%p8800_p12)
}
 0x147   : > { %7958 = dma.hbm_to_vmem [thread:$0]  (!%p9053_p5), %s10548_s15, 16, %s624_s14, [#allocation17]  }
 0x148   : > { %s8920_s29 = smov [#allocation21]   ;;  %s8804_s9 = scalar_lea.hbm %s10550_s17, 5120 }
 0x149   : > { %s644_s2 = sshll.u32 %s8920_s29, 4  ;;  %p8805_p2 = scmp.ne.s32.totalorder %s10550_s17, %s8804_s9  ;;  %s645_s2 = int_to_ptr.vmem [resolvable:$true] %s644_s2 }
 0x14a   : > { %p8811_p0 = scmp.lt.u32.totalorder %s8804_s9, %s10550_s17 }
 0x14b   : > { %p8807_p3 = pnand %p8805_p2, %p9069_p7 }
 0x14d   : > { %p8808_p13 = pneg %p8807_p3 }
 0x14f   : > { %p8813_p1 = pnand %p8811_p0, %p8808_p13 }
 0x151   : > { %8816 = shalt.err (!%p8813_p1)
}
 0x152   : > { %s8817_s14 = scalar_lea.vmem %s645_s2, 5120  ;;  %p8825_p9 = scmp.lt.s32.totalorder %s645_s2, %s645_s2 }
 0x153   : > { %p8818_p4 = scmp.ne.s32.totalorder %s645_s2, %s8817_s14  ;;  %p8826_p10 = scmp.lt.s32.totalorder %s8817_s14, %s8817_s14 }
 0x155   : > { %p8820_p6 = pnand %p8818_p4, %p9069_p7  ;;  %p8827_p11 = por %p8826_p10, %p8825_p9 }
 0x157   : > { %p8821_p8 = pneg %p8820_p6 }
 0x159   : > { %p8828_p12 = pnand %p8827_p11, %p8821_p8 }
 0x15b   : > { %8831 = shalt.err (!%p8828_p12)
}
 0x15c   : > { %s8921_s5 = smov 320   ;;  %s8922_s23 = smov 20  }
 0x15d   : > { %7964 = dma.hbm_to_vmem [thread:$0]  (!%p9053_p5), %s10550_s17, 5120, %s645_s2, [#allocation20], %s8921_s5, %s8921_s5, %s8922_s23  }
 0x15e   : > { %s8923_s8 = smov [#allocation22]   ;;  %s8832_s24 = scalar_lea.hbm %s10551_s18, 80 }
 0x15f   : > { %s658_s28 = sshll.u32 %s8923_s8, 4  ;;  %p8833_p2 = scmp.ne.s32.totalorder %s10551_s18, %s8832_s24  ;;  %s659_s28 = int_to_ptr.vmem [resolvable:$true] %s658_s28 }
 0x160   : > { %p8839_p0 = scmp.lt.u32.totalorder %s8832_s24, %s10551_s18 }
 0x161   : > { %p8835_p3 = pnand %p8833_p2, %p9069_p7 }
 0x163   : > { %p8836_p13 = pneg %p8835_p3 }
 0x165   : > { %p8841_p1 = pnand %p8839_p0, %p8836_p13 }
 0x167   : > { %8844 = shalt.err (!%p8841_p1)
}
 0x168   : > { %s8845_s2 = scalar_lea.vmem %s659_s28, 80  ;;  %s8852_s30 = scalar_lea.vmem %s659_s28, 96 }
 0x169   : > { %p8846_p4 = scmp.ne.s32.totalorder %s659_s28, %s8845_s2  ;;  %p8853_p9 = scmp.lt.s32.totalorder %s659_s28, %s659_s28 }
 0x16a   : > { %p8854_p10 = scmp.lt.s32.totalorder %s8852_s30, %s8845_s2 }
 0x16b   : > { %p8848_p6 = pnand %p8846_p4, %p9069_p7 }
 0x16c   : > { %p8855_p11 = por %p8854_p10, %p8853_p9 }
 0x16d   : > { %p8849_p8 = pneg %p8848_p6 }
 0x16f   : > { %p8856_p12 = pnand %p8855_p11, %p8849_p8 }
 0x171   : > { %8859 = shalt.err (!%p8856_p12)
}
 0x172   : > { %7967 = dma.hbm_to_vmem [thread:$0]  (!%p9053_p5), %s10551_s18, 80, %s659_s28, [#allocation23]  }
 0x173   : > { %p10593_p2 = scmp.ne.s32.totalorder %s10580_s1, 0 }
 0x174   : > { %p10594_p3 = scmp.eq.s32.totalorder (!%p10593_p2), %s9038_s21, 0 }
 0x175   : > { %679 = sbr.rel (%p10593_p2) target bundleno = 6579 (0x19b3), region = 96 }
 0x17c   : > { %8865 = dma.done.wait (%p10594_p3), [#allocation3], 32   ;;  %p10595_p7 = pmov %p10594_p3 }
 0x17d   : > { %p10596_p13 = pmov %p10594_p3 }
 0x17e   : > { %8867 = vsyncadd (%p10595_p7), [#allocation3], 4294967264 }
 0x17f   : > { %8869 = dma.done.wait (%p10596_p13), [#allocation5], 6240   ;;  %p10597_p0 = pmov %p10594_p3 }
 0x181   : > { %8871 = vsyncadd (%p10597_p0), [#allocation5], 4294961056  ;;  %p10598_p1 = pmov %p10597_p0 }
 0x182   : > { %p10599_p5 = pmov %p10597_p0 }
 0x183   : > { %8873 = dma.done.wait (%p10598_p1), [#allocation8], 64  }
 0x184   : > { %8875 = vsyncadd (%p10599_p5), [#allocation8], 4294967232  ;;  %p10600_p4 = pmov %p10597_p0 }
 0x185   : > { %p10601_p6 = pmov %p10597_p0 }
 0x186   : > { %8877 = dma.done.wait (%p10600_p4), [#allocation11], 160  }
 0x187   : > { %8879 = vsyncadd (%p10601_p6), [#allocation11], 4294967136  ;;  %p10602_p8 = pmov %p10597_p0 }
 0x188   : > { %p10603_p9 = pmov %p10597_p0 }
 0x189   : > { %8881 = dma.done.wait (%p10602_p8), [#allocation14], 8208  }
 0x18a   : > { %8883 = vsyncadd (%p10603_p9), [#allocation14], 4294959088  ;;  %p10604_p10 = pmov %p10597_p0 }
 0x18b   : > { %p10605_p11 = pmov %p10597_p0 }
 0x18c   : > { %8885 = dma.done.wait (%p10604_p10), [#allocation17], 32  }
 0x18d   : > { %8887 = vsyncadd (%p10605_p11), [#allocation17], 4294967264  ;;  %p10606_p12 = pmov %p10597_p0 }
 0x18e   : > { %p10607_p2 = pmov %p10597_p0 }
 0x18f   : > { %8889 = dma.done.wait (%p10606_p12), [#allocation20], 5136  }
 0x190   : > { %8891 = vsyncadd (%p10607_p2), [#allocation20], 4294962160  ;;  %p10608_p3 = pmov %p10597_p0 }
 0x191   : > { %p10609_p7 = pmov %p10597_p0 }
 0x192   : > { %8893 = dma.done.wait (%p10608_p3), [#allocation23], 80  }
 0x193   : > { %8895 = vsyncadd (%p10609_p7), [#allocation23], 4294967216  ;;  %p787_p13 = scmp.lt.s32.totalorder %s9038_s21, 1  ;;  %s10610_s5 = sld [smem:[#allocation33_spill]]  ;;  %v8066_v2 = vld [vmem:[#allocation4 + $0x4] ss:$12 sps:$4 sm:$0xff]   ;;  %v804_v53 = vlaneseq }
 0x194   : > { %v8068_v3 = vld [vmem:[#allocation4] ss:$12 sps:$4 sm:$0xff]   ;;  %v8924_v4 = vmov 0.0   ;;  %v8069_v5 = vld [vmem:[#allocation4 + $0x8] ss:$12 sps:$4 sm:$0xff]   ;;  %1030 = vmatprep.subr.bf16.mxu0 %v8066_v2  ;;  %v8925_v30 = vmov 0  }
 0x195   : > { %s10622_s21 = smov (!%p787_p13, %s9038_s21), 1  ;;  %7672 = vmatprep.subr.bf16.mxu1 %v8924_v4  ;;  %v8070_v6 = vld [vmem:[#allocation4 + $0x1c] ss:$12 sps:$4 sm:$0xff]   ;;  %1031 = vmatpush1.bf16.msra.mxu0 %v8068_v3  ;;  %v8072_v15 = vld [vmem:[#allocation4 + $0x18] ss:$12 sps:$4 sm:$0xff]   ;;  %vm8926_vm0 = vmmov 0  }
 0x196   : > { %s7506_s0 = sshll.u32 %s10622_s21, 4  ;;  %7673 = vmatpush3.bf16.msra.mxu1 %v8069_v5  ;;  %1032 = vmatprep.subr.bf16.mxu0 %v8070_v6  ;;  %v8073_v16 = vld [vmem:[#allocation4 + $0x20] ss:$12 sps:$4 sm:$0xff]   ;;  %v8076_v18 = vld [vmem:[#allocation4 + $0x30] ss:$12 sps:$4 sm:$0xff]   ;;  %s10611_s8 = sld [smem:[#allocation34_spill]] }
 0x197   : > { %7674 = vmatprep.subr.bf16.mxu1 %v8924_v4  ;;  %v8074_v17 = vld [vmem:[#allocation4 + $0x34] ss:$12 sps:$4 sm:$0xff]   ;;  %v8077_v19 = vld [vmem:[#allocation4 + $0x38] ss:$12 sps:$4 sm:$0xff]   ;;  %v8081_v22 = vld [vmem:[#allocation4 + $0x50] ss:$12 sps:$4 sm:$0xff]   ;;  %1062 = vmatprep.mubr.bf16.mxu0 %v8925_v30 }
 0x198   : > { %v8078_v20 = vld [vmem:[#allocation4 + $0x4c] ss:$12 sps:$4 sm:$0xff]   ;;  %v8080_v21 = vld [vmem:[#allocation4 + $0x48] ss:$12 sps:$4 sm:$0xff]   ;;  %v8082_v23 = vld [vmem:[#allocation4 + $0x64] ss:$12 sps:$4 sm:$0xff]   ;;  %7688 = vmatprep.mubr.msk.bf16.mxu1 %vm8926_vm0, %v8924_v4 }
 0x199   : > { %s9409_s23 = scalar_lea.vmem %s10610_s5, %s7506_s0  ;;  %1033 = vmatpush1.bf16.msra.mxu0 %v8072_v15  ;;  %v8084_v24 = vld [vmem:[#allocation4 + $0x60] ss:$12 sps:$4 sm:$0xff]   ;;  %v8085_v25 = vld [vmem:[#allocation4 + $0x68] ss:$12 sps:$4 sm:$0xff]   ;;  %v8088_v27 = vld [vmem:[#allocation4 + $0x78] ss:$12 sps:$4 sm:$0xff]  }
 0x19a   : > { %v802_v0 = vld [vmem:[%s9409_s23] sm:$0xff]  ;;  %v803_v1 = vld [vmem:[%s9409_s23 + $0x8] sm:$0xff]  ;;  %7675 = vmatpush3.bf16.msra.mxu1 %v8073_v16  ;;  %1034 = vmatprep.subr.bf16.mxu0 %v8074_v17  ;;  %v9444_v54 = vshrl.u32 %v804_v53, 7  ;;  %s8927_s28 = smov 96   ;;  %s8928_s12 = smov 64   ;;  %vm2002_vm1 = vcmask 261120  }
 0x19b   : > { %813 = vadd.xlane.f32.xlu0 %v802_v0  ;;  %7676 = vmatprep.subr.bf16.mxu1 %v8924_v4  ;;  %v8086_v26 = vld [vmem:[#allocation4 + $0x7c] ss:$12 sps:$4 sm:$0xff]   ;;  %v8089_v28 = vld [vmem:[#allocation4 + $0x80] ss:$12 sps:$4 sm:$0xff]   ;;  %v8093_v32 = vld [vmem:[#allocation4 + $0x98] ss:$12 sps:$4 sm:$0xff]  }
 0x19c   : > { %v8090_v29 = vld [vmem:[#allocation4 + $0x94] ss:$12 sps:$4 sm:$0xff]   ;;  %v8092_v31 = vld [vmem:[#allocation4 + $0x90] ss:$12 sps:$4 sm:$0xff]   ;;  %v8094_v33 = vld [vmem:[#allocation4 + $0xac] ss:$12 sps:$4 sm:$0xff]  }
 0x19d   : > { %1035 = vmatpush1.bf16.msra.mxu0 %v8076_v18  ;;  %v8096_v34 = vld [vmem:[#allocation4 + $0xa8] ss:$12 sps:$4 sm:$0xff]   ;;  %v8097_v35 = vld [vmem:[#allocation4 + $0xb0] ss:$12 sps:$4 sm:$0xff]   ;;  %v9447_v55 = vsub.s32 0, %v9444_v54  ;;  %v9452_v57 = vsub.s32 1, %v9444_v54 }
 0x19e   : > { %7677 = vmatpush3.bf16.msra.mxu1 %v8077_v19  ;;  %1036 = vmatprep.subr.bf16.mxu0 %v8078_v20  ;;  %v7158_v44 = vld [vmem:[%s10611_s8] ss:$0 sm:$0xff]  ;;  %v9449_v56 = vld [vmem:[#allocation6] sm:$0x7]  ;;  %s8929_s29 = smov 32   ;;  %vm2203_vm3 = vcmask 130048  }
 0x19f   : > { %815 = vadd.xlane.f32.xlu0 %v803_v1  ;;  %7678 = vmatprep.subr.bf16.mxu1 %v8924_v4  ;;  %v7159_v48 = vld [vmem:[#allocation2] ss:$0 sm:$0xff]  ;;  %v890_v58 = vrot.slane %v9449_v56, %v9447_v55  ;;  %v894_v59 = vrot.slane %v9449_v56, %v9452_v57  ;;  %s10616_s9 = sld [smem:[#allocation37_spill]]  ;;  %vm2770_vm5 = vcmask 523264   ;;  %vm2773_vm6 = vcmask 785408   ;;  %s10617_s2 = sld [smem:[#allocation40_spill]] }
 0x1a0   : > { %s10618_s25 = sld [smem:[#allocation42_spill]]  ;;  %s10619_s14 = sld [smem:[#allocation44_spill]] }
 0x1a1   : > { %1037 = vmatpush1.bf16.msra.mxu0 %v8080_v21 }
 0x1a2   : > { %7679 = vmatpush3.bf16.msra.mxu1 %v8081_v22  ;;  %1038 = vmatprep.subr.bf16.mxu0 %v8082_v23 }
 0x1a3   : > { %7680 = vmatprep.subr.bf16.mxu1 %v8924_v4 }
 0x1a5   : > { %1039 = vmatpush1.bf16.msra.mxu0 %v8084_v24 }
 0x1a6   : > { %7681 = vmatpush3.bf16.msra.mxu1 %v8085_v25  ;;  %1040 = vmatprep.subr.bf16.mxu0 %v8086_v26 }
 0x1a7   : > { %7682 = vmatprep.subr.bf16.mxu1 %v8924_v4 }
 0x1a9   : > { %1041 = vmatpush1.bf16.msra.mxu0 %v8088_v27 }
 0x1aa   : > { %7683 = vmatpush3.bf16.msra.mxu1 %v8089_v28  ;;  %1042 = vmatprep.subr.bf16.mxu0 %v8090_v29 }
 0x1ab   : > { %7684 = vmatprep.subr.bf16.mxu1 %v8924_v4 }
 0x1ad   : > { %1043 = vmatpush1.bf16.msra.mxu0 %v8092_v31 }
 0x1ae   : > { %7685 = vmatpush3.bf16.msra.mxu1 %v8093_v32  ;;  %1044 = vmatprep.subr.bf16.mxu0 %v8094_v33 }
 0x1af   : > { %7686 = vmatprep.subr.bf16.mxu1 %v8924_v4 }
 0x1b1   : > { %1045 = vmatpush1.bf16.msra.mxu0 %v8096_v34 }
 0x1b2   : > { %7687 = vmatpush3.bf16.msra.mxu1 %v8097_v35  ;;  %7692 = vmatprep.subr.bf16.mxu0 %v8924_v4 }
 0x1b3   : > { %7698 = vmatprep.subr.bf16.mxu1 %v8924_v4 }
 0x228   : > { %v814_v7 = vpop.xlane.xlu0 %813 }
 0x229   : > { %v818_v8 = vmul.f32 0.0078125, %v814_v7 }
 0x22b   : > { %v9415_v9 = vsub.f32 %v802_v0, %v818_v8 }
 0x22c   : > { %v816_v10 = vpop.xlane.xlu0 %815 }
 0x22d   : > { %v819_v11 = vmul.f32 0.0078125, %v816_v10  ;;  %v822_v12 = vmul.f32 %v9415_v9, %v9415_v9 }
 0x22f   : > { %v9419_v13 = vsub.f32 %v803_v1, %v819_v11  ;;  %824 = vadd.xlane.f32.xlu1 %v822_v12 }
 0x231   : > { %v823_v14 = vmul.f32 %v9419_v13, %v9419_v13 }
 0x233   : > { %826 = vadd.xlane.f32.xlu1 %v823_v14 }
 0x2bc   : > { %v825_v36 = vpop.xlane.xlu1 %824 }
 0x2bd   : > { %v828_v37 = vmul.f32 0.0078125, %v825_v36 }
 0x2bf   : > { %v830_v38 = vadd.f32 1e-05, %v828_v37 }
 0x2c0   : > { %v827_v39 = vpop.xlane.xlu1 %826 }
 0x2c1   : > { %8362 = vrsqrt.f32 %v830_v38  ;;  %v829_v40 = vmul.f32 0.0078125, %v827_v39 }
 0x2c3   : > { %v831_v41 = vadd.f32 1e-05, %v829_v40 }
 0x2c5   : > { %8364 = vrsqrt.f32 %v831_v41 }
 0x2cb   : > { %v8363_v42 = vpop.eup %8362 }
 0x2cc   : > { %v834_v43 = vmul.f32 %v8363_v42, %v9415_v9  ;;  %v8930_v9 = vmov 1983009808  }
 0x2cd   : > { %v1137_v10 = vunpack.c.l.s4 %v8930_v9 }
 0x2ce   : > { %v842_v47 = vmul.f32 %v7158_v44, %v834_v43 }
 0x2cf   : > { %v8365_v45 = vpop.eup %8364  ;;  %v1138_v15 = vunpack.c.0.s8 %v1137_v10 }
 0x2d0   : > { %v835_v46 = vmul.f32 %v8365_v45, %v9419_v13  ;;  %v850_v50 = vadd.f32 %v7159_v48, %v842_v47  ;;  %v8931_v13 = vmov 1934713408  }
 0x2d1   : > { %v1169_v14 = vunpack.c.l.s4 %v8931_v13  ;;  %v9487_v19 = vsub.s32 %v1138_v15, %v9444_v54 }
 0x2d2   : > { %v843_v49 = vmul.f32 %v7158_v44, %v835_v46 }
 0x2d3   : > { %v1170_v18 = vunpack.c.0.s8 %v1169_v14 }
 0x2d4   : > { %v851_v51 = vadd.f32 %v7159_v48, %v843_v49 }
 0x2d5   : > { %v9490_v26 = vsub.s32 %v1170_v18, %v9444_v54 }
 0x2d6   : > { %v852_v52 = vpack.c.bf16 %v851_v51, %v850_v50 }
 0x2d8   : > { %1063 = vmatmul.mubr.bf16.vlgmr.msra.gmra.mrb[0].mxu0 %v852_v52  ;;  %7689 = vmatmul.mubr.bf16.vlgmr.msra.gmra.mrb[0].mxu1 %v852_v52 }
 0x2d9   : > { %7694 = vmatprep.mubr.msk.bf16.mxu0 %vm8926_vm0, %v8924_v4  ;;  %7700 = vmatprep.mubr.msk.bf16.mxu1 %vm8926_vm0, %v8924_v4 }
 0x3ab   : > { %v1064_v60 = vpop.f32.mrb[0].mxu0  ;;  %v9458_v61 = vpop.f32.mrb[0].mxu1 }
 0x3ac   : > { %v9460_v62 = vadd.f32 %v1064_v60, %v890_v58  ;;  %v1066_v63 = vpop.f32.mrb[1].mxu0  ;;  %v7690_v0 = vpop.f32.mrb[1].mxu1 }
 0x3ad   : > { %v1067_v1 = vadd.f32 %v1066_v63, %v894_v59  ;;  %v1068_v2 = vpop.f32.mrb[2].mxu0  ;;  %v9462_v3 = vpop.f32.mrb[2].mxu1 }
 0x3ae   : > { %v1070_v5 = vpop.f32.mrb[3].mxu0  ;;  %v7691_v6 = vpop.f32.mrb[3].mxu1  ;;  %1116 = vrot.lane.b32.xlu0 %v9460_v62, %s8927_s28  ;;  %v9467_v7 = vadd.f32 %v1068_v2, %v890_v58 }
 0x3af   : > { %1418 = vrot.lane.b32.xlu1 %v1067_v1, %s8928_s12  ;;  %v1071_v8 = vadd.f32 %v1070_v5, %v894_v59 }
 0x3b2   : > { %1412 = vrot.lane.b32.xlu0 %v1067_v1, %s8927_s28 }
 0x3b3   : > { %1118 = vrot.lane.b32.xlu1 %v9467_v7, %s8927_s28 }
 0x3b6   : > { %1424 = vrot.lane.b32.xlu0 %v1067_v1, %s8929_s29 }
 0x3b7   : > { %1414 = vrot.lane.b32.xlu1 %v1071_v8, %s8927_s28 }
 0x3ba   : > { %1122 = vrot.lane.b32.xlu0 %v9460_v62, %s8928_s12 }
 0x3bb   : > { %1420 = vrot.lane.b32.xlu1 %v1071_v8, %s8928_s12 }
 0x3be   : > { %1128 = vrot.lane.b32.xlu0 %v9460_v62, %s8929_s29 }
 0x3bf   : > { %1426 = vrot.lane.b32.xlu1 %v1071_v8, %s8929_s29 }
 0x3c3   : > { %1124 = vrot.lane.b32.xlu1 %v9467_v7, %s8928_s12 }
 0x3c7   : > { %1130 = vrot.lane.b32.xlu1 %v9467_v7, %s8929_s29 }
 0x420   : > { %v1117_v11 = vpop.permute.xlu0 %1116 }
 0x421   : > { %v1419_v12 = vpop.permute.xlu1 %1418 }
 0x422   : > { %v1430_v20 = vcombine.low %v1067_v1, %v1419_v12  ;;  %v1431_v21 = vcombine.high %v1067_v1, %v1419_v12 }
 0x424   : > { %v1413_v16 = vpop.permute.xlu0 %1412  ;;  %v1438_v27 = vrot.slane %v1430_v20, %v9487_v19  ;;  %v1445_v28 = vrot.slane %v1431_v21, %v9487_v19 }
 0x425   : > { %v9484_v17 = vpop.permute.xlu1 %1118 }
 0x428   : > { %v1425_v22 = vpop.permute.xlu0 %1424 }
 0x429   : > { %v1446_v23 = vcombine.low %v1413_v16, %v1425_v22  ;;  %v1447_v24 = vcombine.high %v1413_v16, %v1425_v22  ;;  %v1415_v25 = vpop.permute.xlu1 %1414 }
 0x42b   : > { %v1454_v29 = vrot.slane %v1446_v23, %v9487_v19  ;;  %v1461_v31 = vrot.slane %v1447_v24, %v9487_v19 }
 0x42c   : > { %v1123_v32 = vpop.permute.xlu0 %1122 }
 0x42d   : > { %v1462_v33 = vcombine.low %v1438_v27, %v1454_v29  ;;  %v1463_v34 = vcombine.high %v1438_v27, %v1454_v29  ;;  %v1478_v35 = vcombine.low %v1445_v28, %v1461_v31  ;;  %v1479_v36 = vcombine.high %v1445_v28, %v1461_v31  ;;  %v1421_v37 = vpop.permute.xlu1 %1420 }
 0x42e   : > { %v1134_v38 = vcombine.low %v9460_v62, %v1123_v32  ;;  %v1135_v39 = vcombine.high %v9460_v62, %v1123_v32  ;;  %v1498_v40 = vcombine.low %v1071_v8, %v1421_v37  ;;  %v1499_v41 = vcombine.high %v1071_v8, %v1421_v37 }
 0x42f   : > { %v1470_v42 = vrot.slane %v1462_v33, %v9490_v26  ;;  %v1477_v43 = vrot.slane %v1463_v34, %v9490_v26  ;;  %v1486_v44 = vrot.slane %v1478_v35, %v9490_v26  ;;  %v1493_v45 = vrot.slane %v1479_v36, %v9490_v26 }
 0x430   : > { %v1129_v46 = vpop.permute.xlu0 %1128  ;;  %v1142_v62 = vrot.slane %v1134_v38, %v9487_v19  ;;  %v1149_v63 = vrot.slane %v1135_v39, %v9487_v19  ;;  %v1506_v0 = vrot.slane %v1498_v40, %v9487_v19  ;;  %v1513_v1 = vrot.slane %v1499_v41, %v9487_v19 }
 0x431   : > { %v1566_v47 = vcombine.low %v1470_v42, %v1477_v43  ;;  %v7188_v48 = vcombine.high %v1470_v42, %v1477_v43  ;;  %v1582_v49 = vcombine.low %v1486_v44, %v1493_v45  ;;  %v7189_v50 = vcombine.high %v1486_v44, %v1493_v45  ;;  %v1427_v51 = vpop.permute.xlu1 %1426 }
 0x432   : > { %v1150_v52 = vcombine.low %v1117_v11, %v1129_v46  ;;  %v1151_v58 = vcombine.high %v1117_v11, %v1129_v46  ;;  %v1514_v59 = vcombine.low %v1415_v25, %v1427_v51  ;;  %v1515_v60 = vcombine.high %v1415_v25, %v1427_v51 }
 0x433   : > { %v9511_v9 = vrot.slane %v1566_v47, %v9487_v19  ;;  %v9514_v10 = vrot.slane %v7188_v48, %v9487_v19  ;;  %v9517_v11 = vrot.slane %v1582_v49, %v9487_v19  ;;  %v9520_v12 = vrot.slane %v7189_v50, %v9487_v19 }
 0x434   : > { %v1158_v2 = vrot.slane %v1150_v52, %v9487_v19  ;;  %v1165_v5 = vrot.slane %v1151_v58, %v9487_v19  ;;  %v1522_v6 = vrot.slane %v1514_v59, %v9487_v19  ;;  %v1529_v8 = vrot.slane %v1515_v60, %v9487_v19 }
 0x435   : > { %v1125_v18 = vpop.permute.xlu1 %1124  ;;  %v1598_v43 = vcombine.low %v9511_v9, %v9514_v10  ;;  %v1614_v44 = vcombine.low %v9517_v11, %v9520_v12  ;;  %v1599_v45 = vcombine.high %v9511_v9, %v9514_v10 }
 0x436   : > { %v1166_v13 = vcombine.low %v1142_v62, %v1158_v2  ;;  %v1167_v14 = vcombine.high %v1142_v62, %v1158_v2  ;;  %v1182_v15 = vcombine.low %v1149_v63, %v1165_v5  ;;  %v1183_v16 = vcombine.high %v1149_v63, %v1165_v5 }
 0x437   : > { %v1530_v20 = vcombine.low %v1506_v0, %v1522_v6  ;;  %v1531_v21 = vcombine.high %v1506_v0, %v1522_v6  ;;  %v1546_v22 = vcombine.low %v1513_v1, %v1529_v8  ;;  %v1547_v23 = vcombine.high %v1513_v1, %v1529_v8 }
 0x438   : > { %v1174_v24 = vrot.slane %v1166_v13, %v9490_v26  ;;  %v1181_v25 = vrot.slane %v1167_v14, %v9490_v26  ;;  %v1190_v27 = vrot.slane %v1182_v15, %v9490_v26  ;;  %v1197_v28 = vrot.slane %v1183_v16, %v9490_v26 }
 0x439   : > { %v1538_v29 = vrot.slane %v1530_v20, %v9490_v26  ;;  %v1545_v31 = vrot.slane %v1531_v21, %v9490_v26  ;;  %v1554_v32 = vrot.slane %v1546_v22, %v9490_v26  ;;  %v1561_v33 = vrot.slane %v1547_v23, %v9490_v26  ;;  %v1131_v42 = vpop.permute.xlu1 %1130 }
 0x43a   : > { %v1270_v38 = vcombine.low %v1174_v24, %v1181_v25  ;;  %v7184_v39 = vcombine.high %v1174_v24, %v1181_v25  ;;  %v1286_v40 = vcombine.low %v1190_v27, %v1197_v28  ;;  %v7185_v41 = vcombine.high %v1190_v27, %v1197_v28 }
 0x43b   : > { %v1634_v34 = vcombine.low %v1538_v29, %v1545_v31  ;;  %v7190_v35 = vcombine.high %v1538_v29, %v1545_v31  ;;  %v1650_v36 = vcombine.low %v1554_v32, %v1561_v33  ;;  %v7191_v37 = vcombine.high %v1554_v32, %v1561_v33 }
 0x43c   : > { %v1202_v50 = vcombine.low %v9467_v7, %v1125_v18  ;;  %v1203_v51 = vcombine.high %v9467_v7, %v1125_v18  ;;  %v1218_v52 = vcombine.low %v9484_v17, %v1131_v42  ;;  %v1219_v58 = vcombine.high %v9484_v17, %v1131_v42 }
 0x43d   : > { %v1641_v46 = vrot.slane %v1634_v34, %v9487_v19  ;;  %v1649_v47 = vrot.slane %v7190_v35, %v9487_v19  ;;  %v9539_v48 = vrot.slane %v1650_v36, %v9487_v19  ;;  %v9542_v49 = vrot.slane %v7191_v37, %v9487_v19 }
 0x43e   : > { %v9549_v59 = vrot.slane %v1270_v38, %v9487_v19  ;;  %v9552_v60 = vrot.slane %v7184_v39, %v9487_v19  ;;  %v9555_v62 = vrot.slane %v1286_v40, %v9487_v19  ;;  %v9558_v63 = vrot.slane %v7185_v41, %v9487_v19 }
 0x43f   : > { %v1210_v0 = vrot.slane %v1202_v50, %v9487_v19  ;;  %v1217_v7 = vrot.slane %v1203_v51, %v9487_v19  ;;  %v1226_v1 = vrot.slane %v1218_v52, %v9487_v19  ;;  %v1233_v17 = vrot.slane %v1219_v58, %v9487_v19 }
 0x440   : > { %v1606_v2 = vrot.slane %v1598_v43, %v9490_v26  ;;  %v1622_v5 = vrot.slane %v1614_v44, %v9490_v26  ;;  %v1666_v6 = vcombine.low %v1641_v46, %v1649_v47  ;;  %v1682_v8 = vcombine.low %v9539_v48, %v9542_v49 }
 0x441   : > { %v1234_v9 = vcombine.low %v1210_v0, %v1226_v1  ;;  %v1235_v10 = vcombine.high %v1210_v0, %v1226_v1  ;;  %v1250_v13 = vcombine.low %v1217_v7, %v1233_v17  ;;  %v1251_v14 = vcombine.high %v1217_v7, %v1233_v17 }
 0x442   : > { %v1302_v15 = vcombine.low %v9549_v59, %v9552_v60  ;;  %v1318_v16 = vcombine.low %v9555_v62, %v9558_v63  ;;  %v1674_v18 = vrot.slane %v1666_v6, %v9490_v26  ;;  %v1690_v20 = vrot.slane %v1682_v8, %v9490_v26 }
 0x443   : > { %v1242_v21 = vrot.slane %v1234_v9, %v9490_v26  ;;  %v1249_v22 = vrot.slane %v1235_v10, %v9490_v26  ;;  %v1258_v23 = vrot.slane %v1250_v13, %v9490_v26  ;;  %v1265_v24 = vrot.slane %v1251_v14, %v9490_v26 }
 0x444   : > { %v1630_v25 = vcombine.low %v1606_v2, %v1622_v5  ;;  %v1698_v27 = vcombine.low %v1674_v18, %v1690_v20  ;;  %v1631_v28 = vcombine.high %v1606_v2, %v1622_v5  ;;  %v1699_v29 = vcombine.high %v1674_v18, %v1690_v20 }
 0x445   : > { %v1338_v31 = vcombine.low %v1242_v21, %v1249_v22  ;;  %v7186_v32 = vcombine.high %v1242_v21, %v1249_v22  ;;  %v1354_v33 = vcombine.low %v1258_v23, %v1265_v24  ;;  %v7187_v34 = vcombine.high %v1258_v23, %v1265_v24 }
 0x446   : > { %v1702_v35 = vpack.c.bf16 %v1698_v27, %v1630_v25  ;;  %v1703_v36 = vpack.c.bf16 %v1699_v29, %v1631_v28  ;;  %v1615_v37 = vcombine.high %v9517_v11, %v9520_v12  ;;  %v1310_v42 = vrot.slane %v1302_v15, %v9490_v26 }
 0x447   : > { %v1345_v38 = vrot.slane %v1338_v31, %v9487_v19  ;;  %v1353_v39 = vrot.slane %v7186_v32, %v9487_v19  ;;  %v1361_v40 = vrot.slane %v1354_v33, %v9487_v19  ;;  %v1369_v41 = vrot.slane %v7187_v34, %v9487_v19 }
 0x448   : > { %v2007_v43 = vsel %vm2002_vm1, %v1702_v35, 0  ;;  %v2054_v44 = vsel %vm2002_vm1, %v1703_v36, 0  ;;  %v1667_v50 = vcombine.high %v1641_v46, %v1649_v47  ;;  %v1326_v51 = vrot.slane %v1318_v16, %v9490_v26 }
 0x449   : > { %v1370_v52 = vcombine.low %v1345_v38, %v1353_v39  ;;  %v1386_v58 = vcombine.low %v1361_v40, %v1369_v41  ;;  %7693 = vmatpush3.bf16.xpose.msra.mxu0 %v2007_v43  ;;  %v1613_v11 = vrot.slane %v1599_v45, %v9490_v26  ;;  %7699 = vmatpush3.bf16.xpose.msra.mxu1 %v2054_v44  ;;  %v808_v31 = vand.u32 127, %v804_v53 }
 0x44a   : > { %7704 = vmatprep.subr.bf16.mxu0 %v8924_v4  ;;  %v1629_v12 = vrot.slane %v1615_v37, %v9490_v26  ;;  %v1681_v0 = vrot.slane %v1667_v50, %v9490_v26  ;;  %v1683_v7 = vcombine.high %v9539_v48, %v9542_v49  ;;  %v1303_v46 = vcombine.high %v9549_v59, %v9552_v60 }
 0x44b   : > { %v1378_v47 = vrot.slane %v1370_v52, %v9490_v26  ;;  %v1394_v1 = vrot.slane %v1386_v58, %v9490_v26  ;;  %7710 = vmatprep.subr.bf16.mxu1 %v8924_v4  ;;  %v1319_v45 = vcombine.high %v9555_v62, %v9558_v63  ;;  %v1371_v17 = vcombine.high %v1345_v38, %v1353_v39 }
 0x44c   : > { %v1387_v2 = vcombine.high %v1361_v40, %v1369_v41  ;;  %v1697_v5 = vrot.slane %v1683_v7, %v9490_v26  ;;  %v1334_v6 = vcombine.low %v1310_v42, %v1326_v51  ;;  %v1335_v9 = vcombine.high %v1310_v42, %v1326_v51 }
 0x44d   : > { %v1402_v8 = vcombine.low %v1378_v47, %v1394_v1  ;;  %v1403_v48 = vcombine.high %v1378_v47, %v1394_v1  ;;  %v1632_v49 = vcombine.low %v1613_v11, %v1629_v12  ;;  %v1633_v59 = vcombine.high %v1613_v11, %v1629_v12 }
 0x44e   : > { %v1700_v10 = vcombine.low %v1681_v0, %v1697_v5  ;;  %v1701_v60 = vcombine.high %v1681_v0, %v1697_v5  ;;  %v1385_v15 = vrot.slane %v1371_v17, %v9490_v26  ;;  %v1401_v16 = vrot.slane %v1387_v2, %v9490_v26 }
 0x44f   : > { %v1406_v13 = vpack.c.bf16 %v1402_v8, %v1334_v6  ;;  %v1407_v14 = vpack.c.bf16 %v1403_v48, %v1335_v9  ;;  %v1317_v63 = vrot.slane %v1303_v46, %v9490_v26  ;;  %v1333_v20 = vrot.slane %v1319_v45, %v9490_v26 }
 0x450   : > { %v1704_v18 = vpack.c.bf16 %v1700_v10, %v1632_v49  ;;  %v1705_v62 = vpack.c.bf16 %v1701_v60, %v1633_v59  ;;  %v1404_v23 = vcombine.low %v1385_v15, %v1401_v16  ;;  %v1405_v24 = vcombine.high %v1385_v15, %v1401_v16 }
 0x451   : > { %7695 = vmatmul.mubr.msk.bf16.vlgmr.msra.gmra.mrb[4].mxu0 %vm2002_vm1, %v1406_v13  ;;  %7701 = vmatmul.mubr.msk.bf16.vlgmr.msra.gmra.mrb[4].mxu1 %vm2002_vm1, %v1407_v14  ;;  %v1336_v25 = vcombine.low %v1317_v63, %v1333_v20  ;;  %v1337_v27 = vcombine.high %v1317_v63, %v1333_v20  ;;  %v806_v32 = vadd.s32 8, %v9444_v54  ;;  %vm9625_vm2 = vcmp.le.s32.totalorder %v808_v31, %v9444_v54 }
 0x452   : > { %v2101_v21 = vsel %vm2002_vm1, %v1704_v18, 0  ;;  %v2148_v22 = vsel %vm2002_vm1, %v1705_v62, 0  ;;  %7706 = vmatprep.mubr.msk.bf16.mxu0 %vm8926_vm0, %v8924_v4  ;;  %7712 = vmatprep.mubr.msk.bf16.mxu1 %vm8926_vm0, %v8924_v4  ;;  %v9648_v5 = vsub.s32 2, %v9444_v54 }
 0x453   : > { %7705 = vmatpush3.bf16.xpose.msra.mxu0 %v2101_v21  ;;  %7711 = vmatpush3.bf16.xpose.msra.mxu1 %v2148_v22  ;;  %v1408_v28 = vpack.c.bf16 %v1404_v23, %v1336_v25  ;;  %v1409_v29 = vpack.c.bf16 %v1405_v24, %v1337_v27  ;;  %vm9629_vm4 = vcmp.le.s32.totalorder %v808_v31, %v806_v32 }
 0x454   : > { %7716 = vmatprep.subr.bf16.mxu0 %v8924_v4  ;;  %7722 = vmatprep.subr.bf16.mxu1 %v8924_v4  ;;  %v898_v9 = vrot.slane %v9449_v56, %v9648_v5 }
 0x456   : > { %v9657_v49 = vadd.f32 %v9462_v3, %v898_v9  ;;  %v9662_v10 = vadd.f32 %v9458_v61, %v898_v9 }
 0x45a   : > { %7707 = vmatmul.mubr.msk.bf16.vlgmr.msra.gmra.mrb[8].mxu0 %vm2002_vm1, %v1408_v28  ;;  %7713 = vmatmul.mubr.msk.bf16.vlgmr.msra.gmra.mrb[8].mxu1 %vm2002_vm1, %v1409_v29 }
 0x45b   : > { %7718 = vmatprep.mubr.msk.bf16.mxu0 %vm8926_vm0, %v8924_v4  ;;  %7724 = vmatprep.mubr.msk.bf16.mxu1 %vm8926_vm0, %v8924_v4 }
 0x524   : > { %v2043_v34 = vpop.f32.mrb[4].mxu0  ;;  %v2090_v35 = vpop.f32.mrb[4].mxu1 }
 0x525   : > { %v2195_v37 = vsel %vm9625_vm2, %v2043_v34, -1e+30  ;;  %v7696_v38 = vpop.f32.mrb[5].mxu0  ;;  %v7702_v39 = vpop.f32.mrb[5].mxu1  ;;  %v2197_v42 = vsel %vm9625_vm2, %v2090_v35, -1e+30 }
 0x526   : > { %v2046_v53 = vpop.f32.mrb[6].mxu0  ;;  %v2093_v40 = vpop.f32.mrb[6].mxu1  ;;  %v2204_v41 = vsel %vm2203_vm3, %v2195_v37, -inf  ;;  %v2210_v52 = vsel %vm2203_vm3, %v2197_v42, -inf }
 0x527   : > { %v2196_v43 = vsel %vm9629_vm4, %v2046_v53, -1e+30  ;;  %v7703_v44 = vpop.f32.mrb[7].mxu1  ;;  %2205 = vmax.xlane.f32.xlu0 %v2204_v41  ;;  %v7697_v50 = vpop.f32.mrb[7].mxu0  ;;  %v2198_v58 = vsel %vm9629_vm4, %v2093_v40, -1e+30 }
 0x528   : > { %v2207_v51 = vsel %vm2203_vm3, %v2196_v43, -inf  ;;  %v2213_v46 = vsel %vm2203_vm3, %v2198_v58, -inf }
 0x529   : > { %2208 = vmax.xlane.f32.xlu1 %v2207_v51 }
 0x52b   : > { %2211 = vmax.xlane.f32.xlu0 %v2210_v52 }
 0x52d   : > { %v2137_v11 = vpop.f32.mrb[8].mxu0  ;;  %v2184_v12 = vpop.f32.mrb[8].mxu1 }
 0x52e   : > { %v7708_v0 = vpop.f32.mrb[9].mxu0  ;;  %v7714_v7 = vpop.f32.mrb[9].mxu1  ;;  %v2199_v47 = vsel %vm9625_vm2, %v2137_v11, -1e+30  ;;  %v2201_v8 = vsel %vm9625_vm2, %v2184_v12, -1e+30 }
 0x52f   : > { %v2140_v1 = vpop.f32.mrb[10].mxu0  ;;  %v2187_v45 = vpop.f32.mrb[10].mxu1  ;;  %2214 = vmax.xlane.f32.xlu0 %v2213_v46  ;;  %v2216_v6 = vsel %vm2203_vm3, %v2199_v47, -inf  ;;  %v2222_v48 = vsel %vm2203_vm3, %v2201_v8, -inf }
 0x530   : > { %v7715_v17 = vpop.f32.mrb[11].mxu1  ;;  %v7709_v2 = vpop.f32.mrb[11].mxu0  ;;  %v2200_v56 = vsel %vm9629_vm4, %v2140_v1, -1e+30  ;;  %v2202_v59 = vsel %vm9629_vm4, %v2187_v45, -1e+30 }
 0x531   : > { %v2219_v3 = vsel %vm2203_vm3, %v2200_v56, -inf  ;;  %v2225_v61 = vsel %vm2203_vm3, %v2202_v59, -inf }
 0x533   : > { %2217 = vmax.xlane.f32.xlu0 %v2216_v6 }
 0x537   : > { %2223 = vmax.xlane.f32.xlu0 %v2222_v48 }
 0x53a   : > { %1710 = vrot.lane.b32.xlu1 %v9657_v49, %s8927_s28 }
 0x53e   : > { %1714 = vrot.lane.b32.xlu1 %v9662_v10, %s8928_s12 }
 0x54d   : > { %1708 = vrot.lane.b32.xlu0 %v9662_v10, %s8927_s28 }
 0x551   : > { %1720 = vrot.lane.b32.xlu0 %v9662_v10, %s8929_s29 }
 0x562   : > { %2220 = vmax.xlane.f32.xlu1 %v2219_v3 }
 0x566   : > { %2226 = vmax.xlane.f32.xlu1 %v2225_v61 }
 0x577   : > { %1716 = vrot.lane.b32.xlu1 %v9657_v49, %s8928_s12 }
 0x5b4   : > { %v2206_v60 = vpop.xlane.xlu0 %2205 }
 0x5b5   : > { %v2228_v13 = vsub.f32 %v2195_v37, %v2206_v60 }
 0x5b6   : > { %v2209_v14 = vpop.xlane.xlu1 %2208 }
 0x5b7   : > { %v2236_v15 = vmul.f32 1.442695, %v2228_v13  ;;  %v2229_v16 = vsub.f32 %v2196_v43, %v2209_v14 }
 0x5b8   : > { %v2212_v18 = vpop.xlane.xlu0 %2211 }
 0x5b9   : > { %8366 = vpow2.f32 %v2236_v15  ;;  %v2238_v62 = vmul.f32 1.442695, %v2229_v16  ;;  %v2230_v63 = vsub.f32 %v2197_v42, %v2212_v18 }
 0x5ba   : > { %v1711_v50 = vpop.permute.xlu1 %1710 }
 0x5bb   : > { %8368 = vpow2.f32 %v2238_v62  ;;  %v2240_v20 = vmul.f32 1.442695, %v2230_v63 }
 0x5bc   : > { %v2215_v21 = vpop.xlane.xlu0 %2214 }
 0x5bd   : > { %8370 = vpow2.f32 %v2240_v20  ;;  %v2231_v22 = vsub.f32 %v2198_v58, %v2215_v21 }
 0x5be   : > { %v1715_v51 = vpop.permute.xlu1 %1714 }
 0x5bf   : > { %v2242_v23 = vmul.f32 1.442695, %v2231_v22  ;;  %v1727_v48 = vcombine.high %v9662_v10, %v1715_v51 }
 0x5c0   : > { %v2218_v24 = vpop.xlane.xlu0 %2217 }
 0x5c1   : > { %8372 = vpow2.f32 %v2242_v23  ;;  %v2232_v25 = vsub.f32 %v2199_v47, %v2218_v24  ;;  %v1741_v60 = vrot.slane %v1727_v48, %v9487_v19 }
 0x5c3   : > { %v9678_v27 = vpop.eup %8366  ;;  %v2244_v28 = vmul.f32 1.442695, %v2232_v25 }
 0x5c4   : > { %v2224_v29 = vpop.xlane.xlu0 %2223  ;;  %v2252_v31 = vsel %vm2203_vm3, %v9678_v27, 0.0 }
 0x5c5   : > { %v9682_v32 = vpop.eup %8368  ;;  %8374 = vpow2.f32 %v2244_v28  ;;  %v2234_v34 = vsub.f32 %v2201_v8, %v2224_v29  ;;  %2253 = vadd.xlane.f32.xlu0 %v2252_v31  ;;  %v1726_v8 = vcombine.low %v9662_v10, %v1715_v51 }
 0x5c6   : > { %v2255_v35 = vsel %vm2203_vm3, %v9682_v32, 0.0 }
 0x5c7   : > { %v9686_v37 = vpop.eup %8370  ;;  %v2248_v38 = vmul.f32 1.442695, %v2234_v34  ;;  %2256 = vadd.xlane.f32.xlu1 %v2255_v35  ;;  %v1734_v3 = vrot.slane %v1726_v8, %v9487_v19 }
 0x5c8   : > { %v2258_v39 = vsel %vm2203_vm3, %v9686_v37, 0.0  ;;  %v1709_v17 = vpop.permute.xlu0 %1708 }
 0x5c9   : > { %8376 = vpow2.f32 %v2248_v38  ;;  %2259 = vadd.xlane.f32.xlu0 %v2258_v39 }
 0x5cb   : > { %v9690_v53 = vpop.eup %8372 }
 0x5cc   : > { %v2261_v40 = vsel %vm2203_vm3, %v9690_v53, 0.0  ;;  %v1721_v2 = vpop.permute.xlu0 %1720 }
 0x5cd   : > { %2262 = vadd.xlane.f32.xlu1 %v2261_v40  ;;  %v1742_v6 = vcombine.low %v1709_v17, %v1721_v2  ;;  %v1743_v9 = vcombine.high %v1709_v17, %v1721_v2 }
 0x5cf   : > { %v9694_v41 = vpop.eup %8374 }
 0x5d0   : > { %v2264_v42 = vsel %vm2203_vm3, %v9694_v41, 0.0 }
 0x5d1   : > { %2265 = vadd.xlane.f32.xlu0 %v2264_v42 }
 0x5d3   : > { %v9698_v43 = vpop.eup %8376 }
 0x5d4   : > { %v2270_v44 = vsel %vm2203_vm3, %v9698_v43, 0.0 }
 0x5d5   : > { %2271 = vadd.xlane.f32.xlu0 %v2270_v44 }
 0x5de   : > { %1722 = vrot.lane.b32.xlu1 %v9657_v49, %s8929_s29 }
 0x5ef   : > { %v2221_v52 = vpop.xlane.xlu1 %2220 }
 0x5f0   : > { %v2233_v58 = vsub.f32 %v2200_v56, %v2221_v52  ;;  %v1750_v56 = vrot.slane %v1742_v6, %v9487_v19 }
 0x5f2   : > { %v2246_v11 = vmul.f32 1.442695, %v2233_v58  ;;  %v1758_v13 = vcombine.low %v1734_v3, %v1750_v56  ;;  %v1759_v14 = vcombine.high %v1734_v3, %v1750_v56 }
 0x5f3   : > { %v2227_v12 = vpop.xlane.xlu1 %2226 }
 0x5f4   : > { %8378 = vpow2.f32 %v2246_v11  ;;  %v2235_v0 = vsub.f32 %v2202_v59, %v2227_v12  ;;  %v1757_v59 = vrot.slane %v1743_v9, %v9487_v19  ;;  %v1766_v62 = vrot.slane %v1758_v13, %v9490_v26 }
 0x5f5   : > { %v1773_v63 = vrot.slane %v1759_v14, %v9490_v26 }
 0x5f6   : > { %v2250_v7 = vmul.f32 1.442695, %v2235_v0  ;;  %v1774_v15 = vcombine.low %v1741_v60, %v1757_v59  ;;  %v1775_v16 = vcombine.high %v1741_v60, %v1757_v59 }
 0x5f7   : > { %v1717_v61 = vpop.permute.xlu1 %1716  ;;  %v1862_v23 = vcombine.low %v1766_v62, %v1773_v63  ;;  %v7192_v28 = vcombine.high %v1766_v62, %v1773_v63 }
 0x5f8   : > { %8380 = vpow2.f32 %v2250_v7  ;;  %v1782_v10 = vrot.slane %v1774_v15, %v9490_v26  ;;  %v1789_v20 = vrot.slane %v1775_v16, %v9490_v26  ;;  %v1794_v24 = vcombine.low %v9657_v49, %v1717_v61 }
 0x5f9   : > { %v1795_v25 = vcombine.high %v9657_v49, %v1717_v61  ;;  %v1869_v39 = vrot.slane %v1862_v23, %v9487_v19  ;;  %v1877_v49 = vrot.slane %v7192_v28, %v9487_v19 }
 0x5fa   : > { %v1878_v29 = vcombine.low %v1782_v10, %v1789_v20  ;;  %v7193_v31 = vcombine.high %v1782_v10, %v1789_v20  ;;  %v1802_v40 = vrot.slane %v1794_v24, %v9487_v19 }
 0x5fb   : > { %v1809_v42 = vrot.slane %v1795_v25, %v9487_v19  ;;  %v1894_v6 = vcombine.low %v1869_v39, %v1877_v49 }
 0x5fc   : > { %v1885_v58 = vrot.slane %v1878_v29, %v9487_v19  ;;  %v1893_v11 = vrot.slane %v7193_v31, %v9487_v19 }
 0x5fd   : > { %v1902_v15 = vrot.slane %v1894_v6, %v9490_v26 }
 0x5fe   : > { %v9704_v46 = vpop.eup %8378  ;;  %v1910_v8 = vcombine.low %v1885_v58, %v1893_v11  ;;  %v1911_v62 = vcombine.high %v1885_v58, %v1893_v11 }
 0x5ff   : > { %v2267_v47 = vsel %vm2203_vm3, %v9704_v46, 0.0 }
 0x600   : > { %v1918_v16 = vrot.slane %v1910_v8, %v9490_v26 }
 0x602   : > { %v9708_v1 = vpop.eup %8380  ;;  %2268 = vadd.xlane.f32.xlu1 %v2267_v47 }
 0x603   : > { %v2273_v45 = vsel %vm2203_vm3, %v9708_v1, 0.0 }
 0x604   : > { %2274 = vadd.xlane.f32.xlu0 %v2273_v45 }
 0x652   : > { %v2254_v22 = vpop.xlane.xlu0 %2253 }
 0x653   : > { %8382 = vrcp.f32 %v2254_v22 }
 0x654   : > { %v2257_v18 = vpop.xlane.xlu1 %2256 }
 0x655   : > { %8384 = vrcp.f32 %v2257_v18  ;;  %v1895_v18 = vcombine.high %v1869_v39, %v1877_v49 }
 0x656   : > { %v2260_v44 = vpop.xlane.xlu0 %2259 }
 0x65a   : > { %v2263_v21 = vpop.xlane.xlu1 %2262 }
 0x65b   : > { %8386 = vrcp.f32 %v2263_v21 }
 0x65c   : > { %8388 = vrcp.f32 %v2260_v44 }
 0x65d   : > { %v8383_v14 = vpop.eup %8382 }
 0x65e   : > { %v1723_v34 = vpop.permute.xlu1 %1722 }
 0x65f   : > { %v1810_v35 = vcombine.low %v1711_v50, %v1723_v34  ;;  %v1811_v38 = vcombine.high %v1711_v50, %v1723_v34  ;;  %v8385_v63 = vpop.eup %8384  ;;  %v1909_v34 = vrot.slane %v1895_v18, %v9490_v26 }
 0x660   : > { %v2285_v44 = vmul.f32 %v8385_v63, %v9682_v32 }
 0x661   : > { %v1818_v51 = vrot.slane %v1810_v35, %v9487_v19  ;;  %v1825_v52 = vrot.slane %v1811_v38, %v9487_v19  ;;  %v1925_v35 = vrot.slane %v1911_v62, %v9490_v26  ;;  %v1926_v38 = vcombine.low %v1902_v15, %v1918_v16 }
 0x663   : > { %v1826_v50 = vcombine.low %v1802_v40, %v1818_v51  ;;  %v1827_v12 = vcombine.high %v1802_v40, %v1818_v51  ;;  %v1842_v0 = vcombine.low %v1809_v42, %v1825_v52  ;;  %v1843_v7 = vcombine.high %v1809_v42, %v1825_v52 }
 0x664   : > { %v1927_v40 = vcombine.high %v1902_v15, %v1918_v16  ;;  %v8103_v15 = vld [vmem:[%s10616_s9 + $0x28] sm:$0xff]  }
 0x665   : > { %v1834_v47 = vrot.slane %v1826_v50, %v9490_v26  ;;  %v1841_v45 = vrot.slane %v1827_v12, %v9490_v26  ;;  %v1850_v17 = vrot.slane %v1842_v0, %v9490_v26  ;;  %v1857_v2 = vrot.slane %v1843_v7, %v9490_v26  ;;  %v8387_v23 = vpop.eup %8386 }
 0x666   : > { %v8389_v31 = vpop.eup %8388  ;;  %v2287_v51 = vmul.f32 %v8387_v23, %v9690_v53  ;;  %v2284_v50 = vmul.f32 %v8383_v14, %v9678_v27  ;;  %v1928_v0 = vcombine.low %v1909_v34, %v1925_v35  ;;  %v1929_v7 = vcombine.high %v1909_v34, %v1925_v35  ;;  %v2266_v27 = vpop.xlane.xlu0 %2265  ;;  %v8102_v14 = vld [vmem:[%s10616_s9 + $0x20] sm:$0xff]  }
 0x667   : > { %v1930_v9 = vcombine.low %v1834_v47, %v1841_v45  ;;  %v7194_v48 = vcombine.high %v1834_v47, %v1841_v45  ;;  %v1946_v56 = vcombine.low %v1850_v17, %v1857_v2  ;;  %v7195_v3 = vcombine.high %v1850_v17, %v1857_v2 }
 0x668   : > { %v2286_v12 = vmul.f32 %v8389_v31, %v9686_v37  ;;  %v2292_v47 = vpack.c.bf16 %v2285_v44, %v2284_v50  ;;  %8390 = vrcp.f32 %v2266_v27 }
 0x669   : > { %v1937_v59 = vrot.slane %v1930_v9, %v9487_v19  ;;  %v1945_v61 = vrot.slane %v7194_v48, %v9487_v19  ;;  %v1953_v60 = vrot.slane %v1946_v56, %v9487_v19  ;;  %v1961_v13 = vrot.slane %v7195_v3, %v9487_v19 }
 0x66a   : > { %v2293_v45 = vpack.c.bf16 %v2287_v51, %v2286_v12  ;;  %v2272_v37 = vpop.xlane.xlu0 %2271 }
 0x66b   : > { %v1962_v10 = vcombine.low %v1937_v59, %v1945_v61  ;;  %v1978_v20 = vcombine.low %v1953_v60, %v1961_v13  ;;  %v1963_v21 = vcombine.high %v1937_v59, %v1945_v61  ;;  %v1979_v22 = vcombine.high %v1953_v60, %v1961_v13 }
 0x66c   : > { %8392 = vrcp.f32 %v2272_v37 }
 0x66d   : > { %v1970_v24 = vrot.slane %v1962_v10, %v9490_v26  ;;  %v1986_v25 = vrot.slane %v1978_v20, %v9490_v26  ;;  %v1977_v28 = vrot.slane %v1963_v21, %v9490_v26  ;;  %v1993_v29 = vrot.slane %v1979_v22, %v9490_v26 }
 0x66f   : > { %v1994_v39 = vcombine.low %v1970_v24, %v1986_v25  ;;  %v1995_v42 = vcombine.high %v1970_v24, %v1986_v25  ;;  %v1996_v58 = vcombine.low %v1977_v28, %v1993_v29  ;;  %v1997_v11 = vcombine.high %v1977_v28, %v1993_v29 }
 0x671   : > { %v1998_v52 = vpack.c.bf16 %v1994_v39, %v1926_v38  ;;  %v1999_v49 = vpack.c.bf16 %v1995_v42, %v1927_v40  ;;  %v2000_v32 = vpack.c.bf16 %v1996_v58, %v1928_v0  ;;  %v2001_v53 = vpack.c.bf16 %v1997_v11, %v1929_v7 }
 0x672   : > { %v8391_v6 = vpop.eup %8390 }
 0x673   : > { %7717 = vmatpush3.bf16.msra.mxu0 %v1998_v52  ;;  %7723 = vmatpush3.bf16.msra.mxu1 %v1999_v49  ;;  %v2288_v48 = vmul.f32 %v8391_v6, %v9694_v41  ;;  %v8098_v41 = vld [vmem:[%s10616_s9] sm:$0xff]  }
 0x674   : > { %7728 = vmatprep.subr.bf16.mxu0 %v8924_v4  ;;  %7734 = vmatprep.subr.bf16.mxu1 %v8924_v4 }
 0x676   : > { %7719 = vmatmul.mubr.msk.bf16.vlgmr.msra.gmra.mrb[12].mxu0 %vm2203_vm3, %v2292_v47  ;;  %7725 = vmatmul.mubr.msk.bf16.vlgmr.msra.gmra.mrb[12].mxu1 %vm2203_vm3, %v2293_v45  ;;  %v8393_v8 = vpop.eup %8392 }
 0x677   : > { %7729 = vmatpush3.bf16.msra.mxu0 %v2000_v32  ;;  %7735 = vmatpush3.bf16.msra.mxu1 %v2001_v53  ;;  %v2290_v59 = vmul.f32 %v8393_v8, %v9698_v43  ;;  %v8099_v43 = vld [vmem:[%s10616_s9 + $0x8] sm:$0xff]  }
 0x678   : > { %7730 = vmatprep.mubr.msk.bf16.mxu0 %vm8926_vm0, %v8924_v4  ;;  %7736 = vmatprep.mubr.msk.bf16.mxu1 %vm8926_vm0, %v8924_v4 }
 0x679   : > { %7740 = vmatprep.subr.bf16.mxu0 %v8924_v4 }
 0x68f   : > { %v2269_v17 = vpop.xlane.xlu1 %2268 }
 0x690   : > { %8394 = vrcp.f32 %v2269_v17 }
 0x691   : > { %v2275_v2 = vpop.xlane.xlu0 %2274 }
 0x692   : > { %8396 = vrcp.f32 %v2275_v2 }
 0x69a   : > { %v8395_v9 = vpop.eup %8394 }
 0x69b   : > { %v2289_v56 = vmul.f32 %v8395_v9, %v9704_v46  ;;  %v8100_v46 = vld [vmem:[%s10616_s9 + $0x10] sm:$0xff]  }
 0x69c   : > { %v8397_v3 = vpop.eup %8396 }
 0x69d   : > { %v2291_v61 = vmul.f32 %v8397_v3, %v9708_v1  ;;  %v2294_v60 = vpack.c.bf16 %v2289_v56, %v2288_v48  ;;  %v8101_v1 = vld [vmem:[%s10616_s9 + $0x18] sm:$0xff]  }
 0x69f   : > { %7731 = vmatmul.mubr.msk.bf16.vlgmr.msra.gmra.mrb[16].mxu0 %vm2203_vm3, %v2294_v60  ;;  %v2295_v13 = vpack.c.bf16 %v2291_v61, %v2290_v59 }
 0x6a0   : > { %7756 = vmatprep.mubr.msk.bf16.mxu0 %vm8926_vm0, %v8924_v4  ;;  %7741 = vmatpush3.bf16.msra.mxu0 %v8098_v41 }
 0x6a1   : > { %7737 = vmatmul.mubr.msk.bf16.vlgmr.msra.gmra.mrb[16].mxu1 %vm2203_vm3, %v2295_v13  ;;  %7742 = vmatprep.subr.bf16.mxu0 %v8924_v4 }
 0x6a2   : > { %3178 = vmatprep.mubr.bf16.mxu1 %v8925_v30 }
 0x6a4   : > { %7743 = vmatpush3.bf16.msra.mxu0 %v8099_v43 }
 0x6a5   : > { %7744 = vmatprep.subr.bf16.mxu0 %v8924_v4 }
 0x6a8   : > { %7745 = vmatpush3.bf16.msra.mxu0 %v8100_v46 }
 0x6a9   : > { %7746 = vmatprep.subr.bf16.mxu0 %v8924_v4 }
 0x6ac   : > { %7747 = vmatpush3.bf16.msra.mxu0 %v8101_v1 }
 0x6ad   : > { %7748 = vmatprep.subr.bf16.mxu0 %v8924_v4 }
 0x6b0   : > { %7749 = vmatpush3.bf16.msra.mxu0 %v8102_v14 }
 0x6b1   : > { %7750 = vmatprep.subr.bf16.mxu0 %v8924_v4 }
 0x6b4   : > { %7751 = vmatpush3.bf16.msra.mxu0 %v8103_v15 }
 0x6b5   : > { %7752 = vmatprep.subr.bf16.mxu0 %v8924_v4 }
 0x749   : > { %v2333_v16 = vpop.f32.mrb[12].mxu0  ;;  %v2377_v18 = vpop.f32.mrb[12].mxu1 }
 0x74a   : > { %v7720_v62 = vpop.f32.mrb[13].mxu0  ;;  %v7726_v63 = vpop.f32.mrb[13].mxu1 }
 0x74b   : > { %v2336_v10 = vpop.f32.mrb[14].mxu0  ;;  %v2380_v20 = vpop.f32.mrb[14].mxu1 }
 0x74c   : > { %v7721_v21 = vpop.f32.mrb[15].mxu0  ;;  %v7727_v22 = vpop.f32.mrb[15].mxu1 }
 0x74d   : > { %v8104_v21 = vld [vmem:[%s10616_s9 + $0x30] sm:$0xff]  }
 0x74e   : > { %7753 = vmatpush3.bf16.msra.mxu0 %v8104_v21  ;;  %v8466_v21 = vld [vmem:[%s9409_s23] sm:$0xff] }
 0x74f   : > { %7754 = vmatprep.subr.bf16.mxu0 %v8924_v4 }
 0x772   : > { %v2421_v23 = vpop.f32.mrb[16].mxu0 }
 0x773   : > { %v2472_v24 = vcombine.low %v2333_v16, %v2421_v23  ;;  %v2473_v25 = vcombine.high %v2333_v16, %v2421_v23  ;;  %v7732_v28 = vpop.f32.mrb[17].mxu0 }
 0x774   : > { %v2424_v29 = vpop.f32.mrb[18].mxu0  ;;  %v2465_v31 = vpop.f32.mrb[16].mxu1 }
 0x775   : > { %v2540_v34 = vcombine.low %v2336_v10, %v2424_v29  ;;  %v2541_v35 = vcombine.high %v2336_v10, %v2424_v29  ;;  %v7733_v38 = vpop.f32.mrb[19].mxu0  ;;  %v7738_v39 = vpop.f32.mrb[17].mxu1  ;;  %v2488_v40 = vcombine.low %v2377_v18, %v2465_v31  ;;  %v2489_v42 = vcombine.high %v2377_v18, %v2465_v31 }
 0x776   : > { %v2468_v44 = vpop.f32.mrb[18].mxu1  ;;  %v2480_v58 = vrot.slane %v2472_v24, %v9487_v19  ;;  %v2487_v11 = vrot.slane %v2473_v25, %v9487_v19 }
 0x777   : > { %v2556_v51 = vcombine.low %v2380_v20, %v2468_v44  ;;  %v2557_v52 = vcombine.high %v2380_v20, %v2468_v44  ;;  %v7739_v49 = vpop.f32.mrb[19].mxu1  ;;  %v2496_v50 = vrot.slane %v2488_v40, %v9487_v19  ;;  %v2503_v12 = vrot.slane %v2489_v42, %v9487_v19 }
 0x778   : > { %v2548_v0 = vrot.slane %v2540_v34, %v9487_v19  ;;  %v2555_v7 = vrot.slane %v2541_v35, %v9487_v19 }
 0x779   : > { %v2564_v47 = vrot.slane %v2556_v51, %v9487_v19  ;;  %v2571_v45 = vrot.slane %v2557_v52, %v9487_v19  ;;  %v2504_v32 = vcombine.low %v2480_v58, %v2496_v50  ;;  %v2505_v53 = vcombine.high %v2480_v58, %v2496_v50 }
 0x77a   : > { %v2520_v27 = vcombine.low %v2487_v11, %v2503_v12  ;;  %v2521_v37 = vcombine.high %v2487_v11, %v2503_v12  ;;  %v8105_v12 = vld [vmem:[%s10616_s9 + $0x38] sm:$0xff]  }
 0x77b   : > { %v2572_v17 = vcombine.low %v2548_v0, %v2564_v47  ;;  %v2573_v2 = vcombine.high %v2548_v0, %v2564_v47  ;;  %v2588_v6 = vcombine.low %v2555_v7, %v2571_v45  ;;  %v2589_v8 = vcombine.high %v2555_v7, %v2571_v45  ;;  %7755 = vmatpush3.bf16.msra.mxu0 %v8105_v12 }
 0x77c   : > { %v2512_v9 = vrot.slane %v2504_v32, %v9490_v26  ;;  %v2519_v48 = vrot.slane %v2505_v53, %v9490_v26  ;;  %v2528_v56 = vrot.slane %v2520_v27, %v9490_v26  ;;  %v2535_v3 = vrot.slane %v2521_v37, %v9490_v26 }
 0x77d   : > { %v2580_v59 = vrot.slane %v2572_v17, %v9490_v26  ;;  %v2587_v61 = vrot.slane %v2573_v2, %v9490_v26  ;;  %v2596_v60 = vrot.slane %v2588_v6, %v9490_v26  ;;  %v2603_v13 = vrot.slane %v2589_v8, %v9490_v26 }
 0x77e   : > { %v2608_v41 = vcombine.low %v2512_v9, %v2519_v48  ;;  %v7204_v43 = vcombine.high %v2512_v9, %v2519_v48  ;;  %v2624_v46 = vcombine.low %v2528_v56, %v2535_v3  ;;  %v7205_v1 = vcombine.high %v2528_v56, %v2535_v3 }
 0x77f   : > { %v2676_v14 = vcombine.low %v2580_v59, %v2587_v61  ;;  %v7206_v15 = vcombine.high %v2580_v59, %v2587_v61  ;;  %v2692_v16 = vcombine.low %v2596_v60, %v2603_v13  ;;  %v7207_v18 = vcombine.high %v2596_v60, %v2603_v13 }
 0x780   : > { %v2615_v62 = vrot.slane %v2608_v41, %v9487_v19  ;;  %v2623_v63 = vrot.slane %v7204_v43, %v9487_v19  ;;  %v2631_v10 = vrot.slane %v2624_v46, %v9487_v19  ;;  %v2639_v20 = vrot.slane %v7205_v1, %v9487_v19 }
 0x781   : > { %v2683_v22 = vrot.slane %v2676_v14, %v9487_v19  ;;  %v2691_v23 = vrot.slane %v7206_v15, %v9487_v19  ;;  %v2699_v24 = vrot.slane %v2692_v16, %v9487_v19  ;;  %v2707_v25 = vrot.slane %v7207_v18, %v9487_v19  ;;  %v7208_v18 = vld [vmem:[#allocation7] ss:$0 sm:$0xff] }
 0x782   : > { %v2641_v28 = vcombine.high %v2615_v62, %v2623_v63  ;;  %v2657_v29 = vcombine.high %v2631_v10, %v2639_v20  ;;  %v2640_v31 = vcombine.low %v2615_v62, %v2623_v63  ;;  %v2656_v34 = vcombine.low %v2631_v10, %v2639_v20 }
 0x783   : > { %v2709_v35 = vcombine.high %v2683_v22, %v2691_v23  ;;  %v2725_v38 = vcombine.high %v2699_v24, %v2707_v25  ;;  %v2708_v39 = vcombine.low %v2683_v22, %v2691_v23  ;;  %v2724_v40 = vcombine.low %v2699_v24, %v2707_v25  ;;  %v8467_v25 = vld [vmem:[%s9409_s23 + $0x8] sm:$0xff] }
 0x784   : > { %v2655_v42 = vrot.slane %v2641_v28, %v9490_v26  ;;  %v2671_v44 = vrot.slane %v2657_v29, %v9490_v26  ;;  %v2648_v51 = vrot.slane %v2640_v31, %v9490_v26  ;;  %v2664_v52 = vrot.slane %v2656_v34, %v9490_v26  ;;  %v8106_v29 = vld [vmem:[%s10617_s2] ss:$16 sps:$4 sm:$0xff]   ;;  %v8108_v31 = vld [vmem:[%s10617_s2 + $0x4] ss:$16 sps:$4 sm:$0xff]   ;;  %v8109_v34 = vld [vmem:[%s10617_s2 + $0x8] ss:$16 sps:$4 sm:$0xff]  }
 0x785   : > { %v2723_v49 = vrot.slane %v2709_v35, %v9490_v26  ;;  %v2739_v58 = vrot.slane %v2725_v38, %v9490_v26  ;;  %v2716_v11 = vrot.slane %v2708_v39, %v9490_v26  ;;  %v2732_v50 = vrot.slane %v2724_v40, %v9490_v26  ;;  %v8111_v35 = vld [vmem:[%s10617_s2 + $0xc] ss:$16 sps:$4 sm:$0xff]   ;;  %v8114_v38 = vld [vmem:[%s10617_s2 + $0x24] ss:$16 sps:$4 sm:$0xff]   ;;  %3146 = vmatprep.subr.bf16.mxu1 %v8108_v31  ;;  %v8112_v40 = vld [vmem:[%s10617_s2 + $0x20] ss:$16 sps:$4 sm:$0xff]  }
 0x786   : > { %v2674_v0 = vcombine.low %v2655_v42, %v2671_v44  ;;  %v2672_v7 = vcombine.low %v2648_v51, %v2664_v52  ;;  %v2673_v47 = vcombine.high %v2648_v51, %v2664_v52  ;;  %v2675_v45 = vcombine.high %v2655_v42, %v2671_v44  ;;  %v8117_v39 = vld [vmem:[%s10617_s2 + $0x2c] ss:$16 sps:$4 sm:$0xff]   ;;  %3189 = vmatprep.subr.bf16.mxu0 %v8111_v35  ;;  %v8115_v42 = vld [vmem:[%s10617_s2 + $0x28] ss:$16 sps:$4 sm:$0xff]  }
 0x787   : > { %v2742_v32 = vcombine.low %v2723_v49, %v2739_v58  ;;  %v2741_v53 = vcombine.high %v2716_v11, %v2732_v50  ;;  %v2740_v27 = vcombine.low %v2716_v11, %v2732_v50  ;;  %v2743_v37 = vcombine.high %v2723_v49, %v2739_v58  ;;  %3147 = vmatpush1.bf16.msra.mxu1 %v8106_v29  ;;  %v7218_v29 = vld [vmem:[#allocation10] ss:$0 sm:$0xff] }
 0x788   : > { %3148 = vmatprep.subr.bf16.mxu1 %v8114_v38 }
 0x789   : > { %v8041_v17 = vpack.i.bf16 %v2742_v32, %v2674_v0  ;;  %v8036_v2 = vpack.i.bf16 %v2741_v53, %v2673_v47  ;;  %v8046_v6 = vpack.i.bf16 %v2743_v37, %v2675_v45  ;;  %v8118_v0 = vld [vmem:[%s10617_s2 + $0x40] ss:$16 sps:$4 sm:$0xff]   ;;  %v8121_v47 = vld [vmem:[%s10617_s2 + $0x48] ss:$16 sps:$4 sm:$0xff]   ;;  %v8123_v45 = vld [vmem:[%s10617_s2 + $0x4c] ss:$16 sps:$4 sm:$0xff]  }
 0x78a   : > { %v8124_v32 = vld [vmem:[%s10617_s2 + $0x60] ss:$16 sps:$4 sm:$0xff]   ;;  %v8126_v53 = vld [vmem:[%s10617_s2 + $0x64] ss:$16 sps:$4 sm:$0xff]   ;;  %v8129_v37 = vld [vmem:[%s10617_s2 + $0x6c] ss:$16 sps:$4 sm:$0xff]  }
 0x78b   : > { %8042 = vrot.lane.b32.xlu1 %v8041_v17, %s8928_s12  ;;  %8037 = vrot.lane.b32.xlu0 %v8036_v2, %s8929_s29  ;;  %v8132_v17 = vld [vmem:[%s10617_s2 + $0x84] ss:$16 sps:$4 sm:$0xff]   ;;  %v8135_v2 = vld [vmem:[%s10617_s2 + $0x8c] ss:$16 sps:$4 sm:$0xff]  }
 0x78c   : > { %3149 = vmatpush1.bf16.msra.mxu1 %v8112_v40  ;;  %v8155_v40 = vld [vmem:[#allocation13 + $0xc0] sm:$0xff]  }
 0x78f   : > { %8047 = vrot.lane.b32.xlu1 %v8046_v6, %s8927_s28  ;;  %v8130_v6 = vld [vmem:[%s10617_s2 + $0x80] ss:$16 sps:$4 sm:$0xff]  }
 0x7fd   : > { %v8043_v8 = vpop.permute.xlu1 %8042  ;;  %v8038_v9 = vpop.permute.xlu0 %8037 }
 0x7fe   : > { %v8040_v48 = vunpack.i.h.bf16 %v8038_v9  ;;  %v8039_v56 = vunpack.i.l.bf16 %v8038_v9  ;;  %v8045_v3 = vunpack.i.h.bf16 %v8043_v8  ;;  %v8044_v59 = vunpack.i.l.bf16 %v8043_v8  ;;  %v8133_v8 = vld [vmem:[%s10617_s2 + $0x88] ss:$16 sps:$4 sm:$0xff]   ;;  %v8138_v9 = vld [vmem:[%s10617_s2 + $0xa4] ss:$16 sps:$4 sm:$0xff]  }
 0x800   : > { %v2768_v61 = vsel %vm2002_vm1, %v2672_v7, %v8039_v56  ;;  %v2769_v60 = vsel %vm2002_vm1, %v2740_v27, %v8040_v48  ;;  %v8120_v7 = vld [vmem:[%s10617_s2 + $0x44] ss:$16 sps:$4 sm:$0xff]   ;;  %v8127_v27 = vld [vmem:[%s10617_s2 + $0x68] ss:$16 sps:$4 sm:$0xff]   ;;  %v8141_v48 = vld [vmem:[%s10617_s2 + $0xac] ss:$16 sps:$4 sm:$0xff]  }
 0x801   : > { %v8048_v13 = vpop.permute.xlu1 %8047  ;;  %v2771_v46 = vsel %vm2770_vm5, %v2768_v61, %v8044_v59  ;;  %v2772_v1 = vsel %vm2770_vm5, %v2769_v60, %v8045_v3  ;;  %3150 = vmatprep.subr.bf16.mxu1 %v8120_v7  ;;  %v8136_v56 = vld [vmem:[%s10617_s2 + $0xa0] ss:$16 sps:$4 sm:$0xff]   ;;  %v8139_v3 = vld [vmem:[%s10617_s2 + $0xa8] ss:$16 sps:$4 sm:$0xff]   ;;  %v8144_v59 = vld [vmem:[%s10617_s2 + $0xc4] ss:$16 sps:$4 sm:$0xff]  }
 0x802   : > { %v8050_v41 = vunpack.i.h.bf16 %v8048_v13  ;;  %v8049_v43 = vunpack.i.l.bf16 %v8048_v13  ;;  %3151 = vmatpush1.bf16.msra.mxu1 %v8118_v0  ;;  %v8147_v61 = vld [vmem:[%s10617_s2 + $0xcc] ss:$16 sps:$4 sm:$0xff]   ;;  %v8142_v60 = vld [vmem:[%s10617_s2 + $0xc0] ss:$16 sps:$4 sm:$0xff]   ;;  %v8145_v13 = vld [vmem:[%s10617_s2 + $0xc8] ss:$16 sps:$4 sm:$0xff]  }
 0x803   : > { %3152 = vmatprep.subr.bf16.mxu1 %v8126_v53  ;;  %v8165_v0 = vld [vmem:[#allocation13 + $0x90] sm:$0xff]   ;;  %v8166_v7 = vld [vmem:[#allocation13 + $0x58] sm:$0xff]   ;;  %v8170_v53 = vld [vmem:[#allocation13 + $0x60] sm:$0xff]  }
 0x804   : > { %v2774_v14 = vsel %vm2773_vm6, %v2771_v46, %v8049_v43  ;;  %v2775_v15 = vsel %vm2773_vm6, %v2772_v1, %v8050_v41  ;;  %v8150_v41 = vld [vmem:[%s10617_s2 + $0xe4] ss:$16 sps:$4 sm:$0xff]   ;;  %v8153_v43 = vld [vmem:[%s10617_s2 + $0xec] ss:$16 sps:$4 sm:$0xff]   ;;  %v8148_v46 = vld [vmem:[%s10617_s2 + $0xe0] ss:$16 sps:$4 sm:$0xff]  }
 0x805   : > { %v2776_v16 = vpack.c.bf16 %v2775_v15, %v2774_v14  ;;  %v8151_v1 = vld [vmem:[%s10617_s2 + $0xe8] ss:$16 sps:$4 sm:$0xff]  }
 0x806   : > { %3153 = vmatpush1.bf16.msra.mxu1 %v8124_v32  ;;  %v8169_v32 = vld [vmem:[#allocation13 + $0x98] sm:$0xff]  }
 0x807   : > { %7757 = vmatmul.mubr.bf16.vlgmr.msra.gmra.mrb[20].mxu0 %v2776_v16  ;;  %3154 = vmatprep.subr.bf16.mxu1 %v8132_v17  ;;  %v8173_v17 = vld [vmem:[#allocation13 + $0xa0] sm:$0xff]  }
 0x808   : > { %3221 = vmatprep.mubr.bf16.mxu0 %v8925_v30  ;;  %3190 = vmatpush1.bf16.msra.mxu0 %v8109_v34 }
 0x809   : > { %3191 = vmatprep.subr.bf16.mxu0 %v8117_v39  ;;  %v8154_v39 = vld [vmem:[#allocation13 + $0x40] sm:$0xff]  }
 0x80a   : > { %3155 = vmatpush1.bf16.msra.mxu1 %v8130_v6  ;;  %v8175_v6 = vld [vmem:[#allocation13 + $0xe8] sm:$0xff]  }
 0x80b   : > { %3156 = vmatprep.subr.bf16.mxu1 %v8138_v9  ;;  %v8177_v9 = vld [vmem:[#allocation13 + $0xa8] sm:$0xff]  }
 0x80c   : > { %3192 = vmatpush1.bf16.msra.mxu0 %v8115_v42  ;;  %v8156_v42 = vld [vmem:[#allocation13] sm:$0xff]  }
 0x80d   : > { %3193 = vmatprep.subr.bf16.mxu0 %v8123_v45  ;;  %v8168_v45 = vld [vmem:[#allocation13 + $0x18] sm:$0xff]  }
 0x80e   : > { %3157 = vmatpush1.bf16.msra.mxu1 %v8136_v56  ;;  %v8179_v56 = vld [vmem:[#allocation13 + $0xf0] sm:$0xff]  }
 0x80f   : > { %3158 = vmatprep.subr.bf16.mxu1 %v8144_v59  ;;  %v8181_v59 = vld [vmem:[#allocation13 + $0xb0] sm:$0xff]  }
 0x810   : > { %3194 = vmatpush1.bf16.msra.mxu0 %v8121_v47  ;;  %v8167_v47 = vld [vmem:[#allocation13 + $0xd8] sm:$0xff]  }
 0x811   : > { %3195 = vmatprep.subr.bf16.mxu0 %v8129_v37  ;;  %v8172_v37 = vld [vmem:[#allocation13 + $0x20] sm:$0xff]  }
 0x812   : > { %3159 = vmatpush1.bf16.msra.mxu1 %v8142_v60  ;;  %v8183_v60 = vld [vmem:[#allocation13 + $0xf8] sm:$0xff]  }
 0x813   : > { %3160 = vmatprep.subr.bf16.mxu1 %v8150_v41  ;;  %v8185_v41 = vld [vmem:[#allocation13 + $0xb8] sm:$0xff]  }
 0x814   : > { %3196 = vmatpush1.bf16.msra.mxu0 %v8127_v27  ;;  %v8171_v27 = vld [vmem:[#allocation13 + $0xe0] sm:$0xff]  }
 0x815   : > { %3197 = vmatprep.subr.bf16.mxu0 %v8135_v2  ;;  %v8174_v2 = vld [vmem:[#allocation13 + $0x68] sm:$0xff]  }
 0x816   : > { %3161 = vmatpush1.bf16.msra.mxu1 %v8148_v46  ;;  %v9961_v46 = vsub.s32 3, %v9444_v54 }
 0x817   : > { %7541 = vmatprep.subr.bf16.mxu1 %v8154_v39 }
 0x818   : > { %3198 = vmatpush1.bf16.msra.mxu0 %v8133_v8  ;;  %v8176_v8 = vld [vmem:[#allocation13 + $0x28] sm:$0xff]  }
 0x819   : > { %3199 = vmatprep.subr.bf16.mxu0 %v8141_v48  ;;  %v8178_v48 = vld [vmem:[#allocation13 + $0x70] sm:$0xff]  }
 0x81c   : > { %3200 = vmatpush1.bf16.msra.mxu0 %v8139_v3  ;;  %v8180_v3 = vld [vmem:[#allocation13 + $0x30] sm:$0xff]  }
 0x81d   : > { %3201 = vmatprep.subr.bf16.mxu0 %v8147_v61  ;;  %v8182_v61 = vld [vmem:[#allocation13 + $0x78] sm:$0xff]  }
 0x820   : > { %3202 = vmatpush1.bf16.msra.mxu0 %v8145_v13  ;;  %v8184_v13 = vld [vmem:[#allocation13 + $0x38] sm:$0xff]  }
 0x821   : > { %3203 = vmatprep.subr.bf16.mxu0 %v8153_v43  ;;  %v2964_v43 = vld [vmem:[#allocation12] sm:$0xf] }
 0x824   : > { %3204 = vmatpush1.bf16.msra.mxu0 %v8151_v1  ;;  %v2969_v1 = vrot.slane %v2964_v43, %v9447_v55 }
 0x825   : > { %7563 = vmatprep.subr.bf16.mxu0 %v8155_v40 }
 0x8da   : > { %v2882_v62 = vpop.f32.mrb[20].mxu0 }
 0x8db   : > { %v2883_v63 = vadd.f32 %v7208_v18, %v2882_v62  ;;  %v7758_v10 = vpop.f32.mrb[21].mxu0 }
 0x8dc   : > { %v2885_v20 = vpop.f32.mrb[22].mxu0 }
 0x8dd   : > { %v9844_v22 = vadd.f32 %v8466_v21, %v2883_v63  ;;  %v2886_v23 = vadd.f32 %v7208_v18, %v2885_v20  ;;  %v7759_v24 = vpop.f32.mrb[23].mxu0  ;;  %v7217_v21 = vld [vmem:[#allocation9] ss:$0 sm:$0xff] }
 0x8df   : > { %v9847_v28 = vadd.f32 %v8467_v25, %v2886_v23  ;;  %2893 = vadd.xlane.f32.xlu1 %v9844_v22 }
 0x8e1   : > { %2895 = vadd.xlane.f32.xlu0 %v9847_v28 }
 0x96c   : > { %v2894_v44 = vpop.xlane.xlu1 %2893 }
 0x96d   : > { %v2897_v51 = vmul.f32 0.0078125, %v2894_v44  ;;  %v8157_v44 = vld [vmem:[#allocation13 + $0x80] sm:$0xff]  }
 0x96e   : > { %v2896_v52 = vpop.xlane.xlu0 %2895 }
 0x96f   : > { %v9876_v49 = vsub.f32 %v9844_v22, %v2897_v51  ;;  %v2898_v58 = vmul.f32 0.0078125, %v2896_v52  ;;  %v8158_v51 = vld [vmem:[#allocation13 + $0x48] sm:$0xff]  }
 0x970   : > { %v8159_v52 = vld [vmem:[#allocation13 + $0xc8] sm:$0xff]  }
 0x971   : > { %v9879_v11 = vsub.f32 %v9847_v28, %v2898_v58  ;;  %v2901_v50 = vmul.f32 %v9876_v49, %v9876_v49  ;;  %v8161_v58 = vld [vmem:[#allocation13 + $0x88] sm:$0xff]  }
 0x973   : > { %2903 = vadd.xlane.f32.xlu0 %v2901_v50  ;;  %v2902_v12 = vmul.f32 %v9879_v11, %v9879_v11  ;;  %v8163_v50 = vld [vmem:[#allocation13 + $0xd0] sm:$0xff]  }
 0x977   : > { %2905 = vadd.xlane.f32.xlu0 %v2902_v12  ;;  %v8164_v12 = vld [vmem:[#allocation13 + $0x10] sm:$0xff]  }
 0xa00   : > { %v2904_v14 = vpop.xlane.xlu0 %2903 }
 0xa01   : > { %v2907_v15 = vmul.f32 0.0078125, %v2904_v14  ;;  %v2977_v14 = vrot.slane %v2964_v43, %v9648_v5 }
 0xa03   : > { %v2909_v16 = vadd.f32 1e-05, %v2907_v15 }
 0xa04   : > { %v2906_v18 = vpop.xlane.xlu0 %2905 }
 0xa05   : > { %8398 = vrsqrt.f32 %v2909_v16  ;;  %v2908_v62 = vmul.f32 0.0078125, %v2906_v18  ;;  %v2973_v18 = vrot.slane %v2964_v43, %v9452_v57 }
 0xa07   : > { %v2910_v63 = vadd.f32 1e-05, %v2908_v62  ;;  %v2981_v62 = vrot.slane %v2964_v43, %v9961_v46 }
 0xa09   : > { %8400 = vrsqrt.f32 %v2910_v63 }
 0xa0f   : > { %v8399_v10 = vpop.eup %8398 }
 0xa10   : > { %v2913_v20 = vmul.f32 %v8399_v10, %v9876_v49  ;;  %v8160_v49 = vld [vmem:[#allocation13 + $0x8] sm:$0xff]  }
 0xa12   : > { %v2921_v25 = vmul.f32 %v7217_v21, %v2913_v20 }
 0xa13   : > { %v8401_v23 = vpop.eup %8400 }
 0xa14   : > { %v2914_v24 = vmul.f32 %v8401_v23, %v9879_v11  ;;  %v2929_v34 = vadd.f32 %v7218_v29, %v2921_v25  ;;  %v8162_v11 = vld [vmem:[#allocation13 + $0x50] sm:$0xff]  }
 0xa16   : > { %v2922_v31 = vmul.f32 %v7217_v21, %v2914_v24 }
 0xa18   : > { %v2930_v35 = vadd.f32 %v7218_v29, %v2922_v31 }
 0xa1a   : > { %v2931_v38 = vpack.c.bf16 %v2930_v35, %v2929_v34 }
 0xa1c   : > { %3179 = vmatmul.mubr.bf16.vlgmr.msra.gmra.mrb[20].mxu1 %v2931_v38  ;;  %3222 = vmatmul.mubr.bf16.vlgmr.msra.gmra.mrb[24].mxu0 %v2931_v38 }
 0xa1d   : > { %7542 = vmatpush3.bf16.msra.mxu1 %v8156_v42  ;;  %7564 = vmatpush3.bf16.msra.mxu0 %v8157_v44 }
 0xa1e   : > { %7543 = vmatprep.subr.bf16.mxu1 %v8158_v51  ;;  %7565 = vmatprep.subr.bf16.mxu0 %v8159_v52 }
 0xa21   : > { %7544 = vmatpush3.bf16.msra.mxu1 %v8160_v49  ;;  %7566 = vmatpush3.bf16.msra.mxu0 %v8161_v58 }
 0xa22   : > { %7545 = vmatprep.subr.bf16.mxu1 %v8162_v11  ;;  %7567 = vmatprep.subr.bf16.mxu0 %v8163_v50 }
 0xa25   : > { %7546 = vmatpush3.bf16.msra.mxu1 %v8164_v12  ;;  %7568 = vmatpush3.bf16.msra.mxu0 %v8165_v0 }
 0xa26   : > { %7547 = vmatprep.subr.bf16.mxu1 %v8166_v7  ;;  %7569 = vmatprep.subr.bf16.mxu0 %v8167_v47 }
 0xa29   : > { %7548 = vmatpush3.bf16.msra.mxu1 %v8168_v45  ;;  %7570 = vmatpush3.bf16.msra.mxu0 %v8169_v32 }
 0xa2a   : > { %7549 = vmatprep.subr.bf16.mxu1 %v8170_v53  ;;  %7571 = vmatprep.subr.bf16.mxu0 %v8171_v27 }
 0xa2d   : > { %7550 = vmatpush3.bf16.msra.mxu1 %v8172_v37  ;;  %7572 = vmatpush3.bf16.msra.mxu0 %v8173_v17 }
 0xa2e   : > { %7551 = vmatprep.subr.bf16.mxu1 %v8174_v2  ;;  %7573 = vmatprep.subr.bf16.mxu0 %v8175_v6 }
 0xa31   : > { %7552 = vmatpush3.bf16.msra.mxu1 %v8176_v8  ;;  %7574 = vmatpush3.bf16.msra.mxu0 %v8177_v9 }
 0xa32   : > { %7553 = vmatprep.subr.bf16.mxu1 %v8178_v48  ;;  %7575 = vmatprep.subr.bf16.mxu0 %v8179_v56 }
 0xa35   : > { %7554 = vmatpush3.bf16.msra.mxu1 %v8180_v3  ;;  %7576 = vmatpush3.bf16.msra.mxu0 %v8181_v59 }
 0xa36   : > { %7555 = vmatprep.subr.bf16.mxu1 %v8182_v61  ;;  %7577 = vmatprep.subr.bf16.mxu0 %v8183_v60 }
 0xa39   : > { %7556 = vmatpush3.bf16.msra.mxu1 %v8184_v13  ;;  %7578 = vmatpush3.bf16.msra.mxu0 %v8185_v41 }
 0xa3a   : > { %7760 = vmatprep.subr.bf16.mxu0 %v8924_v4 }
 0xaef   : > { %v3180_v15 = vpop.f32.mrb[20].mxu1  ;;  %v3223_v16 = vpop.f32.mrb[24].mxu0 }
 0xaf0   : > { %v3182_v63 = vpop.f32.mrb[21].mxu1  ;;  %v3225_v10 = vpop.f32.mrb[25].mxu0  ;;  %v3181_v23 = vadd.f32 %v3180_v15, %v2969_v1  ;;  %v3224_v24 = vadd.f32 %v3223_v16, %v2977_v14 }
 0xaf1   : > { %v3184_v20 = vpop.f32.mrb[22].mxu1  ;;  %v3227_v21 = vpop.f32.mrb[26].mxu0  ;;  %v3183_v35 = vadd.f32 %v3182_v63, %v2973_v18  ;;  %v3226_v38 = vadd.f32 %v3225_v10, %v2981_v62 }
 0xaf2   : > { %v3185_v25 = vadd.f32 %v3184_v20, %v2969_v1  ;;  %v3228_v29 = vadd.f32 %v3227_v21, %v2977_v14  ;;  %v3186_v31 = vpop.f32.mrb[23].mxu1  ;;  %v3229_v34 = vpop.f32.mrb[27].mxu0 }
 0xaf3   : > { %v3187_v39 = vadd.f32 %v3186_v31, %v2973_v18  ;;  %v3230_v40 = vadd.f32 %v3229_v34, %v2981_v62 }
 0xaf4   : > { %v3232_v42 = vpack.c.bf16 %v3185_v25, %v3181_v23  ;;  %v3234_v44 = vpack.c.bf16 %v3228_v29, %v3224_v24  ;;  %v7251_v24 = vld [vmem:[%s10618_s25] ss:$0 sm:$0xff] }
 0xaf5   : > { %v3233_v51 = vpack.c.bf16 %v3187_v39, %v3183_v35  ;;  %v3235_v52 = vpack.c.bf16 %v3230_v40, %v3226_v38 }
 0xaf6   : > { %v3240_v49 = vmul.bf16 1027030327, %v3232_v42  ;;  %v3242_v58 = vmul.bf16 1027030327, %v3234_v44  ;;  %v3236_v15 = vmul.bf16 1056980736, %v3232_v42 }
 0xaf7   : > { %v3241_v11 = vmul.bf16 1027030327, %v3233_v51  ;;  %v3243_v50 = vmul.bf16 1027030327, %v3235_v52  ;;  %v3237_v13 = vmul.bf16 1056980736, %v3233_v51 }
 0xaf8   : > { %v3244_v12 = vmul.bf16 %v3240_v49, %v3232_v42  ;;  %v3246_v0 = vmul.bf16 %v3242_v58, %v3234_v44  ;;  %v3239_v1 = vmul.bf16 1056980736, %v3235_v52  ;;  %v3238_v18 = vmul.bf16 1056980736, %v3234_v44 }
 0xaf9   : > { %v3245_v7 = vmul.bf16 %v3241_v11, %v3233_v51  ;;  %v3247_v47 = vmul.bf16 %v3243_v50, %v3235_v52 }
 0xafa   : > { %v3248_v45 = vmul.bf16 %v3244_v12, %v3232_v42  ;;  %v3250_v32 = vmul.bf16 %v3246_v0, %v3234_v44  ;;  %v8186_v12 = vld [vmem:[#allocation4 + $0xc0] ss:$12 sps:$4 sm:$0xff]   ;;  %v8188_v0 = vld [vmem:[#allocation4 + $0xc4] ss:$12 sps:$4 sm:$0xff]  }
 0xafb   : > { %v3249_v53 = vmul.bf16 %v3245_v7, %v3233_v51  ;;  %v3251_v27 = vmul.bf16 %v3247_v47, %v3235_v52  ;;  %v8189_v7 = vld [vmem:[#allocation4 + $0xc8] ss:$12 sps:$4 sm:$0xff]   ;;  %3841 = vmatprep.subr.bf16.mxu1 %v8188_v0 }
 0xafc   : > { %v3252_v37 = vadd.bf16 %v3248_v45, %v3232_v42  ;;  %v3254_v17 = vadd.bf16 %v3250_v32, %v3234_v44  ;;  %v8192_v47 = vld [vmem:[#allocation4 + $0xdc] ss:$12 sps:$4 sm:$0xff]   ;;  %v8193_v45 = vld [vmem:[#allocation4 + $0xe0] ss:$12 sps:$4 sm:$0xff]   ;;  %v8190_v32 = vld [vmem:[#allocation4 + $0xd8] ss:$12 sps:$4 sm:$0xff]  }
 0xafd   : > { %v3253_v2 = vadd.bf16 %v3249_v53, %v3233_v51  ;;  %v3255_v6 = vadd.bf16 %v3251_v27, %v3235_v52 }
 0xafe   : > { %v3256_v8 = vmul.bf16 1061961548, %v3252_v37  ;;  %v3258_v56 = vmul.bf16 1061961548, %v3254_v17 }
 0xaff   : > { %v3257_v9 = vmul.bf16 1061961548, %v3253_v2  ;;  %v3259_v48 = vmul.bf16 1061961548, %v3255_v6 }
 0xb00   : > { %8402 = vtanh.bf16 %v3256_v8  ;;  %v8196_v8 = vld [vmem:[#allocation4 + $0xf4] ss:$12 sps:$4 sm:$0xff]  }
 0xb01   : > { %8404 = vtanh.bf16 %v3257_v9  ;;  %v8194_v9 = vld [vmem:[#allocation4 + $0xf0] ss:$12 sps:$4 sm:$0xff]  }
 0xb02   : > { %8406 = vtanh.bf16 %v3259_v48  ;;  %v8197_v48 = vld [vmem:[#allocation4 + $0xf8] ss:$12 sps:$4 sm:$0xff]  }
 0xb03   : > { %8408 = vtanh.bf16 %v3258_v56  ;;  %v8198_v56 = vld [vmem:[#allocation4 + $0x108] ss:$12 sps:$4 sm:$0xff]  }
 0xb0b   : > { %v8403_v3 = vpop.eup %8402 }
 0xb0c   : > { %v8405_v59 = vpop.eup %8404  ;;  %v3264_v61 = vadd.bf16 1065369472, %v8403_v3  ;;  %v8200_v3 = vld [vmem:[#allocation4 + $0x10c] ss:$12 sps:$4 sm:$0xff]  }
 0xb0d   : > { %v8407_v60 = vpop.eup %8406  ;;  %v3265_v41 = vadd.bf16 1065369472, %v8405_v59  ;;  %v8201_v59 = vld [vmem:[#allocation4 + $0x110] ss:$12 sps:$4 sm:$0xff]  }
 0xb0e   : > { %v8409_v43 = vpop.eup %8408  ;;  %v3267_v14 = vadd.bf16 1065369472, %v8407_v60  ;;  %v3268_v10 = vmul.bf16 %v3264_v61, %v3236_v15  ;;  %v8204_v61 = vld [vmem:[#allocation4 + $0x124] ss:$12 sps:$4 sm:$0xff]   ;;  %v8202_v60 = vld [vmem:[#allocation4 + $0x120] ss:$12 sps:$4 sm:$0xff]  }
 0xb0f   : > { %v3269_v16 = vmul.bf16 %v3265_v41, %v3237_v13  ;;  %v3266_v62 = vadd.bf16 1065369472, %v8409_v43  ;;  %v8205_v13 = vld [vmem:[#allocation4 + $0x128] ss:$12 sps:$4 sm:$0xff]   ;;  %v8206_v43 = vld [vmem:[#allocation4 + $0x138] ss:$12 sps:$4 sm:$0xff]  }
 0xb10   : > { %v3271_v63 = vmul.bf16 %v3267_v14, %v3239_v1  ;;  %v8208_v41 = vld [vmem:[#allocation4 + $0x13c] ss:$12 sps:$4 sm:$0xff]   ;;  %v8209_v1 = vld [vmem:[#allocation4 + $0x140] ss:$12 sps:$4 sm:$0xff]  }
 0xb11   : > { %3567 = vmatprep.mubr.bf16.mxu1 %v3269_v16  ;;  %v3270_v20 = vmul.bf16 %v3266_v62, %v3238_v18  ;;  %v8212_v14 = vld [vmem:[#allocation4 + $0x154] ss:$12 sps:$4 sm:$0xff]   ;;  %v8210_v15 = vld [vmem:[#allocation4 + $0x150] ss:$12 sps:$4 sm:$0xff]   ;;  %v8213_v16 = vld [vmem:[#allocation4 + $0x158] ss:$12 sps:$4 sm:$0xff]  }
 0xb12   : > { %3608 = vmatprep.mubr.bf16.mxu0 %v3271_v63  ;;  %3568 = vmatmul.mubr.bf16.vlgmr.msra.gmra.mrb[24].mxu1 %v3268_v10  ;;  %v8216_v18 = vld [vmem:[#allocation4 + $0x16c] ss:$12 sps:$4 sm:$0xff]   ;;  %v8214_v62 = vld [vmem:[#allocation4 + $0x168] ss:$12 sps:$4 sm:$0xff]   ;;  %v8217_v63 = vld [vmem:[#allocation4 + $0x170] ss:$12 sps:$4 sm:$0xff]  }
 0xb13   : > { %3609 = vmatmul.mubr.bf16.vlgmr.msra.gmra.mrb[28].mxu0 %v3270_v20  ;;  %3873 = vmatprep.mubr.bf16.mxu1 %v8925_v30 }
 0xb14   : > { %7776 = vmatprep.mubr.msk.bf16.mxu0 %vm8926_vm0, %v8924_v4  ;;  %7761 = vmatpush3.bf16.msra.mxu0 %v8189_v7 }
 0xb15   : > { %3842 = vmatpush1.bf16.msra.mxu1 %v8186_v12  ;;  %7762 = vmatprep.subr.bf16.mxu0 %v8924_v4 }
 0xb16   : > { %3843 = vmatprep.subr.bf16.mxu1 %v8192_v47 }
 0xb18   : > { %7763 = vmatpush3.bf16.msra.mxu0 %v8193_v45 }
 0xb19   : > { %3844 = vmatpush1.bf16.msra.mxu1 %v8190_v32  ;;  %7764 = vmatprep.subr.bf16.mxu0 %v8924_v4 }
 0xb1a   : > { %3845 = vmatprep.subr.bf16.mxu1 %v8196_v8 }
 0xb1c   : > { %7765 = vmatpush3.bf16.msra.mxu0 %v8197_v48 }
 0xb1d   : > { %3846 = vmatpush1.bf16.msra.mxu1 %v8194_v9  ;;  %7766 = vmatprep.subr.bf16.mxu0 %v8924_v4 }
 0xb1e   : > { %3847 = vmatprep.subr.bf16.mxu1 %v8200_v3 }
 0xb20   : > { %7767 = vmatpush3.bf16.msra.mxu0 %v8201_v59 }
 0xb21   : > { %3848 = vmatpush1.bf16.msra.mxu1 %v8198_v56  ;;  %7768 = vmatprep.subr.bf16.mxu0 %v8924_v4 }
 0xb22   : > { %3849 = vmatprep.subr.bf16.mxu1 %v8204_v61 }
 0xb24   : > { %7769 = vmatpush3.bf16.msra.mxu0 %v8205_v13 }
 0xb25   : > { %3850 = vmatpush1.bf16.msra.mxu1 %v8202_v60  ;;  %7770 = vmatprep.subr.bf16.mxu0 %v8924_v4 }
 0xb26   : > { %3851 = vmatprep.subr.bf16.mxu1 %v8208_v41 }
 0xb28   : > { %7771 = vmatpush3.bf16.msra.mxu0 %v8209_v1 }
 0xb29   : > { %3852 = vmatpush1.bf16.msra.mxu1 %v8206_v43  ;;  %7772 = vmatprep.subr.bf16.mxu0 %v8924_v4 }
 0xb2a   : > { %3853 = vmatprep.subr.bf16.mxu1 %v8212_v14 }
 0xb2c   : > { %7773 = vmatpush3.bf16.msra.mxu0 %v8213_v16 }
 0xb2d   : > { %3854 = vmatpush1.bf16.msra.mxu1 %v8210_v15  ;;  %7774 = vmatprep.subr.bf16.mxu0 %v8924_v4 }
 0xb2e   : > { %3855 = vmatprep.subr.bf16.mxu1 %v8216_v18 }
 0xb30   : > { %7775 = vmatpush3.bf16.msra.mxu0 %v8217_v63 }
 0xb31   : > { %3856 = vmatpush1.bf16.msra.mxu1 %v8214_v62  ;;  %7804 = vmatprep.subr.bf16.mxu0 %v8924_v4 }
 0xb32   : > { %7780 = vmatprep.subr.bf16.mxu1 %v8924_v4 }
 0xbe5   : > { %v7557_v21 = vpop.f32.mrb[24].mxu1 }
 0xbe6   : > { %v7579_v23 = vpop.f32.mrb[28].mxu0  ;;  %v7558_v25 = vpop.f32.mrb[25].mxu1 }
 0xbe7   : > { %v7559_v29 = vadd.f32 %v7558_v25, %v7557_v21  ;;  %v7580_v31 = vpop.f32.mrb[29].mxu0  ;;  %v7560_v34 = vpop.f32.mrb[26].mxu1 }
 0xbe8   : > { %v7581_v35 = vadd.f32 %v7580_v31, %v7579_v23  ;;  %v7582_v38 = vpop.f32.mrb[30].mxu0  ;;  %v7561_v39 = vpop.f32.mrb[27].mxu1  ;;  %v7285_v31 = vld [vmem:[%s10611_s8 + $0x1] ss:$0 sm:$0xff] }
 0xbe9   : > { %v3570_v40 = vadd.f32 %v7559_v29, %v7251_v24  ;;  %v7562_v42 = vadd.f32 %v7561_v39, %v7560_v34  ;;  %v7583_v44 = vpop.f32.mrb[31].mxu0 }
 0xbea   : > { %v7584_v51 = vadd.f32 %v7583_v44, %v7582_v38 }
 0xbeb   : > { %v3611_v52 = vadd.f32 %v7581_v35, %v3570_v40  ;;  %v3573_v49 = vadd.f32 %v7562_v42, %v7251_v24  ;;  %v7286_v40 = vld [vmem:[#allocation2 + $0x1] ss:$0 sm:$0xff] }
 0xbed   : > { %v3614_v58 = vadd.f32 %v7584_v51, %v3573_v49  ;;  %v9974_v11 = vadd.f32 %v3611_v52, %v9844_v22  ;;  %v3696_v49 = vld [vmem:[#allocation6 + $0x3] sm:$0x7] }
 0xbee   : > { %v3709_v47 = vrot.slane %v3696_v49, %v9648_v5  ;;  %v3705_v45 = vrot.slane %v3696_v49, %v9452_v57 }
 0xbef   : > { %3623 = vadd.xlane.f32.xlu1 %v9974_v11  ;;  %v9978_v50 = vadd.f32 %v3614_v58, %v9847_v28  ;;  %v3701_v58 = vrot.slane %v3696_v49, %v9447_v55 }
 0xbf1   : > { %3625 = vadd.xlane.f32.xlu0 %v9978_v50 }
 0xc7c   : > { %v3624_v22 = vpop.xlane.xlu1 %3623 }
 0xc7d   : > { %v3627_v28 = vmul.f32 0.0078125, %v3624_v22 }
 0xc7e   : > { %v3626_v53 = vpop.xlane.xlu0 %3625 }
 0xc7f   : > { %v3629_v27 = vsub.f32 %v9974_v11, %v3627_v28  ;;  %v3628_v37 = vmul.f32 0.0078125, %v3626_v53 }
 0xc81   : > { %v3630_v17 = vsub.f32 %v9978_v50, %v3628_v37  ;;  %v3631_v2 = vmul.f32 %v3629_v27, %v3629_v27 }
 0xc83   : > { %3633 = vadd.xlane.f32.xlu1 %v3631_v2  ;;  %v3632_v6 = vmul.f32 %v3630_v17, %v3630_v17 }
 0xc85   : > { %3635 = vadd.xlane.f32.xlu0 %v3632_v6 }
 0xd10   : > { %v3634_v10 = vpop.xlane.xlu1 %3633 }
 0xd11   : > { %v3637_v20 = vmul.f32 0.0078125, %v3634_v10 }
 0xd12   : > { %v3636_v21 = vpop.xlane.xlu0 %3635 }
 0xd13   : > { %v3639_v23 = vadd.f32 1e-05, %v3637_v20  ;;  %v3638_v24 = vmul.f32 0.0078125, %v3636_v21 }
 0xd15   : > { %8410 = vrsqrt.f32 %v3639_v23  ;;  %v3640_v25 = vadd.f32 1e-05, %v3638_v24 }
 0xd17   : > { %8412 = vrsqrt.f32 %v3640_v25 }
 0xd1f   : > { %v8411_v29 = vpop.eup %8410 }
 0xd20   : > { %v3643_v34 = vmul.f32 %v8411_v29, %v3629_v27 }
 0xd21   : > { %v8413_v35 = vpop.eup %8412 }
 0xd22   : > { %v3644_v38 = vmul.f32 %v8413_v35, %v3630_v17  ;;  %v3651_v39 = vmul.f32 %v7285_v31, %v3643_v34 }
 0xd24   : > { %v3652_v42 = vmul.f32 %v7285_v31, %v3644_v38  ;;  %v3659_v44 = vadd.f32 %v7286_v40, %v3651_v39 }
 0xd26   : > { %v3660_v51 = vadd.f32 %v7286_v40, %v3652_v42 }
 0xd28   : > { %v3661_v52 = vpack.c.bf16 %v3660_v51, %v3659_v44 }
 0xd2a   : > { %3874 = vmatmul.mubr.bf16.vlgmr.msra.gmra.mrb[28].mxu1 %v3661_v52  ;;  %7777 = vmatmul.mubr.bf16.vlgmr.msra.gmra.mrb[32].mxu0 %v3661_v52 }
 0xd2b   : > { %7782 = vmatprep.mubr.msk.bf16.mxu1 %vm8926_vm0, %v8924_v4  ;;  %7806 = vmatprep.mubr.msk.bf16.mxu0 %vm8926_vm0, %v8924_v4 }
 0xdfd   : > { %v3875_v12 = vpop.f32.mrb[28].mxu1  ;;  %v3918_v0 = vpop.f32.mrb[32].mxu0 }
 0xdfe   : > { %v10000_v7 = vadd.f32 %v3875_v12, %v3701_v58  ;;  %v3877_v32 = vpop.f32.mrb[29].mxu1  ;;  %v7778_v22 = vpop.f32.mrb[33].mxu0  ;;  %v10026_v9 = vadd.f32 %v3918_v0, %v3709_v47 }
 0xdff   : > { %v3879_v28 = vpop.f32.mrb[30].mxu1  ;;  %v3921_v53 = vpop.f32.mrb[34].mxu0  ;;  %v3878_v6 = vadd.f32 %v3877_v32, %v3705_v45 }
 0xe00   : > { %v10004_v27 = vadd.f32 %v3879_v28, %v3701_v58  ;;  %v10006_v37 = vadd.f32 %v3921_v53, %v3709_v47  ;;  %v3881_v17 = vpop.f32.mrb[31].mxu1  ;;  %v7779_v2 = vpop.f32.mrb[35].mxu0  ;;  %3927 = vrot.lane.b32.xlu1 %v10000_v7, %s8927_s28 }
 0xe01   : > { %v3882_v8 = vadd.f32 %v3881_v17, %v3705_v45 }
 0xe02   : > { %3929 = vrot.lane.b32.xlu0 %v10004_v27, %s8927_s28 }
 0xe04   : > { %4223 = vrot.lane.b32.xlu1 %v3878_v6, %s8927_s28 }
 0xe06   : > { %4225 = vrot.lane.b32.xlu0 %v3882_v8, %s8927_s28 }
 0xe08   : > { %4229 = vrot.lane.b32.xlu1 %v3878_v6, %s8928_s12 }
 0xe0a   : > { %4237 = vrot.lane.b32.xlu0 %v3882_v8, %s8929_s29 }
 0xe0c   : > { %4235 = vrot.lane.b32.xlu1 %v3878_v6, %s8929_s29 }
 0xe0e   : > { %3935 = vrot.lane.b32.xlu0 %v10004_v27, %s8928_s12 }
 0xe10   : > { %4231 = vrot.lane.b32.xlu1 %v3882_v8, %s8928_s12 }
 0xe12   : > { %3941 = vrot.lane.b32.xlu0 %v10004_v27, %s8929_s29 }
 0xe14   : > { %3933 = vrot.lane.b32.xlu1 %v10000_v7, %s8928_s12 }
 0xe18   : > { %3939 = vrot.lane.b32.xlu1 %v10000_v7, %s8929_s29 }
 0xe1c   : > { %4519 = vrot.lane.b32.xlu1 %v10026_v9, %s8927_s28 }
 0xe72   : > { %v10030_v48 = vpop.permute.xlu1 %3927 }
 0xe74   : > { %v3930_v56 = vpop.permute.xlu0 %3929 }
 0xe76   : > { %v4224_v3 = vpop.permute.xlu1 %4223 }
 0xe78   : > { %v4226_v59 = vpop.permute.xlu0 %4225 }
 0xe7a   : > { %v4230_v61 = vpop.permute.xlu1 %4229 }
 0xe7b   : > { %v4241_v60 = vcombine.low %v3878_v6, %v4230_v61  ;;  %v4242_v13 = vcombine.high %v3878_v6, %v4230_v61 }
 0xe7c   : > { %v4238_v41 = vpop.permute.xlu0 %4237 }
 0xe7d   : > { %v4249_v15 = vrot.slane %v4241_v60, %v9487_v19  ;;  %v4256_v16 = vrot.slane %v4242_v13, %v9487_v19  ;;  %v4325_v62 = vcombine.low %v4226_v59, %v4238_v41  ;;  %v4326_v63 = vcombine.high %v4226_v59, %v4238_v41 }
 0xe7e   : > { %v4236_v43 = vpop.permute.xlu1 %4235 }
 0xe7f   : > { %v4257_v1 = vcombine.low %v4224_v3, %v4236_v43  ;;  %v4258_v14 = vcombine.high %v4224_v3, %v4236_v43  ;;  %v4333_v38 = vrot.slane %v4325_v62, %v9487_v19  ;;  %v4340_v39 = vrot.slane %v4326_v63, %v9487_v19 }
 0xe80   : > { %v3936_v18 = vpop.permute.xlu0 %3935 }
 0xe81   : > { %v4265_v10 = vrot.slane %v4257_v1, %v9487_v19  ;;  %v4272_v20 = vrot.slane %v4258_v14, %v9487_v19  ;;  %v4013_v40 = vcombine.low %v10004_v27, %v3936_v18  ;;  %v4014_v42 = vcombine.high %v10004_v27, %v3936_v18 }
 0xe82   : > { %v4232_v21 = vpop.permute.xlu1 %4231 }
 0xe83   : > { %v4273_v23 = vcombine.low %v4249_v15, %v4265_v10  ;;  %v4274_v24 = vcombine.high %v4249_v15, %v4265_v10  ;;  %v4289_v25 = vcombine.low %v4256_v16, %v4272_v20  ;;  %v4290_v29 = vcombine.high %v4256_v16, %v4272_v20 }
 0xe84   : > { %v4309_v31 = vcombine.low %v3882_v8, %v4232_v21  ;;  %v4310_v34 = vcombine.high %v3882_v8, %v4232_v21  ;;  %v3942_v35 = vpop.permute.xlu0 %3941  ;;  %v4021_v27 = vrot.slane %v4013_v40, %v9487_v19  ;;  %v4028_v17 = vrot.slane %v4014_v42, %v9487_v19 }
 0xe85   : > { %v4281_v44 = vrot.slane %v4273_v23, %v9490_v26  ;;  %v4288_v51 = vrot.slane %v4274_v24, %v9490_v26  ;;  %v4297_v58 = vrot.slane %v4289_v25, %v9490_v26  ;;  %v4304_v12 = vrot.slane %v4290_v29, %v9490_v26 }
 0xe86   : > { %v4317_v52 = vrot.slane %v4309_v31, %v9487_v19  ;;  %v4324_v49 = vrot.slane %v4310_v34, %v9487_v19  ;;  %v4029_v0 = vcombine.low %v3930_v56, %v3942_v35  ;;  %v4030_v47 = vcombine.high %v3930_v56, %v3942_v35  ;;  %v3934_v45 = vpop.permute.xlu1 %3933 }
 0xe87   : > { %v4377_v2 = vcombine.low %v4281_v44, %v4288_v51  ;;  %v7315_v6 = vcombine.high %v4281_v44, %v4288_v51  ;;  %v4393_v59 = vcombine.low %v4297_v58, %v4304_v12  ;;  %v7316_v61 = vcombine.high %v4297_v58, %v4304_v12 }
 0xe88   : > { %v4341_v32 = vcombine.low %v4317_v52, %v4333_v38  ;;  %v4342_v22 = vcombine.high %v4317_v52, %v4333_v38  ;;  %v4357_v28 = vcombine.low %v4324_v49, %v4340_v39  ;;  %v4358_v53 = vcombine.high %v4324_v49, %v4340_v39 }
 0xe89   : > { %v4037_v60 = vrot.slane %v4029_v0, %v9487_v19  ;;  %v4044_v56 = vrot.slane %v4030_v47, %v9487_v19  ;;  %v10055_v63 = vrot.slane %v4377_v2, %v9487_v19  ;;  %v10058_v10 = vrot.slane %v7315_v6, %v9487_v19 }
 0xe8a   : > { %v4349_v8 = vrot.slane %v4341_v32, %v9490_v26  ;;  %v4356_v3 = vrot.slane %v4342_v22, %v9490_v26  ;;  %v4365_v13 = vrot.slane %v4357_v28, %v9490_v26  ;;  %v4372_v41 = vrot.slane %v4358_v53, %v9490_v26  ;;  %v3940_v62 = vpop.permute.xlu1 %3939 }
 0xe8b   : > { %v4045_v14 = vcombine.low %v4021_v27, %v4037_v60  ;;  %v4046_v15 = vcombine.high %v4021_v27, %v4037_v60  ;;  %v4061_v16 = vcombine.low %v4028_v17, %v4044_v56  ;;  %v4062_v18 = vcombine.high %v4028_v17, %v4044_v56 }
 0xe8c   : > { %v4445_v43 = vcombine.low %v4349_v8, %v4356_v3  ;;  %v7317_v1 = vcombine.high %v4349_v8, %v4356_v3  ;;  %v3945_v20 = vcombine.low %v10000_v7, %v3934_v45  ;;  %v3946_v21 = vcombine.high %v10000_v7, %v3934_v45 }
 0xe8d   : > { %v4053_v23 = vrot.slane %v4045_v14, %v9490_v26  ;;  %v4060_v24 = vrot.slane %v4046_v15, %v9490_v26  ;;  %v4069_v25 = vrot.slane %v4061_v16, %v9490_v26  ;;  %v4076_v29 = vrot.slane %v4062_v18, %v9490_v26 }
 0xe8e   : > { %v10067_v31 = vrot.slane %v4393_v59, %v9487_v19  ;;  %v10070_v34 = vrot.slane %v7316_v61, %v9487_v19  ;;  %v3961_v35 = vcombine.low %v10030_v48, %v3940_v62  ;;  %v3962_v38 = vcombine.high %v10030_v48, %v3940_v62  ;;  %v10188_v33 = vpop.permute.xlu1 %4519 }
 0xe8f   : > { %v10075_v7 = vrot.slane %v4445_v43, %v9487_v19  ;;  %v10078_v39 = vrot.slane %v7317_v1, %v9487_v19  ;;  %v4461_v40 = vcombine.low %v4365_v13, %v4372_v41  ;;  %v7318_v42 = vcombine.high %v4365_v13, %v4372_v41 }
 0xe90   : > { %v3953_v44 = vrot.slane %v3945_v20, %v9487_v19  ;;  %v3960_v51 = vrot.slane %v3946_v21, %v9487_v19  ;;  %v3969_v52 = vrot.slane %v3961_v35, %v9487_v19  ;;  %v3976_v49 = vrot.slane %v3962_v38, %v9487_v19 }
 0xe91   : > { %v4149_v58 = vcombine.low %v4053_v23, %v4060_v24  ;;  %v7313_v12 = vcombine.high %v4053_v23, %v4060_v24  ;;  %v4165_v0 = vcombine.low %v4069_v25, %v4076_v29  ;;  %v7314_v48 = vcombine.high %v4069_v25, %v4076_v29 }
 0xe92   : > { %v3977_v47 = vcombine.low %v3953_v44, %v3969_v52  ;;  %v3978_v45 = vcombine.high %v3953_v44, %v3969_v52  ;;  %v3993_v32 = vcombine.low %v3960_v51, %v3976_v49  ;;  %v3994_v22 = vcombine.high %v3960_v51, %v3976_v49 }
 0xe93   : > { %v4468_v28 = vrot.slane %v4461_v40, %v9487_v19  ;;  %v4476_v53 = vrot.slane %v7318_v42, %v9487_v19  ;;  %v4409_v27 = vcombine.low %v10055_v63, %v10058_v10  ;;  %v4425_v17 = vcombine.low %v10067_v31, %v10070_v34 }
 0xe94   : > { %v3985_v2 = vrot.slane %v3977_v47, %v9490_v26  ;;  %v3992_v6 = vrot.slane %v3978_v45, %v9490_v26  ;;  %v4001_v8 = vrot.slane %v3993_v32, %v9490_v26  ;;  %v4008_v3 = vrot.slane %v3994_v22, %v9490_v26 }
 0xe95   : > { %v10095_v59 = vrot.slane %v4149_v58, %v9487_v19  ;;  %v10098_v61 = vrot.slane %v7313_v12, %v9487_v19  ;;  %v10101_v60 = vrot.slane %v4165_v0, %v9487_v19  ;;  %v4180_v56 = vrot.slane %v7314_v48, %v9487_v19 }
 0xe96   : > { %v4081_v13 = vcombine.low %v3985_v2, %v3992_v6  ;;  %v7311_v41 = vcombine.high %v3985_v2, %v3992_v6  ;;  %v4097_v43 = vcombine.low %v4001_v8, %v4008_v3  ;;  %v7312_v1 = vcombine.high %v4001_v8, %v4008_v3 }
 0xe97   : > { %v4417_v14 = vrot.slane %v4409_v27, %v9490_v26  ;;  %v4433_v15 = vrot.slane %v4425_v17, %v9490_v26  ;;  %v4477_v16 = vcombine.low %v10075_v7, %v10078_v39  ;;  %v4493_v18 = vcombine.low %v4468_v28, %v4476_v53 }
 0xe98   : > { %v4088_v62 = vrot.slane %v4081_v13, %v9487_v19  ;;  %v4096_v20 = vrot.slane %v7311_v41, %v9487_v19  ;;  %v4104_v21 = vrot.slane %v4097_v43, %v9487_v19  ;;  %v4112_v23 = vrot.slane %v7312_v1, %v9487_v19 }
 0xe99   : > { %v4181_v24 = vcombine.low %v10095_v59, %v10098_v61  ;;  %v4197_v25 = vcombine.low %v10101_v60, %v4180_v56  ;;  %v4485_v29 = vrot.slane %v4477_v16, %v9490_v26  ;;  %v4501_v35 = vrot.slane %v4493_v18, %v9490_v26 }
 0xe9a   : > { %v4113_v38 = vcombine.low %v4088_v62, %v4096_v20  ;;  %v4129_v40 = vcombine.low %v4104_v21, %v4112_v23  ;;  %v4441_v42 = vcombine.low %v4417_v14, %v4433_v15  ;;  %v4478_v45 = vcombine.high %v10075_v7, %v10078_v39 }
 0xe9b   : > { %v4509_v44 = vcombine.low %v4485_v29, %v4501_v35  ;;  %v4189_v49 = vrot.slane %v4181_v24, %v9490_v26  ;;  %v4205_v58 = vrot.slane %v4197_v25, %v9490_v26  ;;  %v4510_v0 = vcombine.high %v4485_v29, %v4501_v35 }
 0xe9c   : > { %v4121_v51 = vrot.slane %v4113_v38, %v9490_v26  ;;  %v4137_v52 = vrot.slane %v4129_v40, %v9490_v26  ;;  %v4494_v32 = vcombine.high %v4468_v28, %v4476_v53  ;;  %v4442_v27 = vcombine.high %v4417_v14, %v4433_v15 }
 0xe9d   : > { %v4513_v12 = vpack.c.bf16 %v4509_v44, %v4441_v42  ;;  %v4213_v22 = vcombine.low %v4189_v49, %v4205_v58  ;;  %v4410_v17 = vcombine.high %v10055_v63, %v10058_v10  ;;  %v4426_v2 = vcombine.high %v10067_v31, %v10070_v34 }
 0xe9e   : > { %v4145_v47 = vcombine.low %v4121_v51, %v4137_v52  ;;  %v4514_v8 = vpack.c.bf16 %v4510_v0, %v4442_v27  ;;  %v4492_v3 = vrot.slane %v4478_v45, %v9490_v26  ;;  %v4508_v13 = vrot.slane %v4494_v32, %v9490_v26 }
 0xe9f   : > { %v4817_v48 = vsel %vm2002_vm1, %v4513_v12, 0  ;;  %v4424_v7 = vrot.slane %v4410_v17, %v9490_v26  ;;  %v4440_v39 = vrot.slane %v4426_v2, %v9490_v26  ;;  %v4114_v63 = vcombine.high %v4088_v62, %v4096_v20 }
 0xea0   : > { %7781 = vmatpush3.bf16.xpose.msra.mxu1 %v4817_v48  ;;  %v4217_v6 = vpack.c.bf16 %v4213_v22, %v4145_v47  ;;  %v4864_v28 = vsel %vm2002_vm1, %v4514_v8, 0  ;;  %v4511_v53 = vcombine.low %v4492_v3, %v4508_v13  ;;  %v4130_v10 = vcombine.high %v4104_v21, %v4112_v23 }
 0xea1   : > { %7786 = vmatprep.subr.bf16.mxu1 %v8924_v4  ;;  %v4146_v31 = vcombine.high %v4121_v51, %v4137_v52  ;;  %v4443_v34 = vcombine.low %v4424_v7, %v4440_v39  ;;  %v4182_v41 = vcombine.high %v10095_v59, %v10098_v61  ;;  %v4198_v43 = vcombine.high %v10101_v60, %v4180_v56 }
 0xea2   : > { %v4214_v1 = vcombine.high %v4189_v49, %v4205_v58  ;;  %v4128_v15 = vrot.slane %v4114_v63, %v9490_v26  ;;  %v4144_v16 = vrot.slane %v4130_v10, %v9490_v26  ;;  %v4512_v21 = vcombine.high %v4492_v3, %v4508_v13 }
 0xea3   : > { %v4515_v14 = vpack.c.bf16 %v4511_v53, %v4443_v34  ;;  %v4196_v24 = vrot.slane %v4182_v41, %v9490_v26  ;;  %v4212_v62 = vrot.slane %v4198_v43, %v9490_v26  ;;  %v4444_v61 = vcombine.high %v4424_v7, %v4440_v39 }
 0xea4   : > { %v4218_v18 = vpack.c.bf16 %v4214_v1, %v4146_v31  ;;  %v4147_v59 = vcombine.low %v4128_v15, %v4144_v16  ;;  %v4148_v29 = vcombine.high %v4128_v15, %v4144_v16 }
 0xea5   : > { %v4911_v20 = vsel %vm2002_vm1, %v4515_v14, 0  ;;  %v4215_v60 = vcombine.low %v4196_v24, %v4212_v62  ;;  %v4516_v56 = vpack.c.bf16 %v4512_v21, %v4444_v61  ;;  %v4216_v35 = vcombine.high %v4196_v24, %v4212_v62 }
 0xea7   : > { %7783 = vmatmul.mubr.msk.bf16.vlgmr.msra.gmra.mrb[32].mxu1 %vm2002_vm1, %v4217_v6  ;;  %v4219_v23 = vpack.c.bf16 %v4215_v60, %v4147_v59  ;;  %v4958_v25 = vsel %vm2002_vm1, %v4516_v56, 0  ;;  %v4220_v38 = vpack.c.bf16 %v4216_v35, %v4148_v29 }
 0xea8   : > { %7787 = vmatpush3.bf16.xpose.msra.mxu1 %v4864_v28  ;;  %7788 = vmatprep.mubr.msk.bf16.mxu1 %vm8926_vm0, %v8924_v4 }
 0xea9   : > { %7792 = vmatprep.subr.bf16.mxu1 %v8924_v4 }
 0xeaf   : > { %7789 = vmatmul.mubr.msk.bf16.vlgmr.msra.gmra.mrb[36].mxu1 %vm2002_vm1, %v4218_v18 }
 0xeb0   : > { %7793 = vmatpush3.bf16.xpose.msra.mxu1 %v4911_v20  ;;  %7794 = vmatprep.mubr.msk.bf16.mxu1 %vm8926_vm0, %v8924_v4 }
 0xeb1   : > { %7798 = vmatprep.subr.bf16.mxu1 %v8924_v4 }
 0xeb7   : > { %7795 = vmatmul.mubr.msk.bf16.vlgmr.msra.gmra.mrb[40].mxu1 %vm2002_vm1, %v4219_v23 }
 0xeb8   : > { %7799 = vmatpush3.bf16.xpose.msra.mxu1 %v4958_v25  ;;  %7800 = vmatprep.mubr.msk.bf16.mxu1 %vm8926_vm0, %v8924_v4 }
 0xeb9   : > { %7810 = vmatprep.subr.bf16.mxu1 %v8924_v4 }
 0xebf   : > { %7801 = vmatmul.mubr.msk.bf16.vlgmr.msra.gmra.mrb[44].mxu1 %vm2002_vm1, %v4220_v38 }
 0xec0   : > { %7812 = vmatprep.mubr.msk.bf16.mxu1 %vm8926_vm0, %v8924_v4 }
 0xf7a   : > { %v4853_v40 = vpop.f32.mrb[32].mxu1 }
 0xf7b   : > { %v5001_v42 = vsel %vm9625_vm2, %v4853_v40, -1e+30  ;;  %v7784_v44 = vpop.f32.mrb[33].mxu1 }
 0xf7c   : > { %v4856_v51 = vpop.f32.mrb[34].mxu1  ;;  %v5009_v52 = vsel %vm2203_vm3, %v5001_v42, -inf }
 0xf7d   : > { %v5002_v49 = vsel %vm9629_vm4, %v4856_v51, -1e+30  ;;  %5010 = vmax.xlane.f32.xlu1 %v5009_v52  ;;  %v7785_v58 = vpop.f32.mrb[35].mxu1 }
 0xf7e   : > { %v5012_v12 = vsel %vm2203_vm3, %v5002_v49, -inf }
 0xf7f   : > { %5013 = vmax.xlane.f32.xlu0 %v5012_v12 }
 0xf82   : > { %v4900_v0 = vpop.f32.mrb[36].mxu1 }
 0xf83   : > { %v5003_v48 = vsel %vm9625_vm2, %v4900_v0, -1e+30  ;;  %v7790_v47 = vpop.f32.mrb[37].mxu1 }
 0xf84   : > { %v4903_v45 = vpop.f32.mrb[38].mxu1  ;;  %v5015_v32 = vsel %vm2203_vm3, %v5003_v48, -inf }
 0xf85   : > { %v5004_v22 = vsel %vm9629_vm4, %v4903_v45, -1e+30  ;;  %5016 = vmax.xlane.f32.xlu0 %v5015_v32  ;;  %v7791_v27 = vpop.f32.mrb[39].mxu1 }
 0xf86   : > { %v5018_v17 = vsel %vm2203_vm3, %v5004_v22, -inf }
 0xf89   : > { %5019 = vmax.xlane.f32.xlu0 %v5018_v17 }
 0xf8a   : > { %v4947_v2 = vpop.f32.mrb[40].mxu1 }
 0xf8b   : > { %v5005_v6 = vsel %vm9625_vm2, %v4947_v2, -1e+30  ;;  %v7796_v8 = vpop.f32.mrb[41].mxu1 }
 0xf8c   : > { %v4950_v3 = vpop.f32.mrb[42].mxu1  ;;  %v5021_v13 = vsel %vm2203_vm3, %v5005_v6, -inf }
 0xf8d   : > { %v5006_v7 = vsel %vm9629_vm4, %v4950_v3, -1e+30  ;;  %5022 = vmax.xlane.f32.xlu1 %v5021_v13  ;;  %v7797_v39 = vpop.f32.mrb[43].mxu1 }
 0xf8e   : > { %v5024_v28 = vsel %vm2203_vm3, %v5006_v7, -inf }
 0xf8f   : > { %5025 = vmax.xlane.f32.xlu0 %v5024_v28 }
 0xf92   : > { %v4994_v53 = vpop.f32.mrb[44].mxu1 }
 0xf93   : > { %v5007_v63 = vsel %vm9625_vm2, %v4994_v53, -1e+30  ;;  %v7802_v10 = vpop.f32.mrb[45].mxu1 }
 0xf94   : > { %v4997_v31 = vpop.f32.mrb[46].mxu1  ;;  %v5027_v34 = vsel %vm2203_vm3, %v5007_v63, -inf }
 0xf95   : > { %v5008_v41 = vsel %vm9629_vm4, %v4997_v31, -1e+30  ;;  %5028 = vmax.xlane.f32.xlu1 %v5027_v34  ;;  %v7803_v43 = vpop.f32.mrb[47].mxu1 }
 0xf96   : > { %v5030_v1 = vsel %vm2203_vm3, %v5008_v41, -inf }
 0xf97   : > { %5031 = vmax.xlane.f32.xlu0 %v5030_v1 }
 0xfa6   : > { %4525 = vrot.lane.b32.xlu1 %v10026_v9, %s8928_s12 }
 0xfaa   : > { %4527 = vrot.lane.b32.xlu1 %v10006_v37, %s8928_s12 }
 0xfad   : > { %4521 = vrot.lane.b32.xlu0 %v10006_v37, %s8927_s28 }
0x100a   : > { %v5011_v14 = vpop.xlane.xlu1 %5010 }
0x100b   : > { %v5033_v15 = vsub.f32 %v5001_v42, %v5011_v14 }
0x100c   : > { %v5014_v36 = vpop.xlane.xlu0 %5013 }
0x100d   : > { %v5041_v16 = vmul.f32 1.442695, %v5033_v15  ;;  %v5034_v18 = vsub.f32 %v5002_v49, %v5014_v36 }
0x100f   : > { %8414 = vpow2.f32 %v5041_v16  ;;  %v5043_v24 = vmul.f32 1.442695, %v5034_v18 }
0x1011   : > { %8416 = vpow2.f32 %v5043_v24 }
0x1012   : > { %v5017_v62 = vpop.xlane.xlu0 %5016 }
0x1013   : > { %v5035_v20 = vsub.f32 %v5003_v48, %v5017_v62 }
0x1015   : > { %v5045_v21 = vmul.f32 1.442695, %v5035_v20 }
0x1016   : > { %v5020_v29 = vpop.xlane.xlu0 %5019 }
0x1017   : > { %8418 = vpow2.f32 %v5045_v21  ;;  %v5036_v35 = vsub.f32 %v5004_v22, %v5020_v29 }
0x1019   : > { %v10190_v59 = vpop.eup %8414  ;;  %v5047_v42 = vmul.f32 1.442695, %v5036_v35 }
0x101a   : > { %v5057_v61 = vsel %vm2203_vm3, %v10190_v59, 0.0  ;;  %v5023_v38 = vpop.xlane.xlu1 %5022 }
0x101b   : > { %v10194_v60 = vpop.eup %8416  ;;  %5058 = vadd.xlane.f32.xlu1 %v5057_v61  ;;  %v5037_v52 = vsub.f32 %v5005_v6, %v5023_v38  ;;  %8420 = vpow2.f32 %v5047_v42 }
0x101c   : > { %v5060_v56 = vsel %vm2203_vm3, %v10194_v60, 0.0  ;;  %v5026_v40 = vpop.xlane.xlu0 %5025 }
0x101d   : > { %5061 = vadd.xlane.f32.xlu0 %v5060_v56  ;;  %v5038_v44 = vsub.f32 %v5006_v7, %v5026_v40  ;;  %v5049_v0 = vmul.f32 1.442695, %v5037_v52 }
0x101f   : > { %v5051_v49 = vmul.f32 1.442695, %v5038_v44 }
0x1021   : > { %v10198_v23 = vpop.eup %8418  ;;  %8422 = vpow2.f32 %v5051_v49 }
0x1022   : > { %v5063_v25 = vsel %vm2203_vm3, %v10198_v23, 0.0  ;;  %v5029_v51 = vpop.xlane.xlu1 %5028  ;;  %8424 = vpow2.f32 %v5049_v0 }
0x1023   : > { %5064 = vadd.xlane.f32.xlu1 %v5063_v25  ;;  %v5039_v58 = vsub.f32 %v5007_v63, %v5029_v51 }
0x1024   : > { %v5032_v12 = vpop.xlane.xlu0 %5031 }
0x1025   : > { %v5053_v48 = vmul.f32 1.442695, %v5039_v58  ;;  %v5040_v47 = vsub.f32 %v5008_v41, %v5032_v12  ;;  %v10206_v32 = vpop.eup %8420 }
0x1026   : > { %v5066_v22 = vsel %vm2203_vm3, %v10206_v32, 0.0  ;;  %v4526_v39 = vpop.permute.xlu1 %4525 }
0x1027   : > { %8426 = vpow2.f32 %v5053_v48  ;;  %v5055_v45 = vmul.f32 1.442695, %v5040_v47  ;;  %v4537_v61 = vcombine.low %v10026_v9, %v4526_v39 }
0x1028   : > { %v4522_v28 = vpop.permute.xlu0 %4521 }
0x1029   : > { %8428 = vpow2.f32 %v5055_v45  ;;  %v4545_v58 = vrot.slane %v4537_v61, %v9487_v19 }
0x102a   : > { %v4528_v53 = vpop.permute.xlu1 %4527 }
0x102b   : > { %v10210_v27 = vpop.eup %8422  ;;  %v4605_v31 = vcombine.low %v10006_v37, %v4528_v53  ;;  %v4606_v34 = vcombine.high %v10006_v37, %v4528_v53 }
0x102c   : > { %v10212_v17 = vpop.eup %8424  ;;  %v5072_v2 = vsel %vm2203_vm3, %v10210_v27, 0.0 }
0x102d   : > { %v5069_v8 = vsel %vm2203_vm3, %v10212_v17, 0.0  ;;  %v4613_v15 = vrot.slane %v4605_v31, %v9487_v19  ;;  %v4620_v36 = vrot.slane %v4606_v34, %v9487_v19 }
0x1031   : > { %v10216_v6 = vpop.eup %8426 }
0x1032   : > { %v5075_v3 = vsel %vm2203_vm3, %v10216_v6, 0.0 }
0x1033   : > { %4533 = vrot.lane.b32.xlu0 %v10006_v37, %s8929_s29  ;;  %v10222_v13 = vpop.eup %8428  ;;  %v4538_v37 = vcombine.high %v10026_v9, %v4526_v39 }
0x1034   : > { %4531 = vrot.lane.b32.xlu1 %v10026_v9, %s8929_s29  ;;  %v5078_v7 = vsel %vm2203_vm3, %v10222_v13, 0.0 }
0x1035   : > { %v4552_v9 = vrot.slane %v4538_v37, %v9487_v19 }
0x1052   : > { %5067 = vadd.xlane.f32.xlu0 %v5066_v22 }
0x1056   : > { %5073 = vadd.xlane.f32.xlu0 %v5072_v2 }
0x1058   : > { %5070 = vadd.xlane.f32.xlu1 %v5069_v8 }
0x105a   : > { %5076 = vadd.xlane.f32.xlu0 %v5075_v3 }
0x105e   : > { %5079 = vadd.xlane.f32.xlu0 %v5078_v7 }
0x10a8   : > { %v5059_v10 = vpop.xlane.xlu1 %5058 }
0x10aa   : > { %v5062_v63 = vpop.xlane.xlu0 %5061 }
0x10ab   : > { %8430 = vrcp.f32 %v5062_v63 }
0x10ac   : > { %8432 = vrcp.f32 %v5059_v10 }
0x10ae   : > { %v4534_v41 = vpop.permute.xlu0 %4533 }
0x10af   : > { %v4621_v43 = vcombine.low %v4522_v28, %v4534_v41  ;;  %v4622_v1 = vcombine.high %v4522_v28, %v4534_v41 }
0x10b0   : > { %v10228_v14 = vpop.xlane.xlu1 %5064 }
0x10b1   : > { %v4629_v16 = vrot.slane %v4621_v43, %v9487_v19  ;;  %v4636_v18 = vrot.slane %v4622_v1, %v9487_v19  ;;  %8434 = vrcp.f32 %v10228_v14 }
0x10b3   : > { %v4637_v24 = vcombine.low %v4613_v15, %v4629_v16  ;;  %v4638_v62 = vcombine.high %v4613_v15, %v4629_v16  ;;  %v4653_v20 = vcombine.low %v4620_v36, %v4636_v18  ;;  %v4654_v21 = vcombine.high %v4620_v36, %v4636_v18 }
0x10b4   : > { %v4532_v56 = vpop.permute.xlu1 %4531 }
0x10b5   : > { %v4645_v25 = vrot.slane %v4637_v24, %v9490_v26  ;;  %v4652_v29 = vrot.slane %v4638_v62, %v9490_v26  ;;  %v4661_v35 = vrot.slane %v4653_v20, %v9490_v26  ;;  %v4668_v38 = vrot.slane %v4654_v21, %v9490_v26  ;;  %v8431_v21 = vpop.eup %8430 }
0x10b6   : > { %v4553_v40 = vcombine.low %v10188_v33, %v4532_v56  ;;  %v4554_v42 = vcombine.high %v10188_v33, %v4532_v56 }
0x10b7   : > { %v4741_v44 = vcombine.low %v4645_v25, %v4652_v29  ;;  %v7321_v51 = vcombine.high %v4645_v25, %v4652_v29  ;;  %v4757_v52 = vcombine.low %v4661_v35, %v4668_v38  ;;  %v7322_v49 = vcombine.high %v4661_v35, %v4668_v38 }
0x10b8   : > { %v4561_v12 = vrot.slane %v4553_v40, %v9487_v19  ;;  %v4568_v0 = vrot.slane %v4554_v42, %v9487_v19 }
0x10b9   : > { %v4748_v2 = vrot.slane %v4741_v44, %v9487_v19  ;;  %v4756_v33 = vrot.slane %v7321_v51, %v9487_v19  ;;  %v4764_v8 = vrot.slane %v4757_v52, %v9487_v19  ;;  %v4772_v3 = vrot.slane %v7322_v49, %v9487_v19  ;;  %v8433_v51 = vpop.eup %8432 }
0x10ba   : > { %v4569_v48 = vcombine.low %v4545_v58, %v4561_v12  ;;  %v4570_v47 = vcombine.high %v4545_v58, %v4561_v12  ;;  %v4585_v45 = vcombine.low %v4552_v9, %v4568_v0  ;;  %v4586_v22 = vcombine.high %v4552_v9, %v4568_v0 }
0x10bb   : > { %v4773_v43 = vcombine.low %v4748_v2, %v4756_v33  ;;  %v4789_v1 = vcombine.low %v4764_v8, %v4772_v3  ;;  %v4774_v20 = vcombine.high %v4748_v2, %v4756_v33  ;;  %v4790_v10 = vcombine.high %v4764_v8, %v4772_v3 }
0x10bc   : > { %v4577_v7 = vrot.slane %v4569_v48, %v9490_v26  ;;  %v4584_v39 = vrot.slane %v4570_v47, %v9490_v26  ;;  %v4593_v28 = vrot.slane %v4585_v45, %v9490_v26  ;;  %v4600_v53 = vrot.slane %v4586_v22, %v9490_v26 }
0x10bd   : > { %v4781_v37 = vrot.slane %v4773_v43, %v9490_v26  ;;  %v4797_v56 = vrot.slane %v4789_v1, %v9490_v26  ;;  %v4788_v42 = vrot.slane %v4774_v20, %v9490_v26  ;;  %v4804_v44 = vrot.slane %v4790_v10, %v9490_v26  ;;  %v8222_v20 = vld [vmem:[%s10616_s9 + $0x60] sm:$0xff]   ;;  %v8223_v10 = vld [vmem:[%s10616_s9 + $0x68] sm:$0xff]  }
0x10be   : > { %v4673_v63 = vcombine.low %v4577_v7, %v4584_v39  ;;  %v7319_v31 = vcombine.high %v4577_v7, %v4584_v39  ;;  %v4689_v34 = vcombine.low %v4593_v28, %v4600_v53  ;;  %v7320_v41 = vcombine.high %v4593_v28, %v4600_v53  ;;  %v8435_v7 = vpop.eup %8434 }
0x10bf   : > { %v4805_v49 = vcombine.low %v4781_v37, %v4797_v56  ;;  %v4806_v9 = vcombine.high %v4781_v37, %v4797_v56  ;;  %v5090_v12 = vmul.f32 %v8431_v21, %v10194_v60  ;;  %v5089_v45 = vmul.f32 %v8433_v51, %v10190_v59 }
0x10c0   : > { %v4680_v15 = vrot.slane %v4673_v63, %v9487_v19  ;;  %v4688_v36 = vrot.slane %v7319_v31, %v9487_v19  ;;  %v4696_v16 = vrot.slane %v4689_v34, %v9487_v19  ;;  %v4704_v18 = vrot.slane %v7320_v41, %v9487_v19 }
0x10c1   : > { %v4807_v22 = vcombine.low %v4788_v42, %v4804_v44  ;;  %v5097_v2 = vpack.c.bf16 %v5090_v12, %v5089_v45  ;;  %v5091_v53 = vmul.f32 %v8435_v7, %v10198_v23  ;;  %v4808_v34 = vcombine.high %v4788_v42, %v4804_v44 }
0x10c2   : > { %v4705_v24 = vcombine.low %v4680_v15, %v4688_v36  ;;  %v4706_v62 = vcombine.high %v4680_v15, %v4688_v36  ;;  %v4721_v61 = vcombine.low %v4696_v16, %v4704_v18  ;;  %v4722_v25 = vcombine.high %v4696_v16, %v4704_v18 }
0x10c4   : > { %v4713_v29 = vrot.slane %v4705_v24, %v9490_v26  ;;  %v4729_v35 = vrot.slane %v4721_v61, %v9490_v26  ;;  %v4720_v38 = vrot.slane %v4706_v62, %v9490_v26  ;;  %v4736_v40 = vrot.slane %v4722_v25, %v9490_v26 }
0x10c6   : > { %v4737_v52 = vcombine.low %v4713_v29, %v4729_v35  ;;  %v4738_v58 = vcombine.high %v4713_v29, %v4729_v35  ;;  %v4739_v47 = vcombine.low %v4720_v38, %v4736_v40  ;;  %v4740_v28 = vcombine.high %v4720_v38, %v4736_v40 }
0x10c8   : > { %v4809_v0 = vpack.c.bf16 %v4805_v49, %v4737_v52  ;;  %v4810_v48 = vpack.c.bf16 %v4806_v9, %v4738_v58  ;;  %v4811_v33 = vpack.c.bf16 %v4807_v22, %v4739_v47  ;;  %v4812_v43 = vpack.c.bf16 %v4808_v34, %v4740_v28 }
0x10ca   : > { %7805 = vmatpush3.bf16.msra.mxu0 %v4809_v0  ;;  %7811 = vmatpush3.bf16.msra.mxu1 %v4810_v48 }
0x10cb   : > { %7816 = vmatprep.subr.bf16.mxu0 %v8924_v4  ;;  %7822 = vmatprep.subr.bf16.mxu1 %v8924_v4 }
0x10cd   : > { %7807 = vmatmul.mubr.msk.bf16.vlgmr.msra.gmra.mrb[36].mxu0 %vm2203_vm3, %v5097_v2 }
0x10ce   : > { %7817 = vmatpush3.bf16.msra.mxu0 %v4811_v33  ;;  %7818 = vmatprep.mubr.msk.bf16.mxu0 %vm8926_vm0, %v8924_v4 }
0x10cf   : > { %7828 = vmatprep.subr.bf16.mxu0 %v8924_v4 }
0x10df   : > { %v5068_v59 = vpop.xlane.xlu0 %5067 }
0x10e0   : > { %8436 = vrcp.f32 %v5068_v59 }
0x10e3   : > { %v5074_v60 = vpop.xlane.xlu0 %5073 }
0x10e4   : > { %8438 = vrcp.f32 %v5074_v60 }
0x10e5   : > { %v5071_v8 = vpop.xlane.xlu1 %5070 }
0x10e6   : > { %8440 = vrcp.f32 %v5071_v8 }
0x10e7   : > { %v5077_v3 = vpop.xlane.xlu0 %5076 }
0x10e8   : > { %8442 = vrcp.f32 %v5077_v3 }
0x10ea   : > { %v8437_v39 = vpop.eup %8436 }
0x10eb   : > { %v5092_v63 = vmul.f32 %v8437_v39, %v10206_v32  ;;  %v5080_v31 = vpop.xlane.xlu0 %5079 }
0x10ec   : > { %8444 = vrcp.f32 %v5080_v31 }
0x10ed   : > { %v5098_v41 = vpack.c.bf16 %v5092_v63, %v5091_v53 }
0x10ee   : > { %v8439_v14 = vpop.eup %8438 }
0x10ef   : > { %7813 = vmatmul.mubr.msk.bf16.vlgmr.msra.gmra.mrb[48].mxu1 %vm2203_vm3, %v5098_v41  ;;  %v5094_v15 = vmul.f32 %v8439_v14, %v10210_v27  ;;  %v8218_v27 = vld [vmem:[%s10616_s9 + $0x40] sm:$0xff]  }
0x10f0   : > { %v8441_v1 = vpop.eup %8440  ;;  %7823 = vmatpush3.bf16.msra.mxu1 %v4812_v43  ;;  %7824 = vmatprep.mubr.msk.bf16.mxu1 %vm8926_vm0, %v8924_v4 }
0x10f1   : > { %v5093_v36 = vmul.f32 %v8441_v1, %v10212_v17  ;;  %v8219_v17 = vld [vmem:[%s10616_s9 + $0x48] sm:$0xff]  }
0x10f2   : > { %v8443_v16 = vpop.eup %8442 }
0x10f3   : > { %v5099_v23 = vpack.c.bf16 %v5094_v15, %v5093_v36  ;;  %v5095_v18 = vmul.f32 %v8443_v16, %v10216_v6  ;;  %v8220_v6 = vld [vmem:[%s10616_s9 + $0x50] sm:$0xff]  }
0x10f5   : > { %7819 = vmatmul.mubr.msk.bf16.vlgmr.msra.gmra.mrb[40].mxu0 %vm2203_vm3, %v5099_v23 }
0x10f6   : > { %v8445_v32 = vpop.eup %8444  ;;  %7844 = vmatprep.mubr.msk.bf16.mxu0 %vm8926_vm0, %v8924_v4  ;;  %7829 = vmatpush3.bf16.msra.mxu0 %v8218_v27 }
0x10f7   : > { %v5096_v24 = vmul.f32 %v8445_v32, %v10222_v13  ;;  %7830 = vmatprep.subr.bf16.mxu0 %v8924_v4  ;;  %v8221_v13 = vld [vmem:[%s10616_s9 + $0x58] sm:$0xff]  }
0x10f9   : > { %v5100_v62 = vpack.c.bf16 %v5096_v24, %v5095_v18 }
0x10fa   : > { %7831 = vmatpush3.bf16.msra.mxu0 %v8219_v17 }
0x10fb   : > { %7825 = vmatmul.mubr.msk.bf16.vlgmr.msra.gmra.mrb[52].mxu1 %vm2203_vm3, %v5100_v62  ;;  %7832 = vmatprep.subr.bf16.mxu0 %v8924_v4 }
0x10fc   : > { %5987 = vmatprep.mubr.bf16.mxu1 %v8925_v30 }
0x10fe   : > { %7833 = vmatpush3.bf16.msra.mxu0 %v8220_v6 }
0x10ff   : > { %7834 = vmatprep.subr.bf16.mxu0 %v8924_v4 }
0x1102   : > { %7835 = vmatpush3.bf16.msra.mxu0 %v8221_v13 }
0x1103   : > { %7836 = vmatprep.subr.bf16.mxu0 %v8924_v4 }
0x1106   : > { %7837 = vmatpush3.bf16.msra.mxu0 %v8222_v20 }
0x1107   : > { %7838 = vmatprep.subr.bf16.mxu0 %v8924_v4 }
0x110a   : > { %7839 = vmatpush3.bf16.msra.mxu0 %v8223_v10 }
0x110b   : > { %7840 = vmatprep.subr.bf16.mxu0 %v8924_v4 }
0x11a0   : > { %v5138_v21 = vpop.f32.mrb[36].mxu0 }
0x11a1   : > { %v7808_v61 = vpop.f32.mrb[37].mxu0 }
0x11a2   : > { %v5141_v37 = vpop.f32.mrb[38].mxu0 }
0x11a3   : > { %v7809_v56 = vpop.f32.mrb[39].mxu0 }
0x11c2   : > { %v5182_v25 = vpop.f32.mrb[48].mxu1 }
0x11c3   : > { %v7814_v29 = vpop.f32.mrb[49].mxu1 }
0x11c4   : > { %v5185_v35 = vpop.f32.mrb[50].mxu1 }
0x11c5   : > { %v7815_v38 = vpop.f32.mrb[51].mxu1 }
0x11c8   : > { %v5226_v40 = vpop.f32.mrb[40].mxu0 }
0x11c9   : > { %v5277_v42 = vcombine.low %v5138_v21, %v5226_v40  ;;  %v5278_v44 = vcombine.high %v5138_v21, %v5226_v40  ;;  %v7820_v51 = vpop.f32.mrb[41].mxu0 }
0x11ca   : > { %v5229_v52 = vpop.f32.mrb[42].mxu0  ;;  %v8224_v51 = vld [vmem:[%s10616_s9 + $0x70] sm:$0xff]  }
0x11cb   : > { %v5345_v49 = vcombine.low %v5141_v37, %v5229_v52  ;;  %v5346_v58 = vcombine.high %v5141_v37, %v5229_v52  ;;  %v7821_v9 = vpop.f32.mrb[43].mxu0  ;;  %v5285_v45 = vrot.slane %v5277_v42, %v9487_v19  ;;  %v5292_v22 = vrot.slane %v5278_v44, %v9487_v19  ;;  %7841 = vmatpush3.bf16.msra.mxu0 %v8224_v51  ;;  %v8228_v51 = vld [vmem:[%s10617_s2 + $0x104] ss:$16 sps:$4 sm:$0xff]  }
0x11cc   : > { %7842 = vmatprep.subr.bf16.mxu0 %v8924_v4  ;;  %5955 = vmatprep.subr.bf16.mxu1 %v8228_v51 }
0x11cd   : > { %v5353_v63 = vrot.slane %v5345_v49, %v9487_v19  ;;  %v5360_v31 = vrot.slane %v5346_v58, %v9487_v19 }
0x11ce   : > { %v5270_v12 = vpop.f32.mrb[52].mxu1 }
0x11cf   : > { %v5293_v0 = vcombine.low %v5182_v25, %v5270_v12  ;;  %v5294_v48 = vcombine.high %v5182_v25, %v5270_v12  ;;  %v7826_v47 = vpop.f32.mrb[53].mxu1 }
0x11d0   : > { %v5273_v2 = vpop.f32.mrb[54].mxu1 }
0x11d1   : > { %v5301_v33 = vrot.slane %v5293_v0, %v9487_v19  ;;  %v5308_v59 = vrot.slane %v5294_v48, %v9487_v19  ;;  %v5361_v60 = vcombine.low %v5185_v35, %v5273_v2  ;;  %v5362_v8 = vcombine.high %v5185_v35, %v5273_v2  ;;  %v7827_v3 = vpop.f32.mrb[55].mxu1 }
0x11d3   : > { %v5309_v7 = vcombine.low %v5285_v45, %v5301_v33  ;;  %v5310_v39 = vcombine.high %v5285_v45, %v5301_v33  ;;  %v5325_v28 = vcombine.low %v5292_v22, %v5308_v59  ;;  %v5326_v53 = vcombine.high %v5292_v22, %v5308_v59 }
0x11d4   : > { %v5369_v34 = vrot.slane %v5361_v60, %v9487_v19  ;;  %v5376_v41 = vrot.slane %v5362_v8, %v9487_v19 }
0x11d5   : > { %v5317_v14 = vrot.slane %v5309_v7, %v9490_v26  ;;  %v5324_v43 = vrot.slane %v5310_v39, %v9490_v26  ;;  %v5333_v1 = vrot.slane %v5325_v28, %v9490_v26  ;;  %v5340_v15 = vrot.slane %v5326_v53, %v9490_v26  ;;  %v8225_v53 = vld [vmem:[%s10616_s9 + $0x78] sm:$0xff]  }
0x11d6   : > { %v5377_v36 = vcombine.low %v5353_v63, %v5369_v34  ;;  %v5378_v23 = vcombine.high %v5353_v63, %v5369_v34  ;;  %v5393_v16 = vcombine.low %v5360_v31, %v5376_v41  ;;  %v5394_v32 = vcombine.high %v5360_v31, %v5376_v41  ;;  %7843 = vmatpush3.bf16.msra.mxu0 %v8225_v53  ;;  %v8252_v53 = vld [vmem:[%s10617_s2 + $0x184] ss:$16 sps:$4 sm:$0xff]  }
0x11d7   : > { %v5413_v18 = vcombine.low %v5317_v14, %v5324_v43  ;;  %v7331_v24 = vcombine.high %v5317_v14, %v5324_v43  ;;  %v5429_v62 = vcombine.low %v5333_v1, %v5340_v15  ;;  %v7332_v27 = vcombine.high %v5333_v1, %v5340_v15 }
0x11d8   : > { %v5385_v17 = vrot.slane %v5377_v36, %v9490_v26  ;;  %v5392_v6 = vrot.slane %v5378_v23, %v9490_v26  ;;  %v5401_v13 = vrot.slane %v5393_v16, %v9490_v26  ;;  %v5408_v20 = vrot.slane %v5394_v32, %v9490_v26 }
0x11d9   : > { %v5420_v10 = vrot.slane %v5413_v18, %v9487_v19  ;;  %v5428_v21 = vrot.slane %v7331_v24, %v9487_v19  ;;  %v5436_v61 = vrot.slane %v5429_v62, %v9487_v19  ;;  %v5444_v37 = vrot.slane %v7332_v27, %v9487_v19 }
0x11da   : > { %v5481_v56 = vcombine.low %v5385_v17, %v5392_v6  ;;  %v7333_v25 = vcombine.high %v5385_v17, %v5392_v6  ;;  %v5497_v29 = vcombine.low %v5401_v13, %v5408_v20  ;;  %v7334_v35 = vcombine.high %v5401_v13, %v5408_v20 }
0x11db   : > { %v5446_v38 = vcombine.high %v5420_v10, %v5428_v21  ;;  %v5462_v40 = vcombine.high %v5436_v61, %v5444_v37  ;;  %v5445_v42 = vcombine.low %v5420_v10, %v5428_v21  ;;  %v5461_v44 = vcombine.low %v5436_v61, %v5444_v37  ;;  %v7351_v61 = vld [vmem:[#allocation7 + $0x1] ss:$0 sm:$0xff] }
0x11dc   : > { %v5488_v52 = vrot.slane %v5481_v56, %v9487_v19  ;;  %v5496_v49 = vrot.slane %v7333_v25, %v9487_v19  ;;  %v5504_v58 = vrot.slane %v5497_v29, %v9487_v19  ;;  %v5512_v9 = vrot.slane %v7334_v35, %v9487_v19 }
0x11dd   : > { %v5460_v12 = vrot.slane %v5446_v38, %v9490_v26  ;;  %v5476_v0 = vrot.slane %v5462_v40, %v9490_v26  ;;  %v5453_v48 = vrot.slane %v5445_v42, %v9490_v26  ;;  %v5469_v47 = vrot.slane %v5461_v44, %v9490_v26  ;;  %v8226_v44 = vld [vmem:[%s10617_s2 + $0x100] ss:$16 sps:$4 sm:$0xff]  }
0x11de   : > { %v5514_v45 = vcombine.high %v5488_v52, %v5496_v49  ;;  %v5530_v22 = vcombine.high %v5504_v58, %v5512_v9  ;;  %v5513_v2 = vcombine.low %v5488_v52, %v5496_v49  ;;  %v5529_v33 = vcombine.low %v5504_v58, %v5512_v9  ;;  %v8234_v52 = vld [vmem:[%s10617_s2 + $0x124] ss:$16 sps:$4 sm:$0xff]   ;;  %v8237_v49 = vld [vmem:[%s10617_s2 + $0x12c] ss:$16 sps:$4 sm:$0xff]   ;;  %5956 = vmatpush1.bf16.msra.mxu1 %v8226_v44  ;;  %v8232_v58 = vld [vmem:[%s10617_s2 + $0x120] ss:$16 sps:$4 sm:$0xff]  }
0x11df   : > { %v5479_v59 = vcombine.low %v5460_v12, %v5476_v0  ;;  %v5477_v60 = vcombine.low %v5453_v48, %v5469_v47  ;;  %v5478_v8 = vcombine.high %v5453_v48, %v5469_v47  ;;  %v5480_v3 = vcombine.high %v5460_v12, %v5476_v0  ;;  %5957 = vmatprep.subr.bf16.mxu1 %v8234_v52  ;;  %v8235_v9 = vld [vmem:[%s10617_s2 + $0x128] ss:$16 sps:$4 sm:$0xff]  }
0x11e0   : > { %v5528_v19 = vrot.slane %v5514_v45, %v9490_v26  ;;  %v5544_v7 = vrot.slane %v5530_v22, %v9490_v26  ;;  %v5521_v39 = vrot.slane %v5513_v2, %v9490_v26  ;;  %v5537_v28 = vrot.slane %v5529_v33, %v9490_v26  ;;  %v8276_v52 = vld [vmem:[#allocation13 + $0x100] sm:$0xff]  }
0x11e2   : > { %v5547_v63 = vcombine.low %v5528_v19, %v5544_v7  ;;  %v5546_v31 = vcombine.high %v5521_v39, %v5537_v28  ;;  %v5545_v34 = vcombine.low %v5521_v39, %v5537_v28  ;;  %v5548_v41 = vcombine.high %v5528_v19, %v5544_v7  ;;  %5958 = vmatpush1.bf16.msra.mxu1 %v8232_v58  ;;  %v8246_v19 = vld [vmem:[%s10617_s2 + $0x164] ss:$16 sps:$4 sm:$0xff]   ;;  %v8249_v7 = vld [vmem:[%s10617_s2 + $0x16c] ss:$16 sps:$4 sm:$0xff]   ;;  %v8244_v39 = vld [vmem:[%s10617_s2 + $0x160] ss:$16 sps:$4 sm:$0xff]  }
0x11e3   : > { %v8247_v28 = vld [vmem:[%s10617_s2 + $0x168] ss:$16 sps:$4 sm:$0xff]   ;;  %v8278_v58 = vld [vmem:[#allocation13 + $0x148] sm:$0xff]  }
0x11e4   : > { %v8056_v14 = vpack.i.bf16 %v5547_v63, %v5479_v59  ;;  %v8051_v43 = vpack.i.bf16 %v5546_v31, %v5478_v8  ;;  %v8061_v1 = vpack.i.bf16 %v5548_v41, %v5480_v3  ;;  %v8240_v59 = vld [vmem:[%s10617_s2 + $0x144] ss:$16 sps:$4 sm:$0xff]   ;;  %v8238_v8 = vld [vmem:[%s10617_s2 + $0x140] ss:$16 sps:$4 sm:$0xff]   ;;  %v8241_v3 = vld [vmem:[%s10617_s2 + $0x148] ss:$16 sps:$4 sm:$0xff]  }
0x11e5   : > { %5959 = vmatprep.subr.bf16.mxu1 %v8240_v59  ;;  %v8255_v63 = vld [vmem:[%s10617_s2 + $0x18c] ss:$16 sps:$4 sm:$0xff]   ;;  %v8250_v31 = vld [vmem:[%s10617_s2 + $0x180] ss:$16 sps:$4 sm:$0xff]   ;;  %v8258_v41 = vld [vmem:[%s10617_s2 + $0x1a4] ss:$16 sps:$4 sm:$0xff]  }
0x11e6   : > { %8057 = vrot.lane.b32.xlu0 %v8056_v14, %s8928_s12  ;;  %8052 = vrot.lane.b32.xlu1 %v8051_v43, %s8929_s29  ;;  %v8261_v14 = vld [vmem:[%s10617_s2 + $0x1ac] ss:$16 sps:$4 sm:$0xff]   ;;  %v8256_v43 = vld [vmem:[%s10617_s2 + $0x1a0] ss:$16 sps:$4 sm:$0xff]   ;;  %s7868_s29 = smul.u32 80, %s10622_s21 }
0x11e7   : > { %5960 = vmatpush1.bf16.msra.mxu1 %v8238_v8  ;;  %v8288_v59 = vld [vmem:[#allocation13 + $0x118] sm:$0xff]   ;;  %v8290_v8 = vld [vmem:[#allocation13 + $0x160] sm:$0xff]  }
0x11e8   : > { %5961 = vmatprep.subr.bf16.mxu1 %v8246_v19  ;;  %v8292_v19 = vld [vmem:[#allocation13 + $0x120] sm:$0xff]   ;;  %s10517_s0 = scalar_lea.vmem %s10619_s14, %s7868_s29 }
0x11ea   : > { %8062 = vrot.lane.b32.xlu1 %v8061_v1, %s8927_s28  ;;  %v8259_v1 = vld [vmem:[%s10617_s2 + $0x1a8] ss:$16 sps:$4 sm:$0xff]  }
0x11eb   : > { %5962 = vmatpush1.bf16.msra.mxu1 %v8244_v39  ;;  %v8294_v39 = vld [vmem:[#allocation13 + $0x168] sm:$0xff]  }
0x11ec   : > { %5963 = vmatprep.subr.bf16.mxu1 %v8252_v53  ;;  %v8296_v53 = vld [vmem:[#allocation13 + $0x128] sm:$0xff]  }
0x11ef   : > { %5964 = vmatpush1.bf16.msra.mxu1 %v8250_v31  ;;  %v8298_v31 = vld [vmem:[#allocation13 + $0x170] sm:$0xff]  }
0x11f0   : > { %5965 = vmatprep.subr.bf16.mxu1 %v8258_v41  ;;  %v8300_v41 = vld [vmem:[#allocation13 + $0x130] sm:$0xff]  }
0x11f3   : > { %5966 = vmatpush1.bf16.msra.mxu1 %v8256_v43  ;;  %v8302_v43 = vld [vmem:[#allocation13 + $0x178] sm:$0xff]  }
0x1258   : > { %v8058_v15 = vpop.permute.xlu0 %8057  ;;  %v8053_v26 = vpop.permute.xlu1 %8052 }
0x1259   : > { %v8055_v36 = vunpack.i.h.bf16 %v8053_v26  ;;  %v8054_v23 = vunpack.i.l.bf16 %v8053_v26  ;;  %v8060_v16 = vunpack.i.h.bf16 %v8058_v15  ;;  %v8059_v32 = vunpack.i.l.bf16 %v8058_v15  ;;  %v8264_v15 = vld [vmem:[%s10617_s2 + $0x1c4] ss:$16 sps:$4 sm:$0xff]   ;;  %v8267_v26 = vld [vmem:[%s10617_s2 + $0x1cc] ss:$16 sps:$4 sm:$0xff]  }
0x125a   : > { %5967 = vmatprep.subr.bf16.mxu1 %v8264_v15  ;;  %v8304_v15 = vld [vmem:[#allocation13 + $0x138] sm:$0xff]  }
0x125b   : > { %v5573_v18 = vsel %vm2002_vm1, %v5477_v60, %v8054_v23  ;;  %v5574_v24 = vsel %vm2002_vm1, %v5545_v34, %v8055_v36  ;;  %v8243_v60 = vld [vmem:[%s10617_s2 + $0x14c] ss:$16 sps:$4 sm:$0xff]   ;;  %v8253_v34 = vld [vmem:[%s10617_s2 + $0x188] ss:$16 sps:$4 sm:$0xff]   ;;  %v8262_v36 = vld [vmem:[%s10617_s2 + $0x1c0] ss:$16 sps:$4 sm:$0xff]  }
0x125c   : > { %v8063_v62 = vpop.permute.xlu1 %8062  ;;  %v5575_v6 = vsel %vm2770_vm5, %v5573_v18, %v8059_v32  ;;  %v5576_v13 = vsel %vm2770_vm5, %v5574_v24, %v8060_v16  ;;  %v8265_v23 = vld [vmem:[%s10617_s2 + $0x1c8] ss:$16 sps:$4 sm:$0xff]   ;;  %v8270_v16 = vld [vmem:[%s10617_s2 + $0x1e4] ss:$16 sps:$4 sm:$0xff]   ;;  %v8273_v32 = vld [vmem:[%s10617_s2 + $0x1ec] ss:$16 sps:$4 sm:$0xff]   ;;  %5968 = vmatpush1.bf16.msra.mxu1 %v8262_v36 }
0x125d   : > { %v8065_v27 = vunpack.i.h.bf16 %v8063_v62  ;;  %v8064_v17 = vunpack.i.l.bf16 %v8063_v62  ;;  %v8268_v18 = vld [vmem:[%s10617_s2 + $0x1e0] ss:$16 sps:$4 sm:$0xff]   ;;  %v8271_v24 = vld [vmem:[%s10617_s2 + $0x1e8] ss:$16 sps:$4 sm:$0xff]   ;;  %5969 = vmatprep.subr.bf16.mxu1 %v8270_v16 }
0x125e   : > { %v5773_v36 = vld [vmem:[#allocation12 + $0x4] sm:$0xf] }
0x125f   : > { %v5577_v20 = vsel %vm2773_vm6, %v5575_v6, %v8064_v17  ;;  %v5578_v10 = vsel %vm2773_vm6, %v5576_v13, %v8065_v27  ;;  %v5786_v16 = vrot.slane %v5773_v36, %v9648_v5 }
0x1260   : > { %v5579_v21 = vpack.c.bf16 %v5578_v10, %v5577_v20  ;;  %5970 = vmatpush1.bf16.msra.mxu1 %v8268_v18 }
0x1262   : > { %7845 = vmatmul.mubr.bf16.vlgmr.msra.gmra.mrb[44].mxu0 %v5579_v21  ;;  %v7360_v21 = vld [vmem:[#allocation9 + $0x1] ss:$0 sm:$0xff] }
0x1263   : > { %6030 = vmatprep.mubr.bf16.mxu0 %v8925_v30 }
0x1335   : > { %v5687_v37 = vpop.f32.mrb[44].mxu0 }
0x1336   : > { %v5688_v56 = vadd.f32 %v7351_v61, %v5687_v37  ;;  %v7846_v25 = vpop.f32.mrb[45].mxu0 }
0x1337   : > { %v5690_v29 = vpop.f32.mrb[46].mxu0 }
0x1338   : > { %v10363_v35 = vadd.f32 %v5688_v56, %v9974_v11  ;;  %v5691_v38 = vadd.f32 %v7351_v61, %v5690_v29  ;;  %v7847_v40 = vpop.f32.mrb[47].mxu0  ;;  %v8229_v11 = vld [vmem:[%s10617_s2 + $0x108] ss:$16 sps:$4 sm:$0xff]   ;;  %v7361_v29 = vld [vmem:[#allocation10 + $0x1] ss:$0 sm:$0xff] }
0x133a   : > { %v10366_v42 = vadd.f32 %v5691_v38, %v9978_v50  ;;  %5700 = vadd.xlane.f32.xlu1 %v10363_v35  ;;  %v8231_v50 = vld [vmem:[%s10617_s2 + $0x10c] ss:$16 sps:$4 sm:$0xff]  }
0x133b   : > { %5998 = vmatprep.subr.bf16.mxu0 %v8231_v50  ;;  %v8275_v50 = vld [vmem:[#allocation13 + $0x1c0] sm:$0xff]  }
0x133c   : > { %5702 = vadd.xlane.f32.xlu0 %v10366_v42  ;;  %5999 = vmatpush1.bf16.msra.mxu0 %v8229_v11  ;;  %v8274_v11 = vld [vmem:[#allocation13 + $0x140] sm:$0xff]  }
0x133d   : > { %6000 = vmatprep.subr.bf16.mxu0 %v8237_v49  ;;  %v8277_v49 = vld [vmem:[#allocation13 + $0x180] sm:$0xff]   ;;  %7619 = vmatprep.subr.bf16.mxu1 %v8274_v11 }
0x1340   : > { %6001 = vmatpush1.bf16.msra.mxu0 %v8235_v9  ;;  %v8279_v9 = vld [vmem:[#allocation13 + $0x1c8] sm:$0xff]  }
0x1341   : > { %6002 = vmatprep.subr.bf16.mxu0 %v8243_v60  ;;  %v8289_v60 = vld [vmem:[#allocation13 + $0x198] sm:$0xff]  }
0x1344   : > { %6003 = vmatpush1.bf16.msra.mxu0 %v8241_v3  ;;  %v8291_v3 = vld [vmem:[#allocation13 + $0x1e0] sm:$0xff]  }
0x1345   : > { %6004 = vmatprep.subr.bf16.mxu0 %v8249_v7  ;;  %v8293_v7 = vld [vmem:[#allocation13 + $0x1a0] sm:$0xff]  }
0x1348   : > { %6005 = vmatpush1.bf16.msra.mxu0 %v8247_v28  ;;  %v8295_v28 = vld [vmem:[#allocation13 + $0x1e8] sm:$0xff]  }
0x1349   : > { %6006 = vmatprep.subr.bf16.mxu0 %v8255_v63  ;;  %v8297_v63 = vld [vmem:[#allocation13 + $0x1a8] sm:$0xff]  }
0x134c   : > { %6007 = vmatpush1.bf16.msra.mxu0 %v8253_v34  ;;  %v8299_v34 = vld [vmem:[#allocation13 + $0x1f0] sm:$0xff]  }
0x134d   : > { %6008 = vmatprep.subr.bf16.mxu0 %v8261_v14  ;;  %v8301_v14 = vld [vmem:[#allocation13 + $0x1b0] sm:$0xff]  }
0x1350   : > { %6009 = vmatpush1.bf16.msra.mxu0 %v8259_v1  ;;  %v8303_v1 = vld [vmem:[#allocation13 + $0x1f8] sm:$0xff]  }
0x1351   : > { %6010 = vmatprep.subr.bf16.mxu0 %v8267_v26  ;;  %v8305_v26 = vld [vmem:[#allocation13 + $0x1b8] sm:$0xff]  }
0x1354   : > { %6011 = vmatpush1.bf16.msra.mxu0 %v8265_v23  ;;  %v5778_v23 = vrot.slane %v5773_v36, %v9447_v55 }
0x1355   : > { %6012 = vmatprep.subr.bf16.mxu0 %v8273_v32 }
0x1358   : > { %6013 = vmatpush1.bf16.msra.mxu0 %v8271_v24  ;;  %v5782_v24 = vrot.slane %v5773_v36, %v9452_v57 }
0x1359   : > { %7641 = vmatprep.subr.bf16.mxu0 %v8275_v50 }
0x13c7   : > { %v5701_v12 = vpop.xlane.xlu1 %5700 }
0x13c8   : > { %v5704_v0 = vmul.f32 0.0078125, %v5701_v12  ;;  %v8280_v12 = vld [vmem:[#allocation13 + $0x108] sm:$0xff]  }
0x13c9   : > { %v5703_v48 = vpop.xlane.xlu0 %5702 }
0x13ca   : > { %v10395_v47 = vsub.f32 %v10363_v35, %v5704_v0  ;;  %v5705_v45 = vmul.f32 0.0078125, %v5703_v48  ;;  %v8281_v0 = vld [vmem:[#allocation13 + $0x188] sm:$0xff]   ;;  %v8282_v48 = vld [vmem:[#allocation13 + $0x150] sm:$0xff]  }
0x13cc   : > { %v10398_v22 = vsub.f32 %v10366_v42, %v5705_v45  ;;  %v5708_v2 = vmul.f32 %v10395_v47, %v10395_v47  ;;  %v8284_v45 = vld [vmem:[#allocation13 + $0x110] sm:$0xff]  }
0x13ce   : > { %5710 = vadd.xlane.f32.xlu0 %v5708_v2  ;;  %v5709_v33 = vmul.f32 %v10398_v22, %v10398_v22  ;;  %v8286_v2 = vld [vmem:[#allocation13 + $0x158] sm:$0xff]  }
0x13d0   : > { %5712 = vadd.xlane.f32.xlu1 %v5709_v33  ;;  %v8287_v33 = vld [vmem:[#allocation13 + $0x1d8] sm:$0xff]  }
0x145b   : > { %v5711_v62 = vpop.xlane.xlu0 %5710 }
0x145c   : > { %v5714_v27 = vmul.f32 0.0078125, %v5711_v62  ;;  %v5790_v62 = vrot.slane %v5773_v36, %v9961_v46 }
0x145d   : > { %v5713_v17 = vpop.xlane.xlu1 %5712 }
0x145e   : > { %v5716_v6 = vadd.f32 1e-05, %v5714_v27  ;;  %v5715_v13 = vmul.f32 0.0078125, %v5713_v17 }
0x1460   : > { %8446 = vrsqrt.f32 %v5716_v6  ;;  %v5717_v20 = vadd.f32 1e-05, %v5715_v13 }
0x1462   : > { %8448 = vrsqrt.f32 %v5717_v20 }
0x146a   : > { %v8447_v10 = vpop.eup %8446 }
0x146b   : > { %v5720_v61 = vmul.f32 %v8447_v10, %v10395_v47  ;;  %v8283_v47 = vld [vmem:[#allocation13 + $0x1d0] sm:$0xff]  }
0x146c   : > { %v8449_v37 = vpop.eup %8448 }
0x146d   : > { %v5721_v56 = vmul.f32 %v8449_v37, %v10398_v22  ;;  %v5728_v25 = vmul.f32 %v7360_v21, %v5720_v61  ;;  %v8285_v22 = vld [vmem:[#allocation13 + $0x190] sm:$0xff]  }
0x146f   : > { %v5729_v38 = vmul.f32 %v7360_v21, %v5721_v56  ;;  %v5736_v40 = vadd.f32 %v7361_v29, %v5728_v25 }
0x1471   : > { %v5737_v44 = vadd.f32 %v7361_v29, %v5729_v38 }
0x1473   : > { %v5738_v51 = vpack.c.bf16 %v5737_v44, %v5736_v40 }
0x1475   : > { %5988 = vmatmul.mubr.bf16.vlgmr.msra.gmra.mrb[56].mxu1 %v5738_v51  ;;  %6031 = vmatmul.mubr.bf16.vlgmr.msra.gmra.mrb[48].mxu0 %v5738_v51 }
0x1476   : > { %7620 = vmatpush3.bf16.msra.mxu1 %v8276_v52  ;;  %7642 = vmatpush3.bf16.msra.mxu0 %v8277_v49 }
0x1477   : > { %7621 = vmatprep.subr.bf16.mxu1 %v8278_v58  ;;  %7643 = vmatprep.subr.bf16.mxu0 %v8279_v9 }
0x147a   : > { %7622 = vmatpush3.bf16.msra.mxu1 %v8280_v12  ;;  %7644 = vmatpush3.bf16.msra.mxu0 %v8281_v0 }
0x147b   : > { %7623 = vmatprep.subr.bf16.mxu1 %v8282_v48  ;;  %7645 = vmatprep.subr.bf16.mxu0 %v8283_v47 }
0x147e   : > { %7624 = vmatpush3.bf16.msra.mxu1 %v8284_v45  ;;  %7646 = vmatpush3.bf16.msra.mxu0 %v8285_v22 }
0x147f   : > { %7625 = vmatprep.subr.bf16.mxu1 %v8286_v2  ;;  %7647 = vmatprep.subr.bf16.mxu0 %v8287_v33 }
0x1482   : > { %7626 = vmatpush3.bf16.msra.mxu1 %v8288_v59  ;;  %7648 = vmatpush3.bf16.msra.mxu0 %v8289_v60 }
0x1483   : > { %7627 = vmatprep.subr.bf16.mxu1 %v8290_v8  ;;  %7649 = vmatprep.subr.bf16.mxu0 %v8291_v3 }
0x1486   : > { %7628 = vmatpush3.bf16.msra.mxu1 %v8292_v19  ;;  %7650 = vmatpush3.bf16.msra.mxu0 %v8293_v7 }
0x1487   : > { %7629 = vmatprep.subr.bf16.mxu1 %v8294_v39  ;;  %7651 = vmatprep.subr.bf16.mxu0 %v8295_v28 }
0x148a   : > { %7630 = vmatpush3.bf16.msra.mxu1 %v8296_v53  ;;  %7652 = vmatpush3.bf16.msra.mxu0 %v8297_v63 }
0x148b   : > { %7631 = vmatprep.subr.bf16.mxu1 %v8298_v31  ;;  %7653 = vmatprep.subr.bf16.mxu0 %v8299_v34 }
0x148e   : > { %7632 = vmatpush3.bf16.msra.mxu1 %v8300_v41  ;;  %7654 = vmatpush3.bf16.msra.mxu0 %v8301_v14 }
0x148f   : > { %7633 = vmatprep.subr.bf16.mxu1 %v8302_v43  ;;  %7655 = vmatprep.subr.bf16.mxu0 %v8303_v1 }
0x1492   : > { %7634 = vmatpush3.bf16.msra.mxu1 %v8304_v15  ;;  %7656 = vmatpush3.bf16.msra.mxu0 %v8305_v26 }
0x1548   : > { %v5989_v32 = vpop.f32.mrb[56].mxu1  ;;  %v6032_v18 = vpop.f32.mrb[48].mxu0 }
0x1549   : > { %v5991_v27 = vpop.f32.mrb[57].mxu1  ;;  %v6034_v17 = vpop.f32.mrb[49].mxu0  ;;  %v5990_v20 = vadd.f32 %v5989_v32, %v5778_v23  ;;  %v6033_v10 = vadd.f32 %v6032_v18, %v5786_v16 }
0x154a   : > { %v5993_v6 = vpop.f32.mrb[58].mxu1  ;;  %v6036_v13 = vpop.f32.mrb[50].mxu0  ;;  %v5992_v25 = vadd.f32 %v5991_v27, %v5782_v24  ;;  %v6035_v29 = vadd.f32 %v6034_v17, %v5790_v62  ;;  %v7427_v17 = vld [vmem:[%s10618_s25 + $0x1] ss:$0 sm:$0xff] }
0x154b   : > { %v5994_v21 = vadd.f32 %v5993_v6, %v5778_v23  ;;  %v6037_v61 = vadd.f32 %v6036_v13, %v5786_v16  ;;  %v5995_v37 = vpop.f32.mrb[59].mxu1  ;;  %v6038_v56 = vpop.f32.mrb[51].mxu0 }
0x154c   : > { %v5996_v38 = vadd.f32 %v5995_v37, %v5782_v24  ;;  %v6039_v40 = vadd.f32 %v6038_v56, %v5790_v62 }
0x154d   : > { %v6041_v44 = vpack.c.bf16 %v5994_v21, %v5990_v20  ;;  %v6043_v51 = vpack.c.bf16 %v6037_v61, %v6033_v10 }
0x154e   : > { %v6042_v11 = vpack.c.bf16 %v5996_v38, %v5992_v25  ;;  %v6044_v50 = vpack.c.bf16 %v6039_v40, %v6035_v29 }
0x154f   : > { %v6049_v52 = vmul.bf16 1027030327, %v6041_v44  ;;  %v6051_v49 = vmul.bf16 1027030327, %v6043_v51  ;;  %v6045_v26 = vmul.bf16 1056980736, %v6041_v44 }
0x1550   : > { %v6050_v58 = vmul.bf16 1027030327, %v6042_v11  ;;  %v6052_v9 = vmul.bf16 1027030327, %v6044_v50  ;;  %v6046_v41 = vmul.bf16 1056980736, %v6042_v11 }
0x1551   : > { %v6053_v12 = vmul.bf16 %v6049_v52, %v6041_v44  ;;  %v6055_v0 = vmul.bf16 %v6051_v49, %v6043_v51  ;;  %v6048_v1 = vmul.bf16 1056980736, %v6044_v50  ;;  %v6047_v23 = vmul.bf16 1056980736, %v6043_v51 }
0x1552   : > { %v6054_v48 = vmul.bf16 %v6050_v58, %v6042_v11  ;;  %v6056_v47 = vmul.bf16 %v6052_v9, %v6044_v50 }
0x1553   : > { %v6057_v45 = vmul.bf16 %v6053_v12, %v6041_v44  ;;  %v6059_v22 = vmul.bf16 %v6055_v0, %v6043_v51 }
0x1554   : > { %v6058_v2 = vmul.bf16 %v6054_v48, %v6042_v11  ;;  %v6060_v33 = vmul.bf16 %v6056_v47, %v6044_v50 }
0x1555   : > { %v6061_v59 = vadd.bf16 %v6057_v45, %v6041_v44  ;;  %v6063_v60 = vadd.bf16 %v6059_v22, %v6043_v51 }
0x1556   : > { %v6062_v8 = vadd.bf16 %v6058_v2, %v6042_v11  ;;  %v6064_v3 = vadd.bf16 %v6060_v33, %v6044_v50 }
0x1557   : > { %v6065_v19 = vmul.bf16 1061961548, %v6061_v59  ;;  %v6067_v28 = vmul.bf16 1061961548, %v6063_v60  ;;  %v7460_v59 = vld [vmem:[#allocation15] ss:$0 sm:$0xff] }
0x1558   : > { %v6066_v7 = vmul.bf16 1061961548, %v6062_v8  ;;  %v6068_v39 = vmul.bf16 1061961548, %v6064_v3  ;;  %v7461_v3 = vld [vmem:[#allocation16] ss:$0 sm:$0xff] }
0x1559   : > { %8450 = vtanh.bf16 %v6065_v19 }
0x155a   : > { %8452 = vtanh.bf16 %v6066_v7 }
0x155b   : > { %8454 = vtanh.bf16 %v6068_v39 }
0x155c   : > { %8456 = vtanh.bf16 %v6067_v28 }
0x1564   : > { %v8451_v53 = vpop.eup %8450 }
0x1565   : > { %v8453_v63 = vpop.eup %8452  ;;  %v6073_v31 = vadd.bf16 1065369472, %v8451_v53 }
0x1566   : > { %v8455_v34 = vpop.eup %8454  ;;  %v6074_v14 = vadd.bf16 1065369472, %v8453_v63  ;;  %v8306_v63 = vld [vmem:[#allocation21] ss:$20 sps:$4 sm:$0xff]  }
0x1567   : > { %v8457_v43 = vpop.eup %8456  ;;  %v6076_v15 = vadd.bf16 1065369472, %v8455_v34  ;;  %v6077_v18 = vmul.bf16 %v6073_v31, %v6045_v26  ;;  %v8308_v31 = vld [vmem:[#allocation21 + $0x4] ss:$20 sps:$4 sm:$0xff]   ;;  %v8309_v34 = vld [vmem:[#allocation21 + $0x8] ss:$20 sps:$4 sm:$0xff]  }
0x1568   : > { %v6078_v36 = vmul.bf16 %v6074_v14, %v6046_v41  ;;  %v6075_v16 = vadd.bf16 1065369472, %v8457_v43  ;;  %v8311_v41 = vld [vmem:[#allocation21 + $0xc] ss:$20 sps:$4 sm:$0xff]   ;;  %6794 = vmatprep.subr.bf16.mxu1 %v8308_v31  ;;  %v8317_v43 = vld [vmem:[#allocation21 + $0x34] ss:$20 sps:$4 sm:$0xff]  }
0x1569   : > { %v6080_v32 = vmul.bf16 %v6076_v15, %v6048_v1  ;;  %v8314_v14 = vld [vmem:[#allocation21 + $0x2c] ss:$20 sps:$4 sm:$0xff]   ;;  %6837 = vmatprep.subr.bf16.mxu0 %v8311_v41  ;;  %v8312_v1 = vld [vmem:[#allocation21 + $0x28] ss:$20 sps:$4 sm:$0xff]   ;;  %v8315_v15 = vld [vmem:[#allocation21 + $0x30] ss:$20 sps:$4 sm:$0xff]  }
0x156a   : > { %6378 = vmatprep.mubr.bf16.mxu1 %v6078_v36  ;;  %v6079_v24 = vmul.bf16 %v6075_v16, %v6047_v23  ;;  %v8356_v31 = vld [vmem:[#allocation21 + $0x60] ss:$20 sps:$4 sm:$0xff]   ;;  %v8358_v41 = vld [vmem:[#allocation21 + $0xb0] ss:$20 sps:$4 sm:$0xff]  }
0x156b   : > { %6419 = vmatprep.mubr.bf16.mxu0 %v6080_v32  ;;  %6379 = vmatmul.mubr.bf16.vlgmr.msra.gmra.mrb[60].mxu1 %v6077_v18 }
0x156c   : > { %6420 = vmatmul.mubr.bf16.vlgmr.msra.gmra.mrb[52].mxu0 %v6079_v24  ;;  %6826 = vmatprep.mubr.bf16.mxu1 %v8925_v30 }
0x156d   : > { %6869 = vmatprep.mubr.bf16.mxu0 %v8925_v30  ;;  %6795 = vmatpush1.bf16.msra.mxu1 %v8306_v63  ;;  %v8355_v63 = vld [vmem:[#allocation21 + $0x38] ss:$20 sps:$4 sm:$0xff]  }
0x156e   : > { %6838 = vmatpush1.bf16.msra.mxu0 %v8309_v34  ;;  %6796 = vmatprep.subr.bf16.mxu1 %v8314_v14  ;;  %v8357_v34 = vld [vmem:[#allocation21 + $0x88] ss:$20 sps:$4 sm:$0xff]   ;;  %v8359_v14 = vld [vmem:[#allocation21 + $0xd8] ss:$20 sps:$4 sm:$0xff]  }
0x156f   : > { %6839 = vmatprep.subr.bf16.mxu0 %v8317_v43  ;;  %v8360_v43 = vld [vmem:[#allocation21 + $0x100] ss:$20 sps:$4 sm:$0xff]  }
0x1571   : > { %6797 = vmatpush1.bf16.msra.mxu1 %v8312_v1  ;;  %v8361_v1 = vld [vmem:[#allocation21 + $0x128] ss:$20 sps:$4 sm:$0xff]  }
0x1572   : > { %6840 = vmatpush1.bf16.msra.mxu0 %v8315_v15  ;;  %v6559_v15 = vld [vmem:[#allocation22] sm:$0x1f] }
0x163e   : > { %v7635_v62 = vpop.f32.mrb[60].mxu1 }
0x163f   : > { %v7657_v27 = vpop.f32.mrb[52].mxu0  ;;  %v7636_v6 = vpop.f32.mrb[61].mxu1 }
0x1640   : > { %v7637_v13 = vadd.f32 %v7636_v6, %v7635_v62  ;;  %v7658_v20 = vpop.f32.mrb[53].mxu0  ;;  %v7638_v10 = vpop.f32.mrb[62].mxu1  ;;  %v8323_v6 = vld [vmem:[#allocation21 + $0x5c] ss:$20 sps:$4 sm:$0xff]  }
0x1641   : > { %v7659_v21 = vadd.f32 %v7658_v20, %v7657_v27  ;;  %v7660_v61 = vpop.f32.mrb[54].mxu0  ;;  %v7639_v37 = vpop.f32.mrb[63].mxu1  ;;  %v8320_v27 = vld [vmem:[#allocation21 + $0x54] ss:$20 sps:$4 sm:$0xff]   ;;  %6841 = vmatprep.subr.bf16.mxu0 %v8323_v6  ;;  %v8326_v20 = vld [vmem:[#allocation21 + $0x7c] ss:$20 sps:$4 sm:$0xff]  }
0x1642   : > { %v6381_v56 = vadd.f32 %v7637_v13, %v7427_v17  ;;  %v7640_v25 = vadd.f32 %v7639_v37, %v7638_v10  ;;  %v7661_v29 = vpop.f32.mrb[55].mxu0  ;;  %6798 = vmatprep.subr.bf16.mxu1 %v8320_v27  ;;  %v8321_v13 = vld [vmem:[#allocation21 + $0x58] ss:$20 sps:$4 sm:$0xff]  }
0x1643   : > { %v7662_v38 = vadd.f32 %v7661_v29, %v7660_v61  ;;  %6842 = vmatpush1.bf16.msra.mxu0 %v8321_v13  ;;  %v8324_v10 = vld [vmem:[#allocation21 + $0x78] ss:$20 sps:$4 sm:$0xff]   ;;  %v8327_v61 = vld [vmem:[#allocation21 + $0x80] ss:$20 sps:$4 sm:$0xff]   ;;  %v8333_v29 = vld [vmem:[#allocation21 + $0xa8] ss:$20 sps:$4 sm:$0xff]  }
0x1644   : > { %v6422_v40 = vadd.f32 %v7659_v21, %v6381_v56  ;;  %v6384_v44 = vadd.f32 %v7640_v25, %v7427_v17  ;;  %v8318_v17 = vld [vmem:[#allocation21 + $0x50] ss:$20 sps:$4 sm:$0xff]   ;;  %v8330_v56 = vld [vmem:[#allocation21 + $0xa0] ss:$20 sps:$4 sm:$0xff]  }
0x1645   : > { %6799 = vmatpush1.bf16.msra.mxu1 %v8318_v17  ;;  %v8329_v21 = vld [vmem:[#allocation21 + $0x84] ss:$20 sps:$4 sm:$0xff]   ;;  %v8335_v25 = vld [vmem:[#allocation21 + $0xac] ss:$20 sps:$4 sm:$0xff]  }
0x1646   : > { %v6425_v30 = vadd.f32 %v7662_v38, %v6384_v44  ;;  %v6428_v51 = vadd.f32 %v6422_v40, %v10363_v35  ;;  %6800 = vmatprep.subr.bf16.mxu1 %v8326_v20  ;;  %6843 = vmatprep.subr.bf16.mxu0 %v8329_v21  ;;  %v8332_v37 = vld [vmem:[#allocation21 + $0xa4] ss:$20 sps:$4 sm:$0xff]   ;;  %v8338_v38 = vld [vmem:[#allocation21 + $0xcc] ss:$20 sps:$4 sm:$0xff]   ;;  %v8336_v40 = vld [vmem:[#allocation21 + $0xc8] ss:$20 sps:$4 sm:$0xff]  }
0x1647   : > { %6844 = vmatpush1.bf16.msra.mxu0 %v8327_v61  ;;  %v8341_v44 = vld [vmem:[#allocation21 + $0xd4] ss:$20 sps:$4 sm:$0xff]   ;;  %v6579_v61 = vsub.s32 4, %v9444_v54 }
0x1648   : > { %6432 = vadd.xlane.f32.xlu0 %v6428_v51  ;;  %v6429_v11 = vadd.f32 %v6425_v30, %v10366_v42  ;;  %6845 = vmatprep.subr.bf16.mxu0 %v8335_v25  ;;  %v8339_v30 = vld [vmem:[#allocation21 + $0xd0] ss:$20 sps:$4 sm:$0xff]  }
0x1649   : > { %6801 = vmatpush1.bf16.msra.mxu1 %v8324_v10 }
0x164a   : > { %6434 = vadd.xlane.f32.xlu1 %v6429_v11  ;;  %6802 = vmatprep.subr.bf16.mxu1 %v8332_v37  ;;  %v6580_v37 = vrot.slane %v6559_v15, %v6579_v61 }
0x164b   : > { %6846 = vmatpush1.bf16.msra.mxu0 %v8333_v29 }
0x164c   : > { %6847 = vmatprep.subr.bf16.mxu0 %v8341_v44 }
0x164d   : > { %6803 = vmatpush1.bf16.msra.mxu1 %v8330_v56 }
0x164e   : > { %6804 = vmatprep.subr.bf16.mxu1 %v8338_v38 }
0x164f   : > { %6848 = vmatpush1.bf16.msra.mxu0 %v8339_v30 }
0x1651   : > { %6805 = vmatpush1.bf16.msra.mxu1 %v8336_v40 }
0x16d5   : > { %v6433_v50 = vpop.xlane.xlu0 %6432 }
0x16d6   : > { %v6436_v52 = vmul.f32 0.0078125, %v6433_v50  ;;  %v8342_v50 = vld [vmem:[#allocation21 + $0xf0] ss:$20 sps:$4 sm:$0xff]  }
0x16d7   : > { %v6435_v49 = vpop.xlane.xlu1 %6434 }
0x16d8   : > { %v6438_v58 = vsub.f32 %v6428_v51, %v6436_v52  ;;  %v6437_v9 = vmul.f32 0.0078125, %v6435_v49  ;;  %v8344_v51 = vld [vmem:[#allocation21 + $0xf4] ss:$20 sps:$4 sm:$0xff]   ;;  %v8345_v52 = vld [vmem:[#allocation21 + $0xf8] ss:$20 sps:$4 sm:$0xff]  }
0x16d9   : > { %6806 = vmatprep.subr.bf16.mxu1 %v8344_v51  ;;  %v8350_v49 = vld [vmem:[#allocation21 + $0x11c] ss:$20 sps:$4 sm:$0xff]  }
0x16da   : > { %v6439_v12 = vsub.f32 %v6429_v11, %v6437_v9  ;;  %v6440_v0 = vmul.f32 %v6438_v58, %v6438_v58  ;;  %v8347_v11 = vld [vmem:[#allocation21 + $0xfc] ss:$20 sps:$4 sm:$0xff]   ;;  %6807 = vmatpush1.bf16.msra.mxu1 %v8342_v50  ;;  %v8348_v9 = vld [vmem:[#allocation21 + $0x118] ss:$20 sps:$4 sm:$0xff]  }
0x16db   : > { %6849 = vmatprep.subr.bf16.mxu0 %v8347_v11  ;;  %6808 = vmatprep.subr.bf16.mxu1 %v8350_v49 }
0x16dc   : > { %6442 = vadd.xlane.f32.xlu0 %v6440_v0  ;;  %v6441_v48 = vmul.f32 %v6439_v12, %v6439_v12  ;;  %6850 = vmatpush1.bf16.msra.mxu0 %v8345_v52 }
0x16de   : > { %6444 = vadd.xlane.f32.xlu1 %v6441_v48  ;;  %6809 = vmatpush1.bf16.msra.mxu1 %v8348_v9 }
0x16df   : > { %7848 = vmatprep.subr.bf16.mxu1 %v8924_v4 }
0x1769   : > { %v6443_v47 = vpop.xlane.xlu0 %6442 }
0x176a   : > { %v6446_v45 = vmul.f32 0.0078125, %v6443_v47 }
0x176b   : > { %v6445_v22 = vpop.xlane.xlu1 %6444 }
0x176c   : > { %v6448_v2 = vadd.f32 1e-05, %v6446_v45  ;;  %v6447_v33 = vmul.f32 0.0078125, %v6445_v22 }
0x176e   : > { %8458 = vrsqrt.f32 %v6448_v2  ;;  %v6449_v35 = vadd.f32 1e-05, %v6447_v33 }
0x1770   : > { %8460 = vrsqrt.f32 %v6449_v35  ;;  %v7462_v35 = vld [vmem:[#allocation18] ss:$0 sm:$0xff] }
0x1778   : > { %v8459_v42 = vpop.eup %8458 }
0x1779   : > { %v6452_v60 = vmul.f32 %v8459_v42, %v6438_v58  ;;  %v8353_v58 = vld [vmem:[#allocation21 + $0x124] ss:$20 sps:$4 sm:$0xff]  }
0x177a   : > { %v8461_v8 = vpop.eup %8460  ;;  %6851 = vmatprep.subr.bf16.mxu0 %v8353_v58 }
0x177b   : > { %v6460_v19 = vmul.f32 %v7460_v59, %v6452_v60  ;;  %v6453_v7 = vmul.f32 %v8461_v8, %v6439_v12  ;;  %v8351_v12 = vld [vmem:[#allocation21 + $0x120] ss:$20 sps:$4 sm:$0xff]  }
0x177c   : > { %6852 = vmatpush1.bf16.msra.mxu0 %v8351_v12 }
0x177d   : > { %v6468_v39 = vadd.f32 %v7461_v3, %v6460_v19  ;;  %v6461_v28 = vmul.f32 %v7460_v59, %v6453_v7 }
0x177f   : > { %6472 = vadd.xlane.f32.xlu0 %v6468_v39  ;;  %v6469_v53 = vadd.f32 %v7461_v3, %v6461_v28  ;;  %v7463_v3 = vld [vmem:[#allocation19] ss:$0 sm:$0xff]  ;;  %v8354_v28 = vld [vmem:[#allocation21 + $0x10] ss:$20 sps:$4 sm:$0xff]  }
0x1781   : > { %6474 = vadd.xlane.f32.xlu1 %v6469_v53 }
0x180c   : > { %v6473_v26 = vpop.xlane.xlu0 %6472 }
0x180d   : > { %v6476_v36 = vmul.f32 0.0078125, %v6473_v26  ;;  %v6564_v26 = vrot.slane %v6559_v15, %v9447_v55 }
0x180e   : > { %v6475_v23 = vpop.xlane.xlu1 %6474 }
0x180f   : > { %v10489_v16 = vsub.f32 %v6468_v39, %v6476_v36  ;;  %v6477_v32 = vmul.f32 0.0078125, %v6475_v23  ;;  %v6572_v36 = vrot.slane %v6559_v15, %v9648_v5  ;;  %v6568_v23 = vrot.slane %v6559_v15, %v9452_v57 }
0x1811   : > { %v10491_v18 = vsub.f32 %v6469_v53, %v6477_v32  ;;  %v6480_v24 = vmul.f32 %v10489_v16, %v10489_v16 }
0x1813   : > { %6482 = vadd.xlane.f32.xlu0 %v6480_v24  ;;  %v6481_v62 = vmul.f32 %v10491_v18, %v10491_v18 }
0x1815   : > { %6484 = vadd.xlane.f32.xlu1 %v6481_v62 }
0x18a0   : > { %v6483_v0 = vpop.xlane.xlu0 %6482 }
0x18a1   : > { %v6486_v48 = vmul.f32 0.0078125, %v6483_v0 }
0x18a2   : > { %v6485_v47 = vpop.xlane.xlu1 %6484 }
0x18a3   : > { %v6488_v45 = vadd.f32 1e-05, %v6486_v48  ;;  %v6487_v22 = vmul.f32 0.0078125, %v6485_v47 }
0x18a5   : > { %8462 = vrsqrt.f32 %v6488_v45  ;;  %v6489_v2 = vadd.f32 1e-05, %v6487_v22 }
0x18a7   : > { %8464 = vrsqrt.f32 %v6489_v2 }
0x18af   : > { %v8463_v33 = vpop.eup %8462 }
0x18b0   : > { %v6492_v42 = vmul.f32 %v8463_v33, %v10489_v16  ;;  %v6576_v16 = vrot.slane %v6559_v15, %v9961_v46 }
0x18b1   : > { %v8465_v59 = vpop.eup %8464 }
0x18b2   : > { %v6493_v60 = vmul.f32 %v8465_v59, %v10491_v18  ;;  %v6500_v8 = vmul.f32 %v7462_v35, %v6492_v42 }
0x18b4   : > { %v6501_v19 = vmul.f32 %v7462_v35, %v6493_v60  ;;  %v6508_v7 = vadd.f32 %v7463_v3, %v6500_v8 }
0x18b6   : > { %v6509_v39 = vadd.f32 %v7463_v3, %v6501_v19 }
0x18b8   : > { %v6510_v53 = vpack.c.bf16 %v6509_v39, %v6508_v7 }
0x18ba   : > { %6827 = vmatmul.mubr.bf16.vlgmr.msra.gmra.mrb[64].mxu1 %v6510_v53  ;;  %6870 = vmatmul.mubr.bf16.vlgmr.msra.gmra.mrb[56].mxu0 %v6510_v53 }
0x18bb   : > { %7849 = vmatpush3.bf16.msra.mxu1 %v8354_v28  ;;  %7864 = vmatprep.mubr.msk.bf16.mxu1 %vm8926_vm0, %v8924_v4 }
0x18bc   : > { %7850 = vmatprep.subr.bf16.mxu1 %v8924_v4 }
0x18bf   : > { %7851 = vmatpush3.bf16.msra.mxu1 %v8355_v63 }
0x18c0   : > { %7852 = vmatprep.subr.bf16.mxu1 %v8924_v4 }
0x18c3   : > { %7853 = vmatpush3.bf16.msra.mxu1 %v8356_v31 }
0x18c4   : > { %7854 = vmatprep.subr.bf16.mxu1 %v8924_v4 }
0x18c7   : > { %7855 = vmatpush3.bf16.msra.mxu1 %v8357_v34 }
0x18c8   : > { %7856 = vmatprep.subr.bf16.mxu1 %v8924_v4 }
0x18cb   : > { %7857 = vmatpush3.bf16.msra.mxu1 %v8358_v41 }
0x18cc   : > { %7858 = vmatprep.subr.bf16.mxu1 %v8924_v4 }
0x18cf   : > { %7859 = vmatpush3.bf16.msra.mxu1 %v8359_v14 }
0x18d0   : > { %7860 = vmatprep.subr.bf16.mxu1 %v8924_v4 }
0x18d3   : > { %7861 = vmatpush3.bf16.msra.mxu1 %v8360_v43 }
0x18d4   : > { %7862 = vmatprep.subr.bf16.mxu1 %v8924_v4 }
0x18d7   : > { %7863 = vmatpush3.bf16.msra.mxu1 %v8361_v1 }
0x18da   : > { %7865 = vmatmul.mubr.bf16.vlgmr.msra.gmra.mrb[68].mxu1 %v6510_v53 }
0x198d   : > { %v6828_v4 = vpop.f32.mrb[64].mxu1  ;;  %v6871_v32 = vpop.f32.mrb[56].mxu0 }
0x198e   : > { %v6829_v18 = vadd.f32 %v6828_v4, %v6564_v26  ;;  %v6872_v24 = vadd.f32 %v6871_v32, %v6572_v36  ;;  %v6830_v55 = vpop.f32.mrb[65].mxu1  ;;  %v6873_v5 = vpop.f32.mrb[57].mxu0 }
0x198f   : > { %v6831_v57 = vadd.f32 %v6830_v55, %v6568_v23  ;;  %v6874_v46 = vadd.f32 %v6873_v5, %v6576_v16  ;;  %v6832_v62 = vpop.f32.mrb[66].mxu1  ;;  %v6875_v27 = vpop.f32.mrb[58].mxu0 }
0x1990   : > { %6921 = vst [vmem:[%s10517_s0] sm:$0xff] %v6829_v18  ;;  %6923 = vst [vmem:[%s10517_s0 + $0x10] sm:$0xff] %v6872_v24  ;;  %v6833_v17 = vadd.f32 %v6832_v62, %v6564_v26  ;;  %v6876_v6 = vadd.f32 %v6875_v27, %v6572_v36  ;;  %v6834_v13 = vpop.f32.mrb[67].mxu1  ;;  %v6877_v20 = vpop.f32.mrb[59].mxu0 }
0x1991   : > { %6922 = vst [vmem:[%s10517_s0 + $0x8] sm:$0xff] %v6831_v57  ;;  %6924 = vst [vmem:[%s10517_s0 + $0x18] sm:$0xff] %v6874_v46  ;;  %v6835_v10 = vadd.f32 %v6834_v13, %v6568_v23  ;;  %v6878_v21 = vadd.f32 %v6877_v20, %v6576_v16 }
0x1992   : > { %6926 = vst [vmem:[%s10517_s0 + $0x28] sm:$0xff] %v6833_v17  ;;  %6928 = vst [vmem:[%s10517_s0 + $0x38] sm:$0xff] %v6876_v6 }
0x1993   : > { %6927 = vst [vmem:[%s10517_s0 + $0x30] sm:$0xff] %v6835_v10  ;;  %6929 = vst [vmem:[%s10517_s0 + $0x40] sm:$0xff] %v6878_v21 }
0x19ad   : > { %v6914_v56 = vpop.f32.mrb[68].mxu1 }
0x19ae   : > { %v6915_v25 = vadd.f32 %v6914_v56, %v6580_v37  ;;  %v7866_v29 = vpop.f32.mrb[69].mxu1 }
0x19af   : > { %v6917_v38 = vpop.f32.mrb[70].mxu1 }
0x19b0   : > { %6925 = vst [vmem:[%s10517_s0 + $0x20] sm:$0xff] %v6915_v25  ;;  %v6918_v40 = vadd.f32 %v6917_v38, %v6580_v37  ;;  %v7867_v44 = vpop.f32.mrb[71].mxu1 }
0x19b2   : > { %6930 = vst [vmem:[%s10517_s0 + $0x48] sm:$0xff] %v6918_v40 }
0x19b3 PF: > { %s10620_s21 = sld [smem:[#allocation32_spill]] }
0x19b9   : > { %s37_s0 = sadd.s32 1, %s10620_s21  }
0x19ba   : > { %p34_p0 = scmp.ge.s32.totalorder %s37_s0, 4  }
0x19bc   :  { %36 = sbr.rel (!%p34_p0) target bundleno = 21 (0x15), region = 195 }
0x19c3   :  { %6952 = vsyncpa [#allocation3], 1 }
0x19c4   :  { %6954 = vsyncpa [#allocation3 + $0x1], 1 }
0x19c5   :  { %6955 = vsyncpa [#allocation5], 1 }
0x19c6   :  { %6956 = vsyncpa [#allocation8], 1 }
0x19c7   :  { %6957 = vsyncpa [#allocation11], 1 }
0x19c8   :  { %6958 = vsyncpa [#allocation14], 1 }
0x19c9   :  { %6959 = vsyncpa [#allocation17], 1 }
0x19ca   :  { %6960 = vsyncpa [#allocation20], 1 }
0x19cb   :  { %6961 = vsyncpa [#allocation23], 1 }

</bundles_post_ra>
